<compile_context>
chip_gen: v5e
topology: v5e:2x2
jax: 0.10.0
libtpu: 0.0.40
codegen_flags: <defaults>
</compile_context>

<pallas_src>
import jax
import jax.numpy as jnp
from jax.experimental import pallas as pl
from jax.experimental.pallas import tpu as pltpu

EPS = 1e-5


def _taps_3x3(a, left_mask, right_mask, compute_dtype=jnp.bfloat16):
    """9 zero-padded 3x3 taps of a (H, W, C) f32 slab, returned in bf16.

    taps[3*dy + dx][i, j, :] == a[i+dy-1, j+dx-1, :]  (0 outside the image).
    H shifts: leading-dim slices of an H-padded copy (free).
    W shifts: 2 hoisted XLU rolls on the padded slab + (1, W, 1) edge masks.
    """
    H, W, C = a.shape
    zrow = jnp.zeros((1, W, C), a.dtype)
    aph = jnp.concatenate([zrow, a, zrow], axis=0)                    # (H+2, W, C)
    # Hoisted W-shifts: done once per conv, not once per dy (6 rolls -> 2).
    aph_l = jnp.where(left_mask, 0.0, pltpu.roll(aph, shift=1, axis=1))      # dx = 0
    aph_r = jnp.where(right_mask, 0.0, pltpu.roll(aph, shift=W - 1, axis=1))  # dx = 2
    # Cast the three slabs once -> the MXU sees bf16 operands (f32 accumulate).
    aph, aph_l, aph_r = (s.astype(compute_dtype) for s in (aph, aph_l, aph_r))
    taps = []
    for dy in range(3):
        taps.extend([aph_l[dy:dy + H], aph[dy:dy + H], aph_r[dy:dy + H]])  # dx=0,1,2
    return taps


def _conv3x3(taps, w, C):
    """taps: 9 bf16 arrays (H, W, C); w: (9*C, C), rows (ky, kx, cin)-major.

    Returns the conv output as (H*W, C) f32 (f32 MXU accumulation).
    """
    H, W, _ = taps[0].shape
    HW = H * W
    w_bf = w.astype(jnp.bfloat16)                 # no-op when weights are bf16
    if C < 128 and 9 * C >= 128:
        # Mid-sized C: im2col concat buys a deeper K without a huge buffer.
        patches = jnp.concatenate(taps, axis=-1).reshape(HW, 9 * C)
        return jnp.dot(patches, w_bf, preferred_element_type=jnp.float32)
    # Large C (K = C already fills MXU depth) or tiny toy C: 9 accumulated
    # dots -- no (HW, 9C) VMEM slab, no 9-way lane-concat relayout.
    acc = jnp.dot(taps[0].reshape(HW, C), w_bf[:C, :],
                  preferred_element_type=jnp.float32)
    for k in range(1, 9):
        acc = acc + jnp.dot(taps[k].reshape(HW, C), w_bf[k * C:(k + 1) * C, :],
                            preferred_element_type=jnp.float32)
    return acc


def _instance_norm(acc, gamma, beta):
    """acc: (H*W, C) f32 conv output of ONE sample; gamma/beta: (1, C) f32.

    Single-pass stats (E[x], E[x^2]) with var clamped >= 0; affine folded into
    one FMA: y = acc*s + t, s = g*rsqrt(var+eps), t = beta - mean*s.
    """
    inv_n = 1.0 / acc.shape[0]
    mean = jnp.sum(acc, axis=0, keepdims=True) * inv_n
    ex2 = jnp.sum(acc * acc, axis=0, keepdims=True) * inv_n
    var = jnp.maximum(ex2 - mean * mean, 0.0)     # cancellation guard
    s = gamma * jax.lax.rsqrt(var + EPS)
    t = beta - mean * s
    return acc * s + t


def residual_block_kernel(x_ref, w1_ref, g1_ref, b1_ref,
                          w2_ref, g2_ref, b2_ref, o_ref):
    _, H, W, C = x_ref.shape
    x = x_ref[0].astype(jnp.float32)                              # (H, W, C)

    # Tiny (1, W, 1) edge masks for the W zero padding (hoisted, reused by both convs).
    col = jax.lax.broadcasted_iota(jnp.int32, (1, W, 1), 1)
    left_mask = col == 0
    right_mask = col == W - 1

    # conv1 -> IN1 -> ReLU   (bf16 MXU operands, f32 accumulation / stats)
    h = _instance_norm(
        _conv3x3(_taps_3x3(x, left_mask, right_mask), w1_ref[...], C),
        g1_ref[...].astype(jnp.float32), b1_ref[...].astype(jnp.float32))
    h = jnp.maximum(h, 0.0).reshape(H, W, C)                      # f32

    # conv2 -> IN2 -> residual add (residual stays f32)
    y = _instance_norm(
        _conv3x3(_taps_3x3(h, left_mask, right_mask), w2_ref[...], C),
        g2_ref[...].astype(jnp.float32), b2_ref[...].astype(jnp.float32))
    o_ref[0] = (x.reshape(H * W, C) + y).reshape(H, W, C).astype(o_ref.dtype)


def _vmem_limit_bytes(H, W, C):
    """Raise the scoped-VMEM limit only when the per-step footprint needs it."""
    act_f32 = H * W * C * 4
    act_bf16 = H * W * C * 2
    w_bytes = 9 * C * C * 2                       # bf16 weights
    need = (4 * act_f32                           # x + out blocks, double-buffered
            + 4 * w_bytes                         # w1 + w2, double-buffered
            + 3 * act_f32 + 3 * act_bf16          # padded/rolled slabs + bf16 copies
            + 2 * act_f32)                        # conv accumulator + h
    need = int(need * 1.25)                       # headroom
    default = 32 * 1024 * 1024
    if need <= default:
        return None
    # TODO(synk): v7x (64 MiB physical) needs the row-block tiling instead.
    return min(need, 112 * 1024 * 1024)


def _residual_block_call(x_nhwc, params, *, donate_input):
    w1, g1, b1, w2, g2, b2 = params
    N, H, W, C = x_nhwc.shape
    const = lambda n: (0, 0)
    alias = {"input_output_aliases": {0: 0}} if donate_input else {}
    return pl.pallas_call(
        residual_block_kernel,
        out_shape=jax.ShapeDtypeStruct((N, H, W, C), jnp.float32),
        grid=(N,),
        in_specs=[
            pl.BlockSpec((1, H, W, C), lambda n: (n, 0, 0, 0)),   # x
            pl.BlockSpec((9 * C, C), const),                       # w1 (bf16)
            pl.BlockSpec((1, C), const),                           # gamma1
            pl.BlockSpec((1, C), const),                           # beta1
            pl.BlockSpec((9 * C, C), const),                       # w2 (bf16)
            pl.BlockSpec((1, C), const),                           # gamma2
            pl.BlockSpec((1, C), const),                           # beta2
        ],
        out_specs=pl.BlockSpec((1, H, W, C), lambda n: (n, 0, 0, 0)),
        compiler_params=pltpu.CompilerParams(
            dimension_semantics=("parallel",),
            vmem_limit_bytes=_vmem_limit_bytes(H, W, C)),
        **alias,
    )(x_nhwc, w1, g1, b1, w2, g2, b2)


@jax.jit
def residual_block_forward_nhwc(x_nhwc, params):
    """Hot-path API: NHWC in/out, no layout round-trips through HBM.
    No aliasing here: we must not silently donate the caller's input array."""
    return _residual_block_call(x_nhwc.astype(jnp.float32), params,
                                donate_input=False)


@jax.jit
def residual_block_forward(x_nchw, params):
    """PyTorch-layout convenience wrapper: (N, C, H, W) f32 -> (N, C, H, W) f32.
    Prefer residual_block_forward_nhwc inside a network (one layout change per
    net, not per block)."""
    x = jnp.transpose(x_nchw, (0, 2, 3, 1)).astype(jnp.float32)   # fresh NHWC buffer
    out = _residual_block_call(x, params, donate_input=True)      # alias is safe here
    return jnp.transpose(out, (0, 3, 1, 2))


def init_params(key, dim):
    """Synthetic parameters. Conv weights stored bf16 in im2col layout
    (9*Cin, Cout), rows ordered (ky, kx, cin) to match the kernel's tap order."""
    ks = jax.random.split(key, 6)

    def conv_w(k):
        # PyTorch Conv2d weight (Cout, Cin, 3, 3) -> (3, 3, Cin, Cout) -> (9*Cin, Cout)
        w_oihw = 0.1 * jax.random.normal(k, (dim, dim, 3, 3), jnp.float32)
        w = jnp.transpose(w_oihw, (2, 3, 1, 0)).reshape(9 * dim, dim)
        return w.astype(jnp.bfloat16)             # halves weight DMA, MXU-native

    w1 = conv_w(ks[0])
    g1 = 1.0 + 0.1 * jax.random.normal(ks[1], (1, dim), jnp.float32)
    b1 = 0.1 * jax.random.normal(ks[2], (1, dim), jnp.float32)
    w2 = conv_w(ks[3])
    g2 = 1.0 + 0.1 * jax.random.normal(ks[4], (1, dim), jnp.float32)
    b2 = 0.1 * jax.random.normal(ks[5], (1, dim), jnp.float32)
    return (w1, g1, b1, w2, g2, b2)


def reference_forward(x_nchw, params):
    """Pure-JAX (XLA conv, full f32) reference for correctness checking."""
    w1, g1, b1, w2, g2, b2 = params
    x = jnp.transpose(x_nchw, (0, 2, 3, 1)).astype(jnp.float32)
    C = x.shape[-1]

    def conv(a, w):
        return jax.lax.conv_general_dilated(
            a, w.astype(jnp.float32).reshape(3, 3, C, C), (1, 1), 'SAME',
            dimension_numbers=('NHWC', 'HWIO', 'NHWC'))

    def inorm(a, g, b):
        m = jnp.mean(a, axis=(1, 2), keepdims=True)
        v = jnp.mean((a - m) ** 2, axis=(1, 2), keepdims=True)
        return (a - m) * jax.lax.rsqrt(v + EPS) * g.reshape(1, 1, 1, -1) \
               + b.reshape(1, 1, 1, -1)

    h = jnp.maximum(inorm(conv(x, w1), g1, b1), 0.0)
    o = x + inorm(conv(h, w2), g2, b2)
    return jnp.transpose(o, (0, 3, 1, 2))


if __name__ == "__main__":
    key = jax.random.PRNGKey(0)
    k_x, k_p = jax.random.split(key)

    N, C, H, W = 2, 4, 16, 16            # dim_in = dim_out = 4
    x = jax.random.normal(k_x, (N, C, H, W), jnp.float32)
    params = init_params(k_p, C)

    out = jax.block_until_ready(residual_block_forward(x, params))
    ref = jax.block_until_ready(reference_forward(x, params))

    assert out.shape == (N, C, H, W) and out.dtype == jnp.float32
    err = float(jnp.max(jnp.abs(out - ref)))
    # bf16 MXU operands (f32 accumulation) -> bf16-appropriate tolerance.
    assert jnp.allclose(out, ref, atol=3e-2, rtol=3e-2), err

    # NHWC hot path (no transposes, no aliasing) must agree too.
    out_nhwc = jax.block_until_ready(
        residual_block_forward_nhwc(jnp.transpose(x, (0, 2, 3, 1)), params))
    assert jnp.allclose(out_nhwc, jnp.transpose(ref, (0, 2, 3, 1)),
                        atol=3e-2, rtol=3e-2)

    print("KERNEL_OK")
</pallas_src>

<mosaic_0001>
module attributes {stable_mosaic.version = 11 : i64} {
  func.func @residual_block_kernel(%arg0: i32, %arg1: memref<1x16x16x4xf32, #tpu.memory_space<vmem>>, %arg2: memref<36x4xbf16, #tpu.memory_space<vmem>>, %arg3: memref<1x4xf32, #tpu.memory_space<vmem>>, %arg4: memref<1x4xf32, #tpu.memory_space<vmem>>, %arg5: memref<36x4xbf16, #tpu.memory_space<vmem>>, %arg6: memref<1x4xf32, #tpu.memory_space<vmem>>, %arg7: memref<1x4xf32, #tpu.memory_space<vmem>>, %arg8: memref<1x16x16x4xf32, #tpu.memory_space<vmem>>) attributes {dimension_semantics = [#tpu.dimension_semantics<parallel>], iteration_bounds = array<i64: 2>, scalar_prefetch = 0 : i64, scratch_operands = 0 : i64, tpu.core_type = #tpu.core_type<tc>, window_params = [{transform_indices = @transform_0, window_bounds = array<i64: 1, 16, 16, 4>}, {pipeline_mode = #tpu.pipeline_mode<synchronous>, transform_indices = @transform_1, window_bounds = array<i64: 36, 4>}, {pipeline_mode = #tpu.pipeline_mode<synchronous>, transform_indices = @transform_2, window_bounds = array<i64: 1, 4>}, {pipeline_mode = #tpu.pipeline_mode<synchronous>, transform_indices = @transform_3, window_bounds = array<i64: 1, 4>}, {pipeline_mode = #tpu.pipeline_mode<synchronous>, transform_indices = @transform_4, window_bounds = array<i64: 36, 4>}, {pipeline_mode = #tpu.pipeline_mode<synchronous>, transform_indices = @transform_5, window_bounds = array<i64: 1, 4>}, {pipeline_mode = #tpu.pipeline_mode<synchronous>, transform_indices = @transform_6, window_bounds = array<i64: 1, 4>}, {transform_indices = @transform_7, window_bounds = array<i64: 1, 16, 16, 4>}]} {
    %c0 = arith.constant 0 : index
    %c0_0 = arith.constant 0 : index
    %c0_1 = arith.constant 0 : index
    %c0_2 = arith.constant 0 : index
    %0 = vector.load %arg1[%c0, %c0_0, %c0_1, %c0_2] : memref<1x16x16x4xf32, #tpu.memory_space<vmem>>, vector<1x16x16x4xf32>
    %1 = vector.shape_cast %0 : vector<1x16x16x4xf32> to vector<16x16x4xf32>
    %2 = tpu.iota {dimensions = array<i32: 1>} : vector<1x16x1xi32>
    %c0_i32 = arith.constant 0 : i32
    %3 = vector.broadcast %c0_i32 : i32 to vector<1x16x1xi32>
    %4 = arith.cmpi eq, %2, %3 : vector<1x16x1xi32>
    %c15_i32 = arith.constant 15 : i32
    %5 = vector.broadcast %c15_i32 : i32 to vector<1x16x1xi32>
    %6 = arith.cmpi eq, %2, %5 : vector<1x16x1xi32>
    %cst = arith.constant 0.000000e+00 : f32
    %7 = vector.broadcast %cst : f32 to vector<1x16x4xf32>
    %8 = tpu.concatenate %7, %1, %7 in 0 : vector<1x16x4xf32>, vector<16x16x4xf32>, vector<1x16x4xf32> -> vector<18x16x4xf32>
    %c1_i32 = arith.constant 1 : i32
    %9 = tpu.dynamic_rotate %8 by %c1_i32 dim 1 : vector<18x16x4xf32>, i32 -> vector<18x16x4xf32>
    %cst_3 = arith.constant 0.000000e+00 : f32
    %10 = vector.shape_cast %4 : vector<1x16x1xi1> to vector<1x16x1xi1>
    %11 = vector.broadcast %10 : vector<1x16x1xi1> to vector<18x16x4xi1>
    %12 = vector.broadcast %cst_3 : f32 to vector<18x16x4xf32>
    %13 = arith.select %11, %12, %9 : vector<18x16x4xi1>, vector<18x16x4xf32>
    %c15_i32_4 = arith.constant 15 : i32
    %14 = tpu.dynamic_rotate %8 by %c15_i32_4 dim 1 : vector<18x16x4xf32>, i32 -> vector<18x16x4xf32>
    %cst_5 = arith.constant 0.000000e+00 : f32
    %15 = vector.shape_cast %6 : vector<1x16x1xi1> to vector<1x16x1xi1>
    %16 = vector.broadcast %15 : vector<1x16x1xi1> to vector<18x16x4xi1>
    %17 = vector.broadcast %cst_5 : f32 to vector<18x16x4xf32>
    %18 = arith.select %16, %17, %14 : vector<18x16x4xi1>, vector<18x16x4xf32>
    %19 = arith.truncf %8 : vector<18x16x4xf32> to vector<18x16x4xbf16>
    %20 = arith.truncf %13 : vector<18x16x4xf32> to vector<18x16x4xbf16>
    %21 = arith.truncf %18 : vector<18x16x4xf32> to vector<18x16x4xbf16>
    %22 = vector.extract_strided_slice %20 {offsets = [0, 0, 0], sizes = [16, 16, 4], strides = [1, 1, 1]} : vector<18x16x4xbf16> to vector<16x16x4xbf16>
    %23 = vector.extract_strided_slice %19 {offsets = [0, 0, 0], sizes = [16, 16, 4], strides = [1, 1, 1]} : vector<18x16x4xbf16> to vector<16x16x4xbf16>
    %24 = vector.extract_strided_slice %21 {offsets = [0, 0, 0], sizes = [16, 16, 4], strides = [1, 1, 1]} : vector<18x16x4xbf16> to vector<16x16x4xbf16>
    %25 = vector.extract_strided_slice %20 {offsets = [1, 0, 0], sizes = [16, 16, 4], strides = [1, 1, 1]} : vector<18x16x4xbf16> to vector<16x16x4xbf16>
    %26 = vector.extract_strided_slice %19 {offsets = [1, 0, 0], sizes = [16, 16, 4], strides = [1, 1, 1]} : vector<18x16x4xbf16> to vector<16x16x4xbf16>
    %27 = vector.extract_strided_slice %21 {offsets = [1, 0, 0], sizes = [16, 16, 4], strides = [1, 1, 1]} : vector<18x16x4xbf16> to vector<16x16x4xbf16>
    %28 = vector.extract_strided_slice %20 {offsets = [2, 0, 0], sizes = [16, 16, 4], strides = [1, 1, 1]} : vector<18x16x4xbf16> to vector<16x16x4xbf16>
    %29 = vector.extract_strided_slice %19 {offsets = [2, 0, 0], sizes = [16, 16, 4], strides = [1, 1, 1]} : vector<18x16x4xbf16> to vector<16x16x4xbf16>
    %30 = vector.extract_strided_slice %21 {offsets = [2, 0, 0], sizes = [16, 16, 4], strides = [1, 1, 1]} : vector<18x16x4xbf16> to vector<16x16x4xbf16>
    %c0_6 = arith.constant 0 : index
    %c0_7 = arith.constant 0 : index
    %31 = vector.load %arg2[%c0_6, %c0_7] : memref<36x4xbf16, #tpu.memory_space<vmem>>, vector<36x4xbf16>
    %32 = vector.shape_cast %22 : vector<16x16x4xbf16> to vector<256x4xbf16>
    %33 = vector.extract_strided_slice %31 {offsets = [0, 0], sizes = [4, 4], strides = [1, 1]} : vector<36x4xbf16> to vector<4x4xbf16>
    %cst_8 = arith.constant dense<0.000000e+00> : vector<256x4xf32>
    %34 = tpu.matmul %32, %33, %cst_8 {dimension_numbers = #tpu.dot_dimension_numbers<[1], [0], [0], [1], [0, 0, 1, 1], [], []>} : vector<256x4xbf16>, vector<4x4xbf16>, vector<256x4xf32> -> vector<256x4xf32>
    %35 = vector.shape_cast %23 : vector<16x16x4xbf16> to vector<256x4xbf16>
    %36 = vector.extract_strided_slice %31 {offsets = [4, 0], sizes = [4, 4], strides = [1, 1]} : vector<36x4xbf16> to vector<4x4xbf16>
    %cst_9 = arith.constant dense<0.000000e+00> : vector<256x4xf32>
    %37 = tpu.matmul %35, %36, %cst_9 {dimension_numbers = #tpu.dot_dimension_numbers<[1], [0], [0], [1], [0, 0, 1, 1], [], []>} : vector<256x4xbf16>, vector<4x4xbf16>, vector<256x4xf32> -> vector<256x4xf32>
    %38 = arith.addf %34, %37 : vector<256x4xf32>
    %39 = vector.shape_cast %24 : vector<16x16x4xbf16> to vector<256x4xbf16>
    %40 = vector.extract_strided_slice %31 {offsets = [8, 0], sizes = [4, 4], strides = [1, 1]} : vector<36x4xbf16> to vector<4x4xbf16>
    %cst_10 = arith.constant dense<0.000000e+00> : vector<256x4xf32>
    %41 = tpu.matmul %39, %40, %cst_10 {dimension_numbers = #tpu.dot_dimension_numbers<[1], [0], [0], [1], [0, 0, 1, 1], [], []>} : vector<256x4xbf16>, vector<4x4xbf16>, vector<256x4xf32> -> vector<256x4xf32>
    %42 = arith.addf %38, %41 : vector<256x4xf32>
    %43 = vector.shape_cast %25 : vector<16x16x4xbf16> to vector<256x4xbf16>
    %44 = vector.extract_strided_slice %31 {offsets = [12, 0], sizes = [4, 4], strides = [1, 1]} : vector<36x4xbf16> to vector<4x4xbf16>
    %cst_11 = arith.constant dense<0.000000e+00> : vector<256x4xf32>
    %45 = tpu.matmul %43, %44, %cst_11 {dimension_numbers = #tpu.dot_dimension_numbers<[1], [0], [0], [1], [0, 0, 1, 1], [], []>} : vector<256x4xbf16>, vector<4x4xbf16>, vector<256x4xf32> -> vector<256x4xf32>
    %46 = arith.addf %42, %45 : vector<256x4xf32>
    %47 = vector.shape_cast %26 : vector<16x16x4xbf16> to vector<256x4xbf16>
    %48 = vector.extract_strided_slice %31 {offsets = [16, 0], sizes = [4, 4], strides = [1, 1]} : vector<36x4xbf16> to vector<4x4xbf16>
    %cst_12 = arith.constant dense<0.000000e+00> : vector<256x4xf32>
    %49 = tpu.matmul %47, %48, %cst_12 {dimension_numbers = #tpu.dot_dimension_numbers<[1], [0], [0], [1], [0, 0, 1, 1], [], []>} : vector<256x4xbf16>, vector<4x4xbf16>, vector<256x4xf32> -> vector<256x4xf32>
    %50 = arith.addf %46, %49 : vector<256x4xf32>
    %51 = vector.shape_cast %27 : vector<16x16x4xbf16> to vector<256x4xbf16>
    %52 = vector.extract_strided_slice %31 {offsets = [20, 0], sizes = [4, 4], strides = [1, 1]} : vector<36x4xbf16> to vector<4x4xbf16>
    %cst_13 = arith.constant dense<0.000000e+00> : vector<256x4xf32>
    %53 = tpu.matmul %51, %52, %cst_13 {dimension_numbers = #tpu.dot_dimension_numbers<[1], [0], [0], [1], [0, 0, 1, 1], [], []>} : vector<256x4xbf16>, vector<4x4xbf16>, vector<256x4xf32> -> vector<256x4xf32>
    %54 = arith.addf %50, %53 : vector<256x4xf32>
    %55 = vector.shape_cast %28 : vector<16x16x4xbf16> to vector<256x4xbf16>
    %56 = vector.extract_strided_slice %31 {offsets = [24, 0], sizes = [4, 4], strides = [1, 1]} : vector<36x4xbf16> to vector<4x4xbf16>
    %cst_14 = arith.constant dense<0.000000e+00> : vector<256x4xf32>
    %57 = tpu.matmul %55, %56, %cst_14 {dimension_numbers = #tpu.dot_dimension_numbers<[1], [0], [0], [1], [0, 0, 1, 1], [], []>} : vector<256x4xbf16>, vector<4x4xbf16>, vector<256x4xf32> -> vector<256x4xf32>
    %58 = arith.addf %54, %57 : vector<256x4xf32>
    %59 = vector.shape_cast %29 : vector<16x16x4xbf16> to vector<256x4xbf16>
    %60 = vector.extract_strided_slice %31 {offsets = [28, 0], sizes = [4, 4], strides = [1, 1]} : vector<36x4xbf16> to vector<4x4xbf16>
    %cst_15 = arith.constant dense<0.000000e+00> : vector<256x4xf32>
    %61 = tpu.matmul %59, %60, %cst_15 {dimension_numbers = #tpu.dot_dimension_numbers<[1], [0], [0], [1], [0, 0, 1, 1], [], []>} : vector<256x4xbf16>, vector<4x4xbf16>, vector<256x4xf32> -> vector<256x4xf32>
    %62 = arith.addf %58, %61 : vector<256x4xf32>
    %63 = vector.shape_cast %30 : vector<16x16x4xbf16> to vector<256x4xbf16>
    %64 = vector.extract_strided_slice %31 {offsets = [32, 0], sizes = [4, 4], strides = [1, 1]} : vector<36x4xbf16> to vector<4x4xbf16>
    %cst_16 = arith.constant dense<0.000000e+00> : vector<256x4xf32>
    %65 = tpu.matmul %63, %64, %cst_16 {dimension_numbers = #tpu.dot_dimension_numbers<[1], [0], [0], [1], [0, 0, 1, 1], [], []>} : vector<256x4xbf16>, vector<4x4xbf16>, vector<256x4xf32> -> vector<256x4xf32>
    %66 = arith.addf %62, %65 : vector<256x4xf32>
    %c0_17 = arith.constant 0 : index
    %c0_18 = arith.constant 0 : index
    %67 = vector.load %arg3[%c0_17, %c0_18] : memref<1x4xf32, #tpu.memory_space<vmem>>, vector<1x4xf32>
    %c0_19 = arith.constant 0 : index
    %c0_20 = arith.constant 0 : index
    %68 = vector.load %arg4[%c0_19, %c0_20] : memref<1x4xf32, #tpu.memory_space<vmem>>, vector<1x4xf32>
    %cst_21 = arith.constant dense<0.000000e+00> : vector<4xf32>
    %69 = vector.multi_reduction <add>, %66, %cst_21 [0] : vector<256x4xf32> to vector<4xf32>
    %70 = vector.shape_cast %69 : vector<4xf32> to vector<1x4xf32>
    %cst_22 = arith.constant 3.906250e-03 : f32
    %71 = vector.broadcast %cst_22 : f32 to vector<1x4xf32>
    %72 = arith.mulf %70, %71 : vector<1x4xf32>
    %73 = arith.mulf %66, %66 : vector<256x4xf32>
    %cst_23 = arith.constant dense<0.000000e+00> : vector<4xf32>
    %74 = vector.multi_reduction <add>, %73, %cst_23 [0] : vector<256x4xf32> to vector<4xf32>
    %75 = vector.shape_cast %74 : vector<4xf32> to vector<1x4xf32>
    %cst_24 = arith.constant 3.906250e-03 : f32
    %76 = vector.broadcast %cst_24 : f32 to vector<1x4xf32>
    %77 = arith.mulf %75, %76 : vector<1x4xf32>
    %78 = arith.mulf %72, %72 : vector<1x4xf32>
    %79 = arith.subf %77, %78 : vector<1x4xf32>
    %cst_25 = arith.constant 0.000000e+00 : f32
    %80 = vector.broadcast %cst_25 : f32 to vector<1x4xf32>
    %81 = arith.maximumf %79, %80 : vector<1x4xf32>
    %cst_26 = arith.constant 9.99999974E-6 : f32
    %82 = vector.broadcast %cst_26 : f32 to vector<1x4xf32>
    %83 = arith.addf %81, %82 : vector<1x4xf32>
    %84 = math.rsqrt %83 : vector<1x4xf32>
    %85 = arith.mulf %67, %84 : vector<1x4xf32>
    %86 = arith.mulf %72, %85 : vector<1x4xf32>
    %87 = arith.subf %68, %86 : vector<1x4xf32>
    %88 = vector.broadcast %85 : vector<1x4xf32> to vector<256x4xf32>
    %89 = arith.mulf %66, %88 : vector<256x4xf32>
    %90 = vector.broadcast %87 : vector<1x4xf32> to vector<256x4xf32>
    %91 = arith.addf %89, %90 : vector<256x4xf32>
    %cst_27 = arith.constant 0.000000e+00 : f32
    %92 = vector.broadcast %cst_27 : f32 to vector<256x4xf32>
    %93 = arith.maximumf %91, %92 : vector<256x4xf32>
    %94 = vector.shape_cast %93 : vector<256x4xf32> to vector<16x16x4xf32>
    %cst_28 = arith.constant 0.000000e+00 : f32
    %95 = vector.broadcast %cst_28 : f32 to vector<1x16x4xf32>
    %96 = tpu.concatenate %95, %94, %95 in 0 : vector<1x16x4xf32>, vector<16x16x4xf32>, vector<1x16x4xf32> -> vector<18x16x4xf32>
    %c1_i32_29 = arith.constant 1 : i32
    %97 = tpu.dynamic_rotate %96 by %c1_i32_29 dim 1 : vector<18x16x4xf32>, i32 -> vector<18x16x4xf32>
    %cst_30 = arith.constant 0.000000e+00 : f32
    %98 = vector.shape_cast %4 : vector<1x16x1xi1> to vector<1x16x1xi1>
    %99 = vector.broadcast %98 : vector<1x16x1xi1> to vector<18x16x4xi1>
    %100 = vector.broadcast %cst_30 : f32 to vector<18x16x4xf32>
    %101 = arith.select %99, %100, %97 : vector<18x16x4xi1>, vector<18x16x4xf32>
    %c15_i32_31 = arith.constant 15 : i32
    %102 = tpu.dynamic_rotate %96 by %c15_i32_31 dim 1 : vector<18x16x4xf32>, i32 -> vector<18x16x4xf32>
    %cst_32 = arith.constant 0.000000e+00 : f32
    %103 = vector.shape_cast %6 : vector<1x16x1xi1> to vector<1x16x1xi1>
    %104 = vector.broadcast %103 : vector<1x16x1xi1> to vector<18x16x4xi1>
    %105 = vector.broadcast %cst_32 : f32 to vector<18x16x4xf32>
    %106 = arith.select %104, %105, %102 : vector<18x16x4xi1>, vector<18x16x4xf32>
    %107 = arith.truncf %96 : vector<18x16x4xf32> to vector<18x16x4xbf16>
    %108 = arith.truncf %101 : vector<18x16x4xf32> to vector<18x16x4xbf16>
    %109 = arith.truncf %106 : vector<18x16x4xf32> to vector<18x16x4xbf16>
    %110 = vector.extract_strided_slice %108 {offsets = [0, 0, 0], sizes = [16, 16, 4], strides = [1, 1, 1]} : vector<18x16x4xbf16> to vector<16x16x4xbf16>
    %111 = vector.extract_strided_slice %107 {offsets = [0, 0, 0], sizes = [16, 16, 4], strides = [1, 1, 1]} : vector<18x16x4xbf16> to vector<16x16x4xbf16>
    %112 = vector.extract_strided_slice %109 {offsets = [0, 0, 0], sizes = [16, 16, 4], strides = [1, 1, 1]} : vector<18x16x4xbf16> to vector<16x16x4xbf16>
    %113 = vector.extract_strided_slice %108 {offsets = [1, 0, 0], sizes = [16, 16, 4], strides = [1, 1, 1]} : vector<18x16x4xbf16> to vector<16x16x4xbf16>
    %114 = vector.extract_strided_slice %107 {offsets = [1, 0, 0], sizes = [16, 16, 4], strides = [1, 1, 1]} : vector<18x16x4xbf16> to vector<16x16x4xbf16>
    %115 = vector.extract_strided_slice %109 {offsets = [1, 0, 0], sizes = [16, 16, 4], strides = [1, 1, 1]} : vector<18x16x4xbf16> to vector<16x16x4xbf16>
    %116 = vector.extract_strided_slice %108 {offsets = [2, 0, 0], sizes = [16, 16, 4], strides = [1, 1, 1]} : vector<18x16x4xbf16> to vector<16x16x4xbf16>
    %117 = vector.extract_strided_slice %107 {offsets = [2, 0, 0], sizes = [16, 16, 4], strides = [1, 1, 1]} : vector<18x16x4xbf16> to vector<16x16x4xbf16>
    %118 = vector.extract_strided_slice %109 {offsets = [2, 0, 0], sizes = [16, 16, 4], strides = [1, 1, 1]} : vector<18x16x4xbf16> to vector<16x16x4xbf16>
    %c0_33 = arith.constant 0 : index
    %c0_34 = arith.constant 0 : index
    %119 = vector.load %arg5[%c0_33, %c0_34] : memref<36x4xbf16, #tpu.memory_space<vmem>>, vector<36x4xbf16>
    %120 = vector.shape_cast %110 : vector<16x16x4xbf16> to vector<256x4xbf16>
    %121 = vector.extract_strided_slice %119 {offsets = [0, 0], sizes = [4, 4], strides = [1, 1]} : vector<36x4xbf16> to vector<4x4xbf16>
    %cst_35 = arith.constant dense<0.000000e+00> : vector<256x4xf32>
    %122 = tpu.matmul %120, %121, %cst_35 {dimension_numbers = #tpu.dot_dimension_numbers<[1], [0], [0], [1], [0, 0, 1, 1], [], []>} : vector<256x4xbf16>, vector<4x4xbf16>, vector<256x4xf32> -> vector<256x4xf32>
    %123 = vector.shape_cast %111 : vector<16x16x4xbf16> to vector<256x4xbf16>
    %124 = vector.extract_strided_slice %119 {offsets = [4, 0], sizes = [4, 4], strides = [1, 1]} : vector<36x4xbf16> to vector<4x4xbf16>
    %cst_36 = arith.constant dense<0.000000e+00> : vector<256x4xf32>
    %125 = tpu.matmul %123, %124, %cst_36 {dimension_numbers = #tpu.dot_dimension_numbers<[1], [0], [0], [1], [0, 0, 1, 1], [], []>} : vector<256x4xbf16>, vector<4x4xbf16>, vector<256x4xf32> -> vector<256x4xf32>
    %126 = arith.addf %122, %125 : vector<256x4xf32>
    %127 = vector.shape_cast %112 : vector<16x16x4xbf16> to vector<256x4xbf16>
    %128 = vector.extract_strided_slice %119 {offsets = [8, 0], sizes = [4, 4], strides = [1, 1]} : vector<36x4xbf16> to vector<4x4xbf16>
    %cst_37 = arith.constant dense<0.000000e+00> : vector<256x4xf32>
    %129 = tpu.matmul %127, %128, %cst_37 {dimension_numbers = #tpu.dot_dimension_numbers<[1], [0], [0], [1], [0, 0, 1, 1], [], []>} : vector<256x4xbf16>, vector<4x4xbf16>, vector<256x4xf32> -> vector<256x4xf32>
    %130 = arith.addf %126, %129 : vector<256x4xf32>
    %131 = vector.shape_cast %113 : vector<16x16x4xbf16> to vector<256x4xbf16>
    %132 = vector.extract_strided_slice %119 {offsets = [12, 0], sizes = [4, 4], strides = [1, 1]} : vector<36x4xbf16> to vector<4x4xbf16>
    %cst_38 = arith.constant dense<0.000000e+00> : vector<256x4xf32>
    %133 = tpu.matmul %131, %132, %cst_38 {dimension_numbers = #tpu.dot_dimension_numbers<[1], [0], [0], [1], [0, 0, 1, 1], [], []>} : vector<256x4xbf16>, vector<4x4xbf16>, vector<256x4xf32> -> vector<256x4xf32>
    %134 = arith.addf %130, %133 : vector<256x4xf32>
    %135 = vector.shape_cast %114 : vector<16x16x4xbf16> to vector<256x4xbf16>
    %136 = vector.extract_strided_slice %119 {offsets = [16, 0], sizes = [4, 4], strides = [1, 1]} : vector<36x4xbf16> to vector<4x4xbf16>
    %cst_39 = arith.constant dense<0.000000e+00> : vector<256x4xf32>
    %137 = tpu.matmul %135, %136, %cst_39 {dimension_numbers = #tpu.dot_dimension_numbers<[1], [0], [0], [1], [0, 0, 1, 1], [], []>} : vector<256x4xbf16>, vector<4x4xbf16>, vector<256x4xf32> -> vector<256x4xf32>
    %138 = arith.addf %134, %137 : vector<256x4xf32>
    %139 = vector.shape_cast %115 : vector<16x16x4xbf16> to vector<256x4xbf16>
    %140 = vector.extract_strided_slice %119 {offsets = [20, 0], sizes = [4, 4], strides = [1, 1]} : vector<36x4xbf16> to vector<4x4xbf16>
    %cst_40 = arith.constant dense<0.000000e+00> : vector<256x4xf32>
    %141 = tpu.matmul %139, %140, %cst_40 {dimension_numbers = #tpu.dot_dimension_numbers<[1], [0], [0], [1], [0, 0, 1, 1], [], []>} : vector<256x4xbf16>, vector<4x4xbf16>, vector<256x4xf32> -> vector<256x4xf32>
    %142 = arith.addf %138, %141 : vector<256x4xf32>
    %143 = vector.shape_cast %116 : vector<16x16x4xbf16> to vector<256x4xbf16>
    %144 = vector.extract_strided_slice %119 {offsets = [24, 0], sizes = [4, 4], strides = [1, 1]} : vector<36x4xbf16> to vector<4x4xbf16>
    %cst_41 = arith.constant dense<0.000000e+00> : vector<256x4xf32>
    %145 = tpu.matmul %143, %144, %cst_41 {dimension_numbers = #tpu.dot_dimension_numbers<[1], [0], [0], [1], [0, 0, 1, 1], [], []>} : vector<256x4xbf16>, vector<4x4xbf16>, vector<256x4xf32> -> vector<256x4xf32>
    %146 = arith.addf %142, %145 : vector<256x4xf32>
    %147 = vector.shape_cast %117 : vector<16x16x4xbf16> to vector<256x4xbf16>
    %148 = vector.extract_strided_slice %119 {offsets = [28, 0], sizes = [4, 4], strides = [1, 1]} : vector<36x4xbf16> to vector<4x4xbf16>
    %cst_42 = arith.constant dense<0.000000e+00> : vector<256x4xf32>
    %149 = tpu.matmul %147, %148, %cst_42 {dimension_numbers = #tpu.dot_dimension_numbers<[1], [0], [0], [1], [0, 0, 1, 1], [], []>} : vector<256x4xbf16>, vector<4x4xbf16>, vector<256x4xf32> -> vector<256x4xf32>
    %150 = arith.addf %146, %149 : vector<256x4xf32>
    %151 = vector.shape_cast %118 : vector<16x16x4xbf16> to vector<256x4xbf16>
    %152 = vector.extract_strided_slice %119 {offsets = [32, 0], sizes = [4, 4], strides = [1, 1]} : vector<36x4xbf16> to vector<4x4xbf16>
    %cst_43 = arith.constant dense<0.000000e+00> : vector<256x4xf32>
    %153 = tpu.matmul %151, %152, %cst_43 {dimension_numbers = #tpu.dot_dimension_numbers<[1], [0], [0], [1], [0, 0, 1, 1], [], []>} : vector<256x4xbf16>, vector<4x4xbf16>, vector<256x4xf32> -> vector<256x4xf32>
    %154 = arith.addf %150, %153 : vector<256x4xf32>
    %c0_44 = arith.constant 0 : index
    %c0_45 = arith.constant 0 : index
    %155 = vector.load %arg6[%c0_44, %c0_45] : memref<1x4xf32, #tpu.memory_space<vmem>>, vector<1x4xf32>
    %c0_46 = arith.constant 0 : index
    %c0_47 = arith.constant 0 : index
    %156 = vector.load %arg7[%c0_46, %c0_47] : memref<1x4xf32, #tpu.memory_space<vmem>>, vector<1x4xf32>
    %cst_48 = arith.constant dense<0.000000e+00> : vector<4xf32>
    %157 = vector.multi_reduction <add>, %154, %cst_48 [0] : vector<256x4xf32> to vector<4xf32>
    %158 = vector.shape_cast %157 : vector<4xf32> to vector<1x4xf32>
    %cst_49 = arith.constant 3.906250e-03 : f32
    %159 = vector.broadcast %cst_49 : f32 to vector<1x4xf32>
    %160 = arith.mulf %158, %159 : vector<1x4xf32>
    %161 = arith.mulf %154, %154 : vector<256x4xf32>
    %cst_50 = arith.constant dense<0.000000e+00> : vector<4xf32>
    %162 = vector.multi_reduction <add>, %161, %cst_50 [0] : vector<256x4xf32> to vector<4xf32>
    %163 = vector.shape_cast %162 : vector<4xf32> to vector<1x4xf32>
    %cst_51 = arith.constant 3.906250e-03 : f32
    %164 = vector.broadcast %cst_51 : f32 to vector<1x4xf32>
    %165 = arith.mulf %163, %164 : vector<1x4xf32>
    %166 = arith.mulf %160, %160 : vector<1x4xf32>
    %167 = arith.subf %165, %166 : vector<1x4xf32>
    %cst_52 = arith.constant 0.000000e+00 : f32
    %168 = vector.broadcast %cst_52 : f32 to vector<1x4xf32>
    %169 = arith.maximumf %167, %168 : vector<1x4xf32>
    %cst_53 = arith.constant 9.99999974E-6 : f32
    %170 = vector.broadcast %cst_53 : f32 to vector<1x4xf32>
    %171 = arith.addf %169, %170 : vector<1x4xf32>
    %172 = math.rsqrt %171 : vector<1x4xf32>
    %173 = arith.mulf %155, %172 : vector<1x4xf32>
    %174 = arith.mulf %160, %173 : vector<1x4xf32>
    %175 = arith.subf %156, %174 : vector<1x4xf32>
    %176 = vector.broadcast %173 : vector<1x4xf32> to vector<256x4xf32>
    %177 = arith.mulf %154, %176 : vector<256x4xf32>
    %178 = vector.broadcast %175 : vector<1x4xf32> to vector<256x4xf32>
    %179 = arith.addf %177, %178 : vector<256x4xf32>
    %180 = vector.shape_cast %1 : vector<16x16x4xf32> to vector<256x4xf32>
    %181 = arith.addf %180, %179 : vector<256x4xf32>
    %182 = vector.shape_cast %181 : vector<256x4xf32> to vector<16x16x4xf32>
    %c0_54 = arith.constant 0 : index
    %c0_55 = arith.constant 0 : index
    %c0_56 = arith.constant 0 : index
    %c0_57 = arith.constant 0 : index
    %183 = vector.load %arg8[%c0_54, %c0_55, %c0_56, %c0_57] : memref<1x16x16x4xf32, #tpu.memory_space<vmem>>, vector<1x16x16x4xf32>
    %184 = vector.shape_cast %183 : vector<1x16x16x4xf32> to vector<16x16x4xf32>
    %185 = vector.shape_cast %182 : vector<16x16x4xf32> to vector<1x16x16x4xf32>
    tpu.vector_store %arg8[%c0_54, %c0_55, %c0_56, %c0_57], %185 {strides = array<i32>} : memref<1x16x16x4xf32, #tpu.memory_space<vmem>>, vector<1x16x16x4xf32>,
    return
  }
  func.func @transform_0(%arg0: i32) -> (i32, i32, i32, i32) {
    %c0_i32 = arith.constant 0 : i32
    %c0_i32_0 = arith.constant 0 : i32
    %c0_i32_1 = arith.constant 0 : i32
    %c0_i32_2 = arith.constant 0 : i32
    return %arg0, %c0_i32, %c0_i32_0, %c0_i32_1 : i32, i32, i32, i32
  }
  func.func @transform_1(%arg0: i32) -> (i32, i32) {
    %c0_i32 = arith.constant 0 : i32
    %c0_i32_0 = arith.constant 0 : i32
    %c0_i32_1 = arith.constant 0 : i32
    return %c0_i32, %c0_i32_0 : i32, i32
  }
  func.func @transform_2(%arg0: i32) -> (i32, i32) {
    %c0_i32 = arith.constant 0 : i32
    %c0_i32_0 = arith.constant 0 : i32
    %c0_i32_1 = arith.constant 0 : i32
    return %c0_i32, %c0_i32_0 : i32, i32
  }
  func.func @transform_3(%arg0: i32) -> (i32, i32) {
    %c0_i32 = arith.constant 0 : i32
    %c0_i32_0 = arith.constant 0 : i32
    %c0_i32_1 = arith.constant 0 : i32
    return %c0_i32, %c0_i32_0 : i32, i32
  }
  func.func @transform_4(%arg0: i32) -> (i32, i32) {
    %c0_i32 = arith.constant 0 : i32
    %c0_i32_0 = arith.constant 0 : i32
    %c0_i32_1 = arith.constant 0 : i32
    return %c0_i32, %c0_i32_0 : i32, i32
  }
  func.func @transform_5(%arg0: i32) -> (i32, i32) {
    %c0_i32 = arith.constant 0 : i32
    %c0_i32_0 = arith.constant 0 : i32
    %c0_i32_1 = arith.constant 0 : i32
    return %c0_i32, %c0_i32_0 : i32, i32
  }
  func.func @transform_6(%arg0: i32) -> (i32, i32) {
    %c0_i32 = arith.constant 0 : i32
    %c0_i32_0 = arith.constant 0 : i32
    %c0_i32_1 = arith.constant 0 : i32
    return %c0_i32, %c0_i32_0 : i32, i32
  }
  func.func @transform_7(%arg0: i32) -> (i32, i32, i32, i32) {
    %c0_i32 = arith.constant 0 : i32
    %c0_i32_0 = arith.constant 0 : i32
    %c0_i32_1 = arith.constant 0 : i32
    %c0_i32_2 = arith.constant 0 : i32
    return %arg0, %c0_i32, %c0_i32_0, %c0_i32_1 : i32, i32, i32, i32
  }
}

</mosaic_0001>

<bundles_post_ra>
// kernel: residual_block_forward.1
= control target key start
LH: loop header
LB: loop body
LE: loop exit
PB: predicated region body
PF: predicated region fallthrough
CT: control target
= control target key end

     0   :  { %s4895_s24 = smov 0   ;;  %s7936_s0 = inlined_call_operand.vmem [shape: f32[2,16,16,4], index: 0, kind: input, shape index: {}, may-alias: {0,7}]   ;;  %s7937_s1 = inlined_call_operand.vmem [shape: bf16[36,4], index: 1, kind: input, shape index: {}]   ;;  %s7938_s2 = inlined_call_operand.vmem [shape: f32[1,4], index: 2, kind: input, shape index: {}]   ;;  %s7939_s3 = inlined_call_operand.vmem [shape: f32[1,4], index: 3, kind: input, shape index: {}]   ;;  %s7940_s4 = inlined_call_operand.vmem [shape: bf16[36,4], index: 4, kind: input, shape index: {}]   ;;  %s7941_s5 = inlined_call_operand.vmem [shape: f32[1,4], index: 5, kind: input, shape index: {}]   ;;  %s7942_s6 = inlined_call_operand.vmem [shape: f32[1,4], index: 6, kind: input, shape index: {}]   ;;  %s7943_s7 = inlined_call_operand.vmem [shape: f32[2,16,16,4], index: 7, kind: output, shape index: {}, may-alias: {0,7}]  }
   0x1 LB: > { %s4525_s25 = sadd.s32 4294967295, %s4852_s24   ;;  %p4529_p0 = scmp.ge.s32.totalorder %s4852_s24, 1  ;;  %s4852_s24 = sphi %s4895_s24, %s17_s24  }
   0x2   : > { %p237_p1 = scmp.lt.s32.totalorder %s4852_s24, 3 }
   0x4   : > { %p238_p2 = pnand %p4529_p0, %p237_p1 }
   0x6   : > { %241 = sbr.rel (%p238_p2) target bundleno = 1845 (0x735), region = 48 }
   0xb   : > { %v626_v0 = vld [vmem:[%s7937_s1] sm:$0xf]  ;;  %vm762_vm0 = vcmask 1041408   ;;  %p269_p3 = scmp.lt.s32.totalorder %s4525_s25, 1  ;;  %v312_v1 = vlaneseq  ;;  %v627_v4 = vld [vmem:[%s7937_s1 + $0x4] sm:$0xf] }
   0xc   : > { %v710_v2 = vunpack.c.l.b16 %v626_v0  ;;  %v984_v3 = vsel %vm762_vm0, %v626_v0, 0  ;;  %v4854_v5 = vmov 0.0|0.0   ;;  %v1333_v7 = vunpack.c.l.b16 %v627_v4  ;;  %v4919_v11 = vld [vmem:[%s7937_s1 + $0x8] sm:$0xf] }
   0xd   : > { %v662_v6 = vunpack.c.l.b16 %v4854_v5  ;;  %s8395_s25 = smov (!%p269_p3, %s4525_s25), 1  ;;  %993 = vmatpush.bf16.msra.mxu1 %v984_v3  ;;  %4827 = vmatpush.bf16.msra.mxu3 %v984_v3  ;;  %v4912_v8 = vshrl.u32 %v312_v1, 7  ;;  %vm713_vm1 = vcmask 31744   ;;  %v1204_v16 = vsel %vm762_vm0, %v627_v4, 0 }
   0xe   : > { %v711_v9 = vpack.c.b16 %v710_v2, %v710_v2  ;;  %s4824_s9 = sshll.u32 %s8395_s25, 8  ;;  %v1334_v12 = vpack.c.b16 %v1333_v7, %v1333_v7  ;;  %v1472_v18 = vsel %vm762_vm0, %v4919_v11, 0 }
   0xf   : > { %8061 = vst [vmem:[#allocation2_spill] sm:$0xff] %v4912_v8  ;;  %v4914_v10 = vpack.c.b16 %v662_v6, %v662_v6  ;;  %s4927_s12 = scalar_lea.vmem %s7936_s0, %s4824_s9  ;;  %vm351_vm2 = vcmp.lt.s32.totalorder %v4912_v8, 1  ;;  %vm315_vm3 = vcmp.eq.s32.totalorder %v4912_v8, 0  ;;  %vm454_vm4 = vcmp.lt.s32.totalorder %v4912_v8, 7  ;;  %s7829_s18 = scalar_lea.vmem %s7943_s7, %s4824_s9 }
  0x10   : > { %v712_v13 = vrot.slane %v711_v9, 2  ;;  %v4932_v14 = vld [vmem:[%s4927_s12 + $0x70] sm:$0xff]  ;;  %v4935_v15 = vld [vmem:[%s4927_s12 + $0x78] sm:$0xff]  ;;  %v1335_v17 = vrot.slane %v1334_v12, 2  ;;  %v4951_v27 = vld [vmem:[%s4927_s12] sm:$0xff] }
  0x11   : > { %8062 = vst [vmem:[#allocation3_spill] sm:$0xff] %v4914_v10  ;;  %4550 = vmatmul.msk.bf16.vlgmr.msra.gmra.mxu1 %vm713_vm1, %v4914_v10  ;;  %v540_v20 = vpack.c.bf16 %v4932_v14, %v4932_v14  ;;  %v541_v21 = vpack.c.bf16 %v4935_v15, %v4935_v15  ;;  %v326_v22 = vrot.slane %v4932_v14, 7  ;;  %v342_v23 = vrot.slane %v4935_v15, 7  ;;  %v4958_v30 = vld [vmem:[%s4927_s12 + $0x80] sm:$0xff]  ;;  %v4961_v31 = vld [vmem:[%s4927_s12 + $0x88] sm:$0xff]  ;;  %v4993_v51 = vld [vmem:[%s4927_s12 + $0x10] sm:$0xff] }
  0x12   : > { %8063 = vst [vmem:[#allocation4_spill] sm:$0xff] %v4932_v14  ;;  %v764_v19 = vsel %vm762_vm0, %v712_v13, 0  ;;  %v1340_v24 = vsel %vm762_vm0, %v1335_v17, 0  ;;  %v4964_v32 = vld [vmem:[%s4927_s12 + $0x8] sm:$0xff]  ;;  %v319_v37 = vrot.slane %v4951_v27, 7  ;;  %v327_v40 = vrot.slane %v4958_v30, 7 }
  0x13   : > { %8064 = vst [vmem:[#allocation5_spill] sm:$0xff] %v4935_v15  ;;  %4826 = vmatpush.bf16.msra.mxu2 %v764_v19  ;;  %773 = vmatpush.bf16.msra.mxu0 %v764_v19  ;;  %v677_v25 = vunpack.c.l.b16 %v540_v20  ;;  %v678_v26 = vunpack.c.l.b16 %v541_v21  ;;  %v359_v28 = vsel %vm351_vm2, %v326_v22, %v342_v23  ;;  %v375_v29 = vsel %vm351_vm2, %v342_v23, %v326_v22  ;;  %v5000_v55 = vld [vmem:[%s4927_s12 + $0x18] sm:$0xff]  ;;  %v5025_v13 = vld [vmem:[%s4927_s12 + $0x90] sm:$0xff] }
  0x14   : > { %1349 = vmatpush.bf16.msrb.mxu3 %v1340_v24  ;;  %8065 = vst [vmem:[#allocation6_spill] sm:$0xff] %v4958_v30  ;;  %v404_v34 = vsel %vm315_vm3, 0.0, %v375_v29  ;;  %v575_v35 = vpack.c.bf16 %v359_v28, %v359_v28  ;;  %v335_v39 = vrot.slane %v4964_v32, 7  ;;  %v343_v41 = vrot.slane %v4961_v31, 7 }
  0x15   : > { %8066 = vst [vmem:[#allocation7_spill] sm:$0xff] %v4961_v31  ;;  %v4966_v33 = vpack.c.b16 %v678_v26, %v677_v25  ;;  %v574_v36 = vpack.c.bf16 %v404_v34, %v404_v34  ;;  %v526_v43 = vpack.c.bf16 %v4951_v27, %v4951_v27  ;;  %v527_v44 = vpack.c.bf16 %v4964_v32, %v4964_v32  ;;  %v5041_v25 = vld [vmem:[%s4927_s12 + $0x20] sm:$0xff]  ;;  %v5044_v26 = vld [vmem:[%s4927_s12 + $0x28] sm:$0xff] }
  0x16   : > { %4534 = vmatmul.msk.bf16.vlgmr.msra.gmra.mxu0 %vm713_vm1, %v4914_v10  ;;  %v904_v38 = vunpack.c.l.b16 %v575_v35  ;;  %v352_v45 = vsel %vm351_vm2, %v319_v37, %v335_v39  ;;  %v368_v46 = vsel %vm351_vm2, %v335_v39, %v319_v37  ;;  %v376_v50 = vsel %vm351_vm2, %v343_v41, %v327_v40  ;;  %8069 = vst [vmem:[#allocation10_spill] sm:$0xff] %v5025_v13 }
  0x17   : > { %1213 = vmatpush.bf16.msrb.mxu2 %v1204_v16  ;;  %1481 = vmatpush.bf16.msrb.mxu0 %v1472_v18  ;;  %8067 = vst [vmem:[#allocation8_spill] sm:$0xff] %v4966_v33  ;;  %v903_v42 = vunpack.c.l.b16 %v574_v36  ;;  %v390_v48 = vsel %vm315_vm3, 0.0, %v368_v46  ;;  %v561_v49 = vpack.c.bf16 %v352_v45, %v352_v45  ;;  %v542_v52 = vpack.c.bf16 %v4958_v30, %v4958_v30  ;;  %v5028_v16 = vld [vmem:[%s4927_s12 + $0x98] sm:$0xff] }
  0x18   : > { %4542 = vmatmul.msk.bf16.vlgmr.msra.gmra.mxu2 %vm713_vm1, %v4966_v33  ;;  %v543_v53 = vpack.c.bf16 %v4961_v31, %v4961_v31  ;;  %v560_v54 = vpack.c.bf16 %v390_v48, %v390_v48  ;;  %v663_v56 = vunpack.c.l.b16 %v526_v43  ;;  %v664_v57 = vunpack.c.l.b16 %v527_v44  ;;  %8070 = vst [vmem:[#allocation11_spill] sm:$0xff] %v5028_v16 }
  0x19   : > { %v4986_v47 = vpack.c.b16 %v904_v38, %v903_v42  ;;  %v890_v58 = vunpack.c.l.b16 %v561_v49  ;;  %v360_v60 = vsel %vm351_vm2, %v327_v40, %v343_v41  ;;  %v406_v61 = vsel %vm315_vm3, 0.0, %v376_v50  ;;  %8072 = vst [vmem:[#allocation13_spill] sm:$0xff] %v5044_v26 }
  0x1a   : > { %v889_v59 = vunpack.c.l.b16 %v560_v54  ;;  %v320_v62 = vrot.slane %v4993_v51, 7  ;;  %v336_v63 = vrot.slane %v5000_v55, 7  ;;  %v679_v0 = vunpack.c.l.b16 %v542_v52 }
  0x1b   : > { %4558 = vmatmul.msk.bf16.vlgmr.msra.gmra.mxu3 %vm713_vm1, %v4986_v47  ;;  %v680_v1 = vunpack.c.l.b16 %v543_v53  ;;  %v576_v3 = vpack.c.bf16 %v406_v61, %v406_v61  ;;  %v577_v4 = vpack.c.bf16 %v360_v60, %v360_v60  ;;  %v5014_v6 = vpack.c.b16 %v664_v57, %v663_v56  ;;  %v5077_v57 = vld [vmem:[%s4927_s12 + $0xa0] sm:$0xff] }
  0x1c   : > { %v5010_v2 = vpack.c.b16 %v890_v58, %v889_v59  ;;  %v369_v5 = vsel %vm351_vm2, %v336_v63, %v320_v62  ;;  %v353_v7 = vsel %vm351_vm2, %v320_v62, %v336_v63  ;;  %v328_v21 = vrot.slane %v5025_v13, 7  ;;  %8074 = vst [vmem:[#allocation15_spill] sm:$0xff] %v5077_v57  ;;  %v5080_v58 = vld [vmem:[%s4927_s12 + $0xa8] sm:$0xff] }
  0x1d   : > { %v392_v9 = vsel %vm315_vm3, 0.0, %v369_v5  ;;  %v5022_v12 = vpack.c.b16 %v680_v1, %v679_v0  ;;  %v905_v17 = vunpack.c.l.b16 %v576_v3  ;;  %v906_v18 = vunpack.c.l.b16 %v577_v4  ;;  %8075 = vst [vmem:[#allocation16_spill] sm:$0xff] %v5080_v58  ;;  %v5091_v3 = vld [vmem:[%s4927_s12 + $0x30] sm:$0xff]  ;;  %v5094_v4 = vld [vmem:[%s4927_s12 + $0x38] sm:$0xff] }
  0x1e   : > { %v562_v19 = vpack.c.bf16 %v392_v9, %v392_v9  ;;  %v563_v20 = vpack.c.bf16 %v353_v7, %v353_v7  ;;  %v344_v22 = vrot.slane %v5028_v16, 7  ;;  %v528_v24 = vpack.c.bf16 %v4993_v51, %v4993_v51  ;;  %8077 = vst [vmem:[#allocation18_spill] sm:$0xff] %v5091_v3 }
  0x1f   : > { %8068 = vst [vmem:[#allocation9_spill] sm:$0xff] %v5022_v12  ;;  %v5036_v23 = vpack.c.b16 %v906_v18, %v905_v17  ;;  %v529_v28 = vpack.c.bf16 %v5000_v55, %v5000_v55  ;;  %v544_v36 = vpack.c.bf16 %v5025_v13, %v5025_v13  ;;  %v545_v37 = vpack.c.bf16 %v5028_v16, %v5028_v16 }
  0x20   : > { %v891_v29 = vunpack.c.l.b16 %v562_v19  ;;  %v892_v34 = vunpack.c.l.b16 %v563_v20  ;;  %v377_v35 = vsel %vm351_vm2, %v344_v22, %v328_v21  ;;  %v321_v38 = vrot.slane %v5041_v25, 7  ;;  %8078 = vst [vmem:[#allocation19_spill] sm:$0xff] %v5094_v4 }
  0x21   : > { %4551 = vmatmul.msk.bf16.gmra.mxu1 %vm713_vm1, %v5010_v2  ;;  %8071 = vst [vmem:[#allocation12_spill] sm:$0xff] %v5036_v23  ;;  %v337_v39 = vrot.slane %v5044_v26, 7  ;;  %v665_v40 = vunpack.c.l.b16 %v528_v24  ;;  %v666_v41 = vunpack.c.l.b16 %v529_v28  ;;  %v361_v43 = vsel %vm351_vm2, %v328_v21, %v344_v22 }
  0x22   : > { %v5058_v42 = vpack.c.b16 %v892_v34, %v891_v29  ;;  %v408_v44 = vsel %vm315_vm3, 0.0, %v377_v35  ;;  %v681_v45 = vunpack.c.l.b16 %v544_v36  ;;  %v682_v46 = vunpack.c.l.b16 %v545_v37 }
  0x23   : > { %v370_v48 = vsel %vm351_vm2, %v337_v39, %v321_v38  ;;  %v578_v49 = vpack.c.bf16 %v408_v44, %v408_v44  ;;  %v579_v50 = vpack.c.bf16 %v361_v43, %v361_v43  ;;  %v5066_v52 = vpack.c.b16 %v666_v41, %v665_v40 }
  0x24   : > { %v354_v53 = vsel %vm351_vm2, %v321_v38, %v337_v39  ;;  %v394_v54 = vsel %vm315_vm3, 0.0, %v370_v48  ;;  %v5074_v56 = vpack.c.b16 %v682_v46, %v681_v45  ;;  %v329_v63 = vrot.slane %v5077_v57, 7  ;;  %v5129_v46 = vld [vmem:[%s4927_s12 + $0xb0] sm:$0xff]  ;;  %v5132_v48 = vld [vmem:[%s4927_s12 + $0xb8] sm:$0xff] }
  0x25   : > { %v907_v59 = vunpack.c.l.b16 %v578_v49  ;;  %v908_v60 = vunpack.c.l.b16 %v579_v50  ;;  %v564_v61 = vpack.c.bf16 %v394_v54, %v394_v54  ;;  %v565_v62 = vpack.c.bf16 %v354_v53, %v354_v53  ;;  %8080 = vst [vmem:[#allocation21_spill] sm:$0xff] %v5129_v46 }
  0x26   : > { %4535 = vmatmul.msk.bf16.gmra.mxu0 %vm713_vm1, %v5014_v6  ;;  %8073 = vst [vmem:[#allocation14_spill] sm:$0xff] %v5074_v56  ;;  %v345_v0 = vrot.slane %v5080_v58, 7  ;;  %v530_v5 = vpack.c.bf16 %v5041_v25, %v5041_v25  ;;  %v531_v7 = vpack.c.bf16 %v5044_v26, %v5044_v26  ;;  %v546_v19 = vpack.c.bf16 %v5077_v57, %v5077_v57 }
  0x27   : > { %v5088_v1 = vpack.c.b16 %v908_v60, %v907_v59  ;;  %v893_v9 = vunpack.c.l.b16 %v564_v61  ;;  %v894_v17 = vunpack.c.l.b16 %v565_v62  ;;  %v547_v20 = vpack.c.bf16 %v5080_v58, %v5080_v58  ;;  %8081 = vst [vmem:[#allocation22_spill] sm:$0xff] %v5132_v48  ;;  %v5143_v62 = vld [vmem:[%s4927_s12 + $0x40] sm:$0xff] }
  0x28   : > { %4543 = vmatmul.msk.bf16.gmra.mxu2 %vm713_vm1, %v5022_v12  ;;  %v378_v18 = vsel %vm351_vm2, %v345_v0, %v329_v63  ;;  %v322_v21 = vrot.slane %v5091_v3, 7  ;;  %v338_v22 = vrot.slane %v5094_v4, 7  ;;  %v362_v24 = vsel %vm351_vm2, %v329_v63, %v345_v0  ;;  %8083 = vst [vmem:[#allocation24_spill] sm:$0xff] %v5143_v62  ;;  %v5146_v63 = vld [vmem:[%s4927_s12 + $0x48] sm:$0xff] }
  0x29   : > { %8076 = vst [vmem:[#allocation17_spill] sm:$0xff] %v5088_v1  ;;  %v667_v28 = vunpack.c.l.b16 %v530_v5  ;;  %v668_v29 = vunpack.c.l.b16 %v531_v7  ;;  %v5112_v34 = vpack.c.b16 %v894_v17, %v893_v9  ;;  %v410_v35 = vsel %vm315_vm3, 0.0, %v378_v18 }
  0x2a   : > { %v683_v36 = vunpack.c.l.b16 %v546_v19  ;;  %v684_v37 = vunpack.c.l.b16 %v547_v20  ;;  %v371_v38 = vsel %vm351_vm2, %v338_v22, %v322_v21  ;;  %v580_v39 = vpack.c.bf16 %v410_v35, %v410_v35  ;;  %8084 = vst [vmem:[#allocation25_spill] sm:$0xff] %v5146_v63 }
  0x2b   : > { %4559 = vmatmul.msk.bf16.gmra.mxu3 %vm713_vm1, %v5036_v23  ;;  %v581_v40 = vpack.c.bf16 %v362_v24, %v362_v24  ;;  %v5118_v41 = vpack.c.b16 %v668_v29, %v667_v28  ;;  %v355_v43 = vsel %vm351_vm2, %v322_v21, %v338_v22  ;;  %v396_v44 = vsel %vm315_vm3, 0.0, %v371_v38 }
  0x2c   : > { %v5126_v45 = vpack.c.b16 %v684_v37, %v683_v36  ;;  %v909_v49 = vunpack.c.l.b16 %v580_v39  ;;  %v566_v53 = vpack.c.bf16 %v396_v44, %v396_v44  ;;  %v567_v54 = vpack.c.bf16 %v355_v43, %v355_v43 }
  0x2d   : > { %v910_v50 = vunpack.c.l.b16 %v581_v40  ;;  %v330_v59 = vrot.slane %v5129_v46, 7  ;;  %v346_v60 = vrot.slane %v5132_v48, 7  ;;  %v532_v0 = vpack.c.bf16 %v5091_v3, %v5091_v3 }
  0x2e   : > { %8079 = vst [vmem:[#allocation20_spill] sm:$0xff] %v5126_v45  ;;  %v533_v5 = vpack.c.bf16 %v5094_v4, %v5094_v4  ;;  %v895_v7 = vunpack.c.l.b16 %v566_v53  ;;  %v896_v9 = vunpack.c.l.b16 %v567_v54  ;;  %v548_v18 = vpack.c.bf16 %v5129_v46, %v5129_v46  ;;  %v5181_v53 = vld [vmem:[%s4927_s12 + $0xc0] sm:$0xff]  ;;  %v5184_v54 = vld [vmem:[%s4927_s12 + $0xc8] sm:$0xff] }
  0x2f   : > { %v5140_v61 = vpack.c.b16 %v910_v50, %v909_v49  ;;  %v379_v17 = vsel %vm351_vm2, %v346_v60, %v330_v59  ;;  %v549_v19 = vpack.c.bf16 %v5132_v48, %v5132_v48  ;;  %v323_v20 = vrot.slane %v5143_v62, 7  ;;  %8087 = vst [vmem:[#allocation28_spill] sm:$0xff] %v5181_v53 }
  0x30   : > { %v339_v21 = vrot.slane %v5146_v63, 7  ;;  %v363_v22 = vsel %vm351_vm2, %v330_v59, %v346_v60  ;;  %v669_v24 = vunpack.c.l.b16 %v532_v0  ;;  %v670_v28 = vunpack.c.l.b16 %v533_v5  ;;  %8088 = vst [vmem:[#allocation29_spill] sm:$0xff] %v5184_v54 }
  0x31   : > { %4552 = vmatmul.msk.bf16.gmra.mxu1 %vm713_vm1, %v5058_v42  ;;  %8082 = vst [vmem:[#allocation23_spill] sm:$0xff] %v5140_v61  ;;  %v5164_v29 = vpack.c.b16 %v896_v9, %v895_v7  ;;  %v412_v35 = vsel %vm315_vm3, 0.0, %v379_v17  ;;  %v685_v36 = vunpack.c.l.b16 %v548_v18  ;;  %v686_v37 = vunpack.c.l.b16 %v549_v19  ;;  %v5195_v18 = vld [vmem:[%s4927_s12 + $0x50] sm:$0xff]  ;;  %v5198_v19 = vld [vmem:[%s4927_s12 + $0x58] sm:$0xff] }
  0x32   : > { %v372_v38 = vsel %vm351_vm2, %v339_v21, %v323_v20  ;;  %v582_v39 = vpack.c.bf16 %v412_v35, %v412_v35  ;;  %v583_v40 = vpack.c.bf16 %v363_v22, %v363_v22  ;;  %v5170_v43 = vpack.c.b16 %v670_v28, %v669_v24  ;;  %8090 = vst [vmem:[#allocation31_spill] sm:$0xff] %v5195_v18 }
  0x33   : > { %v356_v44 = vsel %vm351_vm2, %v323_v20, %v339_v21  ;;  %v398_v49 = vsel %vm315_vm3, 0.0, %v372_v38  ;;  %v5178_v50 = vpack.c.b16 %v686_v37, %v685_v36  ;;  %v331_v7 = vrot.slane %v5181_v53, 7  ;;  %8091 = vst [vmem:[#allocation32_spill] sm:$0xff] %v5198_v19 }
  0x34   : > { %8085 = vst [vmem:[#allocation26_spill] sm:$0xff] %v5170_v43  ;;  %v911_v59 = vunpack.c.l.b16 %v582_v39  ;;  %v912_v60 = vunpack.c.l.b16 %v583_v40  ;;  %v568_v0 = vpack.c.bf16 %v398_v49, %v398_v49  ;;  %v569_v5 = vpack.c.bf16 %v356_v44, %v356_v44 }
  0x35   : > { %8086 = vst [vmem:[#allocation27_spill] sm:$0xff] %v5178_v50  ;;  %v347_v9 = vrot.slane %v5184_v54, 7  ;;  %v534_v20 = vpack.c.bf16 %v5143_v62, %v5143_v62  ;;  %v535_v21 = vpack.c.bf16 %v5146_v63, %v5146_v63  ;;  %v550_v35 = vpack.c.bf16 %v5181_v53, %v5181_v53 }
  0x36   : > { %4536 = vmatmul.msk.bf16.gmra.mxu0 %vm713_vm1, %v5066_v52  ;;  %v5192_v17 = vpack.c.b16 %v912_v60, %v911_v59  ;;  %v897_v22 = vunpack.c.l.b16 %v568_v0  ;;  %v898_v24 = vunpack.c.l.b16 %v569_v5  ;;  %v551_v36 = vpack.c.bf16 %v5184_v54, %v5184_v54 }
  0x37   : > { %v380_v28 = vsel %vm351_vm2, %v347_v9, %v331_v7  ;;  %v324_v37 = vrot.slane %v5195_v18, 7  ;;  %v340_v38 = vrot.slane %v5198_v19, 7  ;;  %v364_v39 = vsel %vm351_vm2, %v331_v7, %v347_v9 }
  0x38   : > { %4544 = vmatmul.msk.bf16.gmra.mxu2 %vm713_vm1, %v5074_v56  ;;  %8089 = vst [vmem:[#allocation30_spill] sm:$0xff] %v5192_v17  ;;  %v671_v40 = vunpack.c.l.b16 %v534_v20  ;;  %v672_v44 = vunpack.c.l.b16 %v535_v21  ;;  %v5216_v49 = vpack.c.b16 %v898_v24, %v897_v22  ;;  %v414_v59 = vsel %vm315_vm3, 0.0, %v380_v28  ;;  %v5233_v21 = vld [vmem:[%s4927_s12 + $0xd0] sm:$0xff]  ;;  %v5236_v22 = vld [vmem:[%s4927_s12 + $0xd8] sm:$0xff] }
  0x39   : > { %v687_v60 = vunpack.c.l.b16 %v550_v35  ;;  %v688_v0 = vunpack.c.l.b16 %v551_v36  ;;  %v373_v5 = vsel %vm351_vm2, %v340_v38, %v324_v37  ;;  %v585_v54 = vpack.c.bf16 %v364_v39, %v364_v39  ;;  %8094 = vst [vmem:[#allocation35_spill] sm:$0xff] %v5233_v21 }
  0x3a   : > { %v357_v7 = vsel %vm351_vm2, %v324_v37, %v340_v38  ;;  %v400_v9 = vsel %vm315_vm3, 0.0, %v373_v5  ;;  %8095 = vst [vmem:[#allocation36_spill] sm:$0xff] %v5236_v22  ;;  %v332_v39 = vrot.slane %v5233_v21, 7  ;;  %v348_v37 = vrot.slane %v5236_v22, 7 }
  0x3b   : > { %4560 = vmatmul.msk.bf16.gmra.mxu3 %vm713_vm1, %v5088_v1  ;;  %v5230_v20 = vpack.c.b16 %v688_v0, %v687_v60  ;;  %v914_v28 = vunpack.c.l.b16 %v585_v54  ;;  %v570_v35 = vpack.c.bf16 %v400_v9, %v400_v9  ;;  %v571_v36 = vpack.c.bf16 %v357_v7, %v357_v7 }
  0x3c   : > { %v537_v54 = vpack.c.bf16 %v5198_v19, %v5198_v19  ;;  %v381_v0 = vsel %vm351_vm2, %v348_v37, %v332_v39  ;;  %v552_v5 = vpack.c.bf16 %v5233_v21, %v5233_v21  ;;  %v553_v7 = vpack.c.bf16 %v5236_v22, %v5236_v22 }
  0x3d   : > { %8093 = vst [vmem:[#allocation34_spill] sm:$0xff] %v5230_v20  ;;  %v900_v60 = vunpack.c.l.b16 %v571_v36  ;;  %v416_v21 = vsel %vm315_vm3, 0.0, %v381_v0 }
  0x3e   : > { %v674_v36 = vunpack.c.l.b16 %v537_v54  ;;  %v689_v22 = vunpack.c.l.b16 %v552_v5  ;;  %v690_v53 = vunpack.c.l.b16 %v553_v7  ;;  %v5285_v54 = vld [vmem:[%s4927_s12 + $0xe0] sm:$0xff] }
  0x3f   : > { %8101 = vst [vmem:[#allocation42_spill] sm:$0xff] %v5285_v54  ;;  %v333_v7 = vrot.slane %v5285_v54, 7 }
  0x41   : > { %4553 = vmatmul.msk.bf16.gmra.mxu1 %vm713_vm1, %v5112_v34 }
  0x46   : > { %4537 = vmatmul.msk.bf16.gmra.mxu0 %vm713_vm1, %v5118_v41 }
  0x48   : > { %4545 = vmatmul.msk.bf16.gmra.mxu2 %vm713_vm1, %v5126_v45  ;;  %v586_v45 = vpack.c.bf16 %v416_v21, %v416_v21 }
  0x4b   : > { %4561 = vmatmul.msk.bf16.gmra.mxu3 %vm713_vm1, %v5140_v61 }
  0x51   : > { %4554 = vmatmul.msk.bf16.gmra.mxu1 %vm713_vm1, %v5164_v29 }
  0x56   : > { %4538 = vmatmul.msk.bf16.gmra.mxu0 %vm713_vm1, %v5170_v43 }
  0x58   : > { %4546 = vmatmul.msk.bf16.gmra.mxu2 %vm713_vm1, %v5178_v50  ;;  %v584_v50 = vpack.c.bf16 %v414_v59, %v414_v59  ;;  %v899_v59 = vunpack.c.l.b16 %v570_v35 }
  0x5a   : > { %v913_v24 = vunpack.c.l.b16 %v584_v50  ;;  %v536_v50 = vpack.c.bf16 %v5195_v18, %v5195_v18 }
  0x5b   : > { %4562 = vmatmul.msk.bf16.gmra.mxu3 %vm713_vm1, %v5192_v17  ;;  %v5222_v17 = vpack.c.b16 %v672_v44, %v671_v40  ;;  %v5247_v40 = vld [vmem:[%s4927_s12 + $0x60] sm:$0xff]  ;;  %v5250_v44 = vld [vmem:[%s4927_s12 + $0x68] sm:$0xff] }
  0x5c   : > { %v5244_v38 = vpack.c.b16 %v914_v28, %v913_v24  ;;  %8097 = vst [vmem:[#allocation38_spill] sm:$0xff] %v5247_v40  ;;  %v325_v9 = vrot.slane %v5247_v40, 7  ;;  %v341_v24 = vrot.slane %v5250_v44, 7  ;;  %v365_v28 = vsel %vm351_vm2, %v332_v39, %v348_v37 }
  0x5d   : > { %8092 = vst [vmem:[#allocation33_spill] sm:$0xff] %v5222_v17  ;;  %v673_v35 = vunpack.c.l.b16 %v536_v50  ;;  %v587_v48 = vpack.c.bf16 %v365_v28, %v365_v28  ;;  %v5282_v50 = vpack.c.b16 %v690_v53, %v689_v22  ;;  %v538_v22 = vpack.c.bf16 %v5247_v40, %v5247_v40 }
  0x5e   : > { %8096 = vst [vmem:[#allocation37_spill] sm:$0xff] %v5244_v38  ;;  %v374_v61 = vsel %vm351_vm2, %v341_v24, %v325_v9  ;;  %v358_v39 = vsel %vm351_vm2, %v325_v9, %v341_v24  ;;  %v539_v24 = vpack.c.bf16 %v5250_v44, %v5250_v44 }
  0x5f   : > { %8098 = vst [vmem:[#allocation39_spill] sm:$0xff] %v5250_v44  ;;  %v402_v37 = vsel %vm315_vm3, 0.0, %v374_v61  ;;  %v916_v21 = vunpack.c.l.b16 %v587_v48  ;;  %v573_v5 = vpack.c.bf16 %v358_v39, %v358_v39  ;;  %v629_v61 = vld [vmem:[%s7937_s1 + $0xc] sm:$0xf] }
  0x60   : > { %8100 = vst [vmem:[#allocation41_spill] sm:$0xff] %v5282_v50  ;;  %v572_v0 = vpack.c.bf16 %v402_v37, %v402_v37  ;;  %v1856_v48 = vunpack.c.l.b16 %v629_v61  ;;  %v554_v37 = vpack.c.bf16 %v5285_v54, %v5285_v54 }
  0x61   : > { %4555 = vmatmul.msk.bf16.gmra.mxu1 %vm713_vm1, %v5216_v49 }
  0x62   : > { %v901_v28 = vunpack.c.l.b16 %v572_v0  ;;  %v1857_v0 = vpack.c.b16 %v1856_v48, %v1856_v48 }
  0x64   : > { %v1858_v46 = vrot.slane %v1857_v0, 2 }
  0x66   : > { %4539 = vmatmul.msk.bf16.gmra.mxu0 %vm713_vm1, %v5222_v17 }
  0x68   : > { %4547 = vmatmul.msk.bf16.gmra.mxu2 %vm713_vm1, %v5230_v20  ;;  %v5268_v20 = vpack.c.b16 %v900_v60, %v899_v59  ;;  %v5288_v59 = vld [vmem:[%s4927_s12 + $0xe8] sm:$0xff]  ;;  %v915_v60 = vunpack.c.l.b16 %v586_v45  ;;  %v1732_v45 = vsel %vm762_vm0, %v629_v61, 0  ;;  %v438_v61 = vrot.slane %v4964_v32, 1 }
  0x69   : > { %8102 = vst [vmem:[#allocation43_spill] sm:$0xff] %v5288_v59  ;;  %v349_v9 = vrot.slane %v5288_v59, 7  ;;  %1741 = vmatpush.bf16.msra.mxu2 %v1732_v45  ;;  %v675_v45 = vunpack.c.l.b16 %v538_v22  ;;  %v1860_v32 = vsel %vm762_vm0, %v1858_v46, 0 }
  0x6a   : > { %v5299_v53 = vpack.c.b16 %v916_v21, %v915_v60  ;;  %v555_v60 = vpack.c.bf16 %v5288_v59, %v5288_v59  ;;  %1869 = vmatpush.bf16.msra.mxu3 %v1860_v32 }
  0x6b   : > { %4563 = vmatmul.msk.bf16.gmra.mxu3 %vm713_vm1, %v5244_v38  ;;  %v5274_v38 = vpack.c.b16 %v674_v36, %v673_v35  ;;  %v902_v35 = vunpack.c.l.b16 %v573_v5  ;;  %v1601_v36 = vunpack.c.l.b16 %v4919_v11  ;;  %v382_v39 = vsel %vm351_vm2, %v349_v9, %v333_v7 }
  0x6c   : > { %8103 = vst [vmem:[#allocation44_spill] sm:$0xff] %v5299_v53  ;;  %v366_v21 = vsel %vm351_vm2, %v333_v7, %v349_v9  ;;  %v5319_v11 = vadd.s32 8, %v4912_v8  ;;  %v422_v5 = vrot.slane %v4951_v27, 1  ;;  %v418_v59 = vsel %vm315_vm3, 0.0, %v382_v39 }
  0x6d   : > { %8099 = vst [vmem:[#allocation40_spill] sm:$0xff] %v5274_v38  ;;  %v5323_v54 = vpack.c.b16 %v902_v35, %v901_v28  ;;  %v1602_v7 = vpack.c.b16 %v1601_v36, %v1601_v36  ;;  %v691_v9 = vunpack.c.l.b16 %v554_v37  ;;  %v692_v1 = vunpack.c.l.b16 %v555_v60  ;;  %v630_v35 = vld [vmem:[%s7937_s1 + $0x10] sm:$0x3] }
  0x6e   : > { %8104 = vst [vmem:[#allocation45_spill] sm:$0xff] %v5319_v11  ;;  %vm318_vm5 = vcmp.eq.s32.totalorder %v5319_v11, 15  ;;  %v471_v48 = vsel %vm454_vm4, %v438_v61, %v422_v5  ;;  %v589_v27 = vpack.c.bf16 %v366_v21, %v366_v21  ;;  %v455_v36 = vsel %vm454_vm4, %v422_v5, %v438_v61 }
  0x6f   : > { %v1603_v22 = vrot.slane %v1602_v7, 2  ;;  %v5343_v46 = vpack.c.b16 %v692_v1, %v691_v9  ;;  %v594_v60 = vpack.c.bf16 %v455_v36, %v455_v36 }
  0x70   : > { %v918_v37 = vunpack.c.l.b16 %v589_v27 }
  0x71   : > { %4556 = vmatmul.msk.bf16.gmra.mxu1 %vm713_vm1, %v5268_v20  ;;  %v1608_v28 = vsel %vm762_vm0, %v1603_v22, 0  ;;  %8106 = vst [vmem:[#allocation47_spill] sm:$0xff] %v5343_v46  ;;  %v1109_v5 = vunpack.c.l.b16 %v594_v60  ;;  %v440_v60 = vrot.slane %v5044_v26, 1 }
  0x72   : > { %1617 = vmatpush.bf16.msrb.mxu1 %v1608_v28 }
  0x76   : > { %4540 = vmatmul.msk.bf16.gmra.mxu0 %vm713_vm1, %v5274_v38 }
  0x78   : > { %4548 = vmatmul.msk.bf16.gmra.mxu2 %vm713_vm1, %v5282_v50  ;;  %v676_v50 = vunpack.c.l.b16 %v539_v24 }
  0x7a   : > { %v5331_v24 = vpack.c.b16 %v676_v50, %v675_v45  ;;  %v1984_v50 = vsel %vm762_vm0, %v630_v35, 0  ;;  %v439_v45 = vrot.slane %v5000_v55, 1 }
  0x7b   : > { %4564 = vmatmul.msk.bf16.gmra.mxu3 %vm713_vm1, %v5299_v53  ;;  %v588_v53 = vpack.c.bf16 %v418_v59, %v418_v59  ;;  %v494_v59 = vsel %vm318_vm5, 0.0, %v471_v48  ;;  %1993 = vmatpush.bf16.msra.mxu0 %v1984_v50 }
  0x7c   : > { %8105 = vst [vmem:[#allocation46_spill] sm:$0xff] %v5331_v24  ;;  %v595_v21 = vpack.c.bf16 %v494_v59, %v494_v59 }
  0x7d   : > { %v917_v39 = vunpack.c.l.b16 %v588_v53  ;;  %v423_v53 = vrot.slane %v4993_v51, 1 }
  0x7e   : > { %v1110_v61 = vunpack.c.l.b16 %v595_v21 }
  0x7f   : > { %v5350_v0 = vpack.c.b16 %v918_v37, %v917_v39  ;;  %v472_v9 = vsel %vm454_vm4, %v439_v45, %v423_v53  ;;  %v456_v27 = vsel %vm454_vm4, %v423_v53, %v439_v45  ;;  %v424_v37 = vrot.slane %v5041_v25, 1 }
  0x80   : > { %v1140_v7 = vpack.c.b16 %v1110_v61, %v1109_v5  ;;  %v496_v32 = vsel %vm318_vm5, 0.0, %v472_v9  ;;  %v596_v51 = vpack.c.bf16 %v456_v27, %v456_v27 }
  0x81   : > { %4557 = vmatmul.msk.bf16.gmra.mxu1 %vm713_vm1, %v5323_v54  ;;  %v597_v55 = vpack.c.bf16 %v496_v32, %v496_v32  ;;  %v473_v61 = vsel %vm454_vm4, %v440_v60, %v424_v37 }
  0x82   : > { %v1111_v35 = vunpack.c.l.b16 %v596_v51  ;;  %v498_v25 = vsel %vm318_vm5, 0.0, %v473_v61 }
  0x83   : > { %v1112_v36 = vunpack.c.l.b16 %v597_v55  ;;  %v599_v27 = vpack.c.bf16 %v498_v25, %v498_v25 }
  0x85   : > { %v5375_v21 = vpack.c.b16 %v1112_v36, %v1111_v35  ;;  %v1114_v35 = vunpack.c.l.b16 %v599_v27 }
  0x86   : > { %4541 = vmatmul.msk.bf16.gmra.mxu0 %vm713_vm1, %v5331_v24 }
  0x88   : > { %4549 = vmatmul.msk.bf16.gmra.mxu2 %vm713_vm1, %v5343_v46 }
  0x8b   : > { %4565 = vmatmul.msk.bf16.gmra.mxu3 %vm713_vm1, %v5350_v0 }
  0x8e   : > { %v995_v1 = vpop.f32.mrf.mxu1 }
  0x91   : > { %4614 = vmatmul.msk.bf16.vlgmr.msrb.gmra.mxu1 %vm713_vm1, %v1140_v7 }
  0x93   : > { %v775_v48 = vpop.f32.mrf.mxu0 }
  0x94   : > { %v5363_v22 = vadd.f32 %v995_v1, %v775_v48 }
  0x96   : > { %v997_v28 = vpop.f32.mrf.mxu1  ;;  %4598 = vmatmul.msk.bf16.vlgmr.msrb.gmra.mxu0 %vm713_vm1, %v5014_v6 }
  0x98   : > { %4566 = vmatmul.msk.bf16.vlgmr.msrb.gmra.mxu2 %vm713_vm1, %v4914_v10 }
  0x9b   : > { %v815_v59 = vpop.f32.mrf.mxu2  ;;  %v777_v50 = vpop.f32.mrf.mxu0  ;;  %4582 = vmatmul.msk.bf16.vlgmr.msrb.gmra.mxu3 %vm713_vm1, %v5010_v2  ;;  %v457_v2 = vsel %vm454_vm4, %v424_v37, %v440_v60  ;;  %v425_v37 = vrot.slane %v5091_v3, 1  ;;  %v441_v60 = vrot.slane %v5094_v4, 1 }
  0x9c   : > { %v5369_v39 = vadd.f32 %v997_v28, %v777_v50  ;;  %v598_v48 = vpack.c.bf16 %v457_v2, %v457_v2 }
  0x9d   : > { %v458_v25 = vsel %vm454_vm4, %v425_v37, %v441_v60 }
  0x9e   : > { %v1000_v6 = vpop.f32.mrf.mxu1  ;;  %v1035_v5 = vpop.f32.mrf.mxu3  ;;  %v1113_v55 = vunpack.c.l.b16 %v598_v48 }
  0x9f   : > { %v5379_v1 = vadd.f32 %v1035_v5, %v815_v59 }
  0xa1   : > { %4615 = vmatmul.msk.bf16.gmra.mxu1 %vm713_vm1, %v5375_v21 }
  0xa3   : > { %v817_v53 = vpop.f32.mrf.mxu2  ;;  %v780_v45 = vpop.f32.mrf.mxu0 }
  0xa4   : > { %v5387_v9 = vadd.f32 %v1000_v6, %v780_v45  ;;  %v5400_v6 = vpack.c.b16 %v1114_v35, %v1113_v55 }
  0xa6   : > { %4599 = vmatmul.msk.bf16.gmra.mxu0 %vm713_vm1, %v5066_v52  ;;  %v1002_v32 = vpop.f32.mrf.mxu1  ;;  %v1037_v28 = vpop.f32.mrf.mxu3 }
  0xa7   : > { %v5392_v51 = vadd.f32 %v1037_v28, %v817_v53 }
  0xa8   : > { %4567 = vmatmul.msk.bf16.gmra.mxu2 %vm713_vm1, %v1140_v7  ;;  %v474_v7 = vsel %vm454_vm4, %v441_v60, %v425_v37 }
  0xa9   : > { %v500_v48 = vsel %vm318_vm5, 0.0, %v474_v7  ;;  %v442_v7 = vrot.slane %v5146_v63, 1 }
  0xaa   : > { %v601_v28 = vpack.c.bf16 %v500_v48, %v500_v48 }
  0xab   : > { %v820_v36 = vpop.f32.mrf.mxu2  ;;  %v782_v59 = vpop.f32.mrf.mxu0  ;;  %4583 = vmatmul.msk.bf16.gmra.mxu3 %vm713_vm1, %v5058_v42 }
  0xac   : > { %v5394_v50 = vadd.f32 %v1002_v32, %v782_v59  ;;  %v600_v32 = vpack.c.bf16 %v458_v25, %v458_v25 }
  0xae   : > { %v1005_v5 = vpop.f32.mrf.mxu1  ;;  %v1040_v61 = vpop.f32.mrf.mxu3  ;;  %v1115_v59 = vunpack.c.l.b16 %v600_v32 }
  0xaf   : > { %v5404_v53 = vadd.f32 %v1040_v61, %v820_v36  ;;  %v1116_v61 = vunpack.c.l.b16 %v601_v28 }
  0xb1   : > { %4616 = vmatmul.msk.bf16.gmra.mxu1 %vm713_vm1, %v5400_v6 }
  0xb3   : > { %v822_v45 = vpop.f32.mrf.mxu2  ;;  %v785_v2 = vpop.f32.mrf.mxu0 }
  0xb4   : > { %v5412_v27 = vadd.f32 %v1005_v5, %v785_v2  ;;  %v426_v5 = vrot.slane %v5143_v62, 1  ;;  %v5426_v2 = vpack.c.b16 %v1116_v61, %v1115_v59 }
  0xb6   : > { %4600 = vmatmul.msk.bf16.gmra.mxu0 %vm713_vm1, %v5118_v41  ;;  %v1007_v55 = vpop.f32.mrf.mxu1  ;;  %v1042_v35 = vpop.f32.mrf.mxu3 }
  0xb7   : > { %v5418_v36 = vadd.f32 %v1042_v35, %v822_v45  ;;  %v475_v45 = vsel %vm454_vm4, %v442_v7, %v426_v5  ;;  %v459_v35 = vsel %vm454_vm4, %v426_v5, %v442_v7 }
  0xb8   : > { %4568 = vmatmul.msk.bf16.gmra.mxu2 %vm713_vm1, %v5375_v21  ;;  %v602_v61 = vpack.c.bf16 %v459_v35, %v459_v35 }
  0xba   : > { %v1117_v3 = vunpack.c.l.b16 %v602_v61 }
  0xbb   : > { %v825_v37 = vpop.f32.mrf.mxu2  ;;  %v787_v60 = vpop.f32.mrf.mxu0  ;;  %4584 = vmatmul.msk.bf16.gmra.mxu3 %vm713_vm1, %v5112_v34 }
  0xbc   : > { %v5420_v4 = vadd.f32 %v1007_v55, %v787_v60  ;;  %v502_v60 = vsel %vm318_vm5, 0.0, %v475_v45  ;;  %v443_v45 = vrot.slane %v5198_v19, 1 }
  0xbd   : > { %v603_v63 = vpack.c.bf16 %v502_v60, %v502_v60 }
  0xbe   : > { %v1010_v25 = vpop.f32.mrf.mxu1  ;;  %v1045_v48 = vpop.f32.mrf.mxu3 }
  0xbf   : > { %v5430_v32 = vadd.f32 %v1045_v48, %v825_v37  ;;  %v1118_v26 = vunpack.c.l.b16 %v603_v63 }
  0xc1   : > { %4617 = vmatmul.msk.bf16.gmra.mxu1 %vm713_vm1, %v5426_v2 }
  0xc3   : > { %v827_v28 = vpop.f32.mrf.mxu2  ;;  %v790_v55 = vpop.f32.mrf.mxu0 }
  0xc4   : > { %v5438_v59 = vadd.f32 %v1010_v25, %v790_v55  ;;  %v427_v25 = vrot.slane %v5195_v18, 1  ;;  %v5452_v55 = vpack.c.b16 %v1118_v26, %v1117_v3 }
  0xc6   : > { %4601 = vmatmul.msk.bf16.gmra.mxu0 %vm713_vm1, %v5170_v43  ;;  %v1012_v37 = vpop.f32.mrf.mxu1  ;;  %v1047_v48 = vpop.f32.mrf.mxu3 }
  0xc7   : > { %v5444_v62 = vadd.f32 %v1047_v48, %v827_v28  ;;  %v476_v28 = vsel %vm454_vm4, %v443_v45, %v427_v25  ;;  %v460_v48 = vsel %vm454_vm4, %v427_v25, %v443_v45 }
  0xc8   : > { %4569 = vmatmul.msk.bf16.gmra.mxu2 %vm713_vm1, %v5400_v6  ;;  %v604_v3 = vpack.c.bf16 %v460_v48, %v460_v48 }
  0xc9   : > { %8107 = vst [vmem:[#allocation48_spill] sm:$0xff] %v5444_v62 }
  0xcb   : > { %v830_v5 = vpop.f32.mrf.mxu2  ;;  %v792_v7 = vpop.f32.mrf.mxu0  ;;  %4585 = vmatmul.msk.bf16.gmra.mxu3 %vm713_vm1, %v5164_v29 }
  0xcc   : > { %v5446_v10 = vadd.f32 %v1012_v37, %v792_v7  ;;  %v504_v7 = vsel %vm318_vm5, 0.0, %v476_v28  ;;  %v444_v28 = vrot.slane %v5250_v44, 1 }
  0xcd   : > { %v605_v19 = vpack.c.bf16 %v504_v7, %v504_v7 }
  0xce   : > { %v1015_v35 = vpop.f32.mrf.mxu1  ;;  %v1050_v60 = vpop.f32.mrf.mxu3 }
  0xcf   : > { %v5456_v61 = vadd.f32 %v1050_v60, %v830_v5  ;;  %v1120_v62 = vunpack.c.l.b16 %v605_v19 }
  0xd1   : > { %8108 = vst [vmem:[#allocation49_spill] sm:$0xff] %v5456_v61  ;;  %4618 = vmatmul.msk.bf16.gmra.mxu1 %vm713_vm1, %v5452_v55  ;;  %v1119_v61 = vunpack.c.l.b16 %v604_v3 }
  0xd3   : > { %v832_v63 = vpop.f32.mrf.mxu2  ;;  %v795_v37 = vpop.f32.mrf.mxu0 }
  0xd4   : > { %v5464_v26 = vadd.f32 %v1015_v35, %v795_v37  ;;  %v428_v35 = vrot.slane %v5247_v40, 1  ;;  %v5478_v37 = vpack.c.b16 %v1120_v62, %v1119_v61 }
  0xd6   : > { %4602 = vmatmul.msk.bf16.gmra.mxu0 %vm713_vm1, %v5222_v17  ;;  %v1017_v5 = vpop.f32.mrf.mxu1  ;;  %v1052_v60 = vpop.f32.mrf.mxu3 }
  0xd7   : > { %v5470_v18 = vadd.f32 %v1052_v60, %v832_v63  ;;  %v477_v63 = vsel %vm454_vm4, %v444_v28, %v428_v35  ;;  %v461_v60 = vsel %vm454_vm4, %v428_v35, %v444_v28 }
  0xd8   : > { %4570 = vmatmul.msk.bf16.gmra.mxu2 %vm713_vm1, %v5426_v2  ;;  %v606_v61 = vpack.c.bf16 %v461_v60, %v461_v60 }
  0xd9   : > { %8109 = vst [vmem:[#allocation50_spill] sm:$0xff] %v5470_v18 }
  0xdb   : > { %v835_v25 = vpop.f32.mrf.mxu2  ;;  %v797_v45 = vpop.f32.mrf.mxu0  ;;  %4586 = vmatmul.msk.bf16.gmra.mxu3 %vm713_vm1, %v5216_v49 }
  0xdc   : > { %v5472_v43 = vadd.f32 %v1017_v5, %v797_v45  ;;  %v506_v45 = vsel %vm318_vm5, 0.0, %v477_v63  ;;  %v445_v63 = vrot.slane %v4935_v15, 1 }
  0xdd   : > { %v607_v44 = vpack.c.bf16 %v506_v45, %v506_v45 }
  0xde   : > { %v1020_v48 = vpop.f32.mrf.mxu1  ;;  %v1055_v7 = vpop.f32.mrf.mxu3 }
  0xdf   : > { %v5482_v3 = vadd.f32 %v1055_v7, %v835_v25  ;;  %v1122_v18 = vunpack.c.l.b16 %v607_v44 }
  0xe1   : > { %8110 = vst [vmem:[#allocation51_spill] sm:$0xff] %v5482_v3  ;;  %4619 = vmatmul.msk.bf16.gmra.mxu1 %vm713_vm1, %v5478_v37  ;;  %v1121_v3 = vunpack.c.l.b16 %v606_v61 }
  0xe3   : > { %v837_v19 = vpop.f32.mrf.mxu2  ;;  %v800_v5 = vpop.f32.mrf.mxu0 }
  0xe4   : > { %v5490_v62 = vadd.f32 %v1020_v48, %v800_v5  ;;  %v429_v48 = vrot.slane %v4932_v14, 1  ;;  %v5504_v5 = vpack.c.b16 %v1122_v18, %v1121_v3 }
  0xe6   : > { %4603 = vmatmul.msk.bf16.gmra.mxu0 %vm713_vm1, %v5274_v38  ;;  %v1022_v25 = vpop.f32.mrf.mxu1  ;;  %v1057_v7 = vpop.f32.mrf.mxu3 }
  0xe7   : > { %v5496_v40 = vadd.f32 %v1057_v7, %v837_v19  ;;  %v478_v19 = vsel %vm454_vm4, %v445_v63, %v429_v48  ;;  %v462_v7 = vsel %vm454_vm4, %v429_v48, %v445_v63 }
  0xe8   : > { %4571 = vmatmul.msk.bf16.gmra.mxu2 %vm713_vm1, %v5452_v55  ;;  %v608_v3 = vpack.c.bf16 %v462_v7, %v462_v7 }
  0xe9   : > { %8111 = vst [vmem:[#allocation52_spill] sm:$0xff] %v5496_v40 }
  0xeb   : > { %v840_v35 = vpop.f32.mrf.mxu2  ;;  %v802_v28 = vpop.f32.mrf.mxu0  ;;  %4587 = vmatmul.msk.bf16.gmra.mxu3 %vm713_vm1, %v5268_v20 }
  0xec   : > { %v5498_v17 = vadd.f32 %v1022_v25, %v802_v28  ;;  %v508_v28 = vsel %vm318_vm5, 0.0, %v478_v19  ;;  %v446_v19 = vrot.slane %v4961_v31, 1 }
  0xed   : > { %v609_v15 = vpack.c.bf16 %v508_v28, %v508_v28 }
  0xee   : > { %v1025_v60 = vpop.f32.mrf.mxu1  ;;  %v1060_v45 = vpop.f32.mrf.mxu3 }
  0xef   : > { %v5508_v61 = vadd.f32 %v1060_v45, %v840_v35  ;;  %v1124_v40 = vunpack.c.l.b16 %v609_v15 }
  0xf1   : > { %8112 = vst [vmem:[#allocation53_spill] sm:$0xff] %v5508_v61  ;;  %4620 = vmatmul.msk.bf16.gmra.mxu1 %vm713_vm1, %v5504_v5  ;;  %v1123_v61 = vunpack.c.l.b16 %v608_v3 }
  0xf3   : > { %v842_v44 = vpop.f32.mrf.mxu2  ;;  %v805_v25 = vpop.f32.mrf.mxu0 }
  0xf4   : > { %v5516_v18 = vadd.f32 %v1025_v60, %v805_v25  ;;  %v430_v60 = vrot.slane %v4958_v30, 1  ;;  %v5530_v25 = vpack.c.b16 %v1124_v40, %v1123_v61 }
  0xf6   : > { %4604 = vmatmul.msk.bf16.gmra.mxu0 %vm713_vm1, %v5331_v24  ;;  %v1027_v35 = vpop.f32.mrf.mxu1  ;;  %v1062_v45 = vpop.f32.mrf.mxu3 }
  0xf7   : > { %v5522_v14 = vadd.f32 %v1062_v45, %v842_v44  ;;  %v479_v44 = vsel %vm454_vm4, %v446_v19, %v430_v60  ;;  %v463_v45 = vsel %vm454_vm4, %v430_v60, %v446_v19 }
  0xf8   : > { %4572 = vmatmul.msk.bf16.gmra.mxu2 %vm713_vm1, %v5478_v37  ;;  %v610_v61 = vpack.c.bf16 %v463_v45, %v463_v45 }
  0xf9   : > { %8113 = vst [vmem:[#allocation54_spill] sm:$0xff] %v5522_v14 }
  0xfb   : > { %v845_v48 = vpop.f32.mrf.mxu2  ;;  %v807_v63 = vpop.f32.mrf.mxu0  ;;  %4588 = vmatmul.msk.bf16.gmra.mxu3 %vm713_vm1, %v5323_v54 }
  0xfc   : > { %v5524_v38 = vadd.f32 %v1027_v35, %v807_v63  ;;  %v510_v63 = vsel %vm318_vm5, 0.0, %v479_v44  ;;  %v447_v44 = vrot.slane %v5028_v16, 1 }
  0xfd   : > { %v611_v31 = vpack.c.bf16 %v510_v63, %v510_v63 }
  0xfe   : > { %v1030_v7 = vpop.f32.mrf.mxu1  ;;  %v1065_v28 = vpop.f32.mrf.mxu3 }
  0xff   : > { %v5534_v3 = vadd.f32 %v1065_v28, %v845_v48  ;;  %v1126_v14 = vunpack.c.l.b16 %v611_v31 }
 0x101   : > { %8114 = vst [vmem:[#allocation55_spill] sm:$0xff] %v5534_v3  ;;  %4621 = vmatmul.msk.bf16.gmra.mxu1 %vm713_vm1, %v5530_v25  ;;  %v1125_v3 = vunpack.c.l.b16 %v610_v61 }
 0x103   : > { %v847_v15 = vpop.f32.mrf.mxu2  ;;  %v810_v35 = vpop.f32.mrf.mxu0 }
 0x104   : > { %v5542_v40 = vadd.f32 %v1030_v7, %v810_v35  ;;  %v431_v7 = vrot.slane %v5025_v13, 1  ;;  %v5556_v35 = vpack.c.b16 %v1126_v14, %v1125_v3 }
 0x106   : > { %4605 = vmatmul.msk.bf16.gmra.mxu0 %vm713_vm1, %v4966_v33  ;;  %v1032_v48 = vpop.f32.mrf.mxu1  ;;  %v1067_v28 = vpop.f32.mrf.mxu3  ;;  %8116 = vst [vmem:[#allocation57_spill] sm:$0xff] %v5556_v35 }
 0x107   : > { %v5548_v30 = vadd.f32 %v1067_v28, %v847_v15  ;;  %v480_v15 = vsel %vm454_vm4, %v447_v44, %v431_v7  ;;  %v464_v28 = vsel %vm454_vm4, %v431_v7, %v447_v44  ;;  %v432_v44 = vrot.slane %v5077_v57, 1 }
 0x108   : > { %4573 = vmatmul.msk.bf16.gmra.mxu2 %vm713_vm1, %v5504_v5  ;;  %v612_v14 = vpack.c.bf16 %v464_v28, %v464_v28 }
 0x109   : > { %8115 = vst [vmem:[#allocation56_spill] sm:$0xff] %v5548_v30 }
 0x10b   : > { %v850_v60 = vpop.f32.mrf.mxu2  ;;  %v812_v19 = vpop.f32.mrf.mxu0  ;;  %4589 = vmatmul.msk.bf16.gmra.mxu3 %vm713_vm1, %v4986_v47 }
 0x10c   : > { %v5550_v24 = vadd.f32 %v1032_v48, %v812_v19  ;;  %v512_v19 = vsel %vm318_vm5, 0.0, %v480_v15  ;;  %v448_v15 = vrot.slane %v5080_v58, 1 }
 0x10d   : > { %v613_v3 = vpack.c.bf16 %v512_v19, %v512_v19 }
 0x10e   : > { %v1619_v45 = vpop.f32.mrf.mxu1  ;;  %v1070_v63 = vpop.f32.mrf.mxu3 }
 0x10f   : > { %v5560_v61 = vadd.f32 %v1070_v63, %v850_v60  ;;  %v1127_v63 = vunpack.c.l.b16 %v612_v14 }
 0x111   : > { %8117 = vst [vmem:[#allocation58_spill] sm:$0xff] %v5560_v61  ;;  %4622 = vmatmul.msk.bf16.gmra.mxu1 %vm713_vm1, %v5556_v35  ;;  %v1128_v61 = vunpack.c.l.b16 %v613_v3  ;;  %v465_v3 = vsel %vm454_vm4, %v432_v44, %v448_v15 }
 0x113   : > { %v852_v31 = vpop.f32.mrf.mxu2  ;;  %v1483_v48 = vpop.f32.mrf.mxu0  ;;  %v5579_v28 = vpack.c.b16 %v1128_v61, %v1127_v63 }
 0x116   : > { %4606 = vmatmul.msk.bf16.gmra.mxu0 %vm713_vm1, %v5022_v12  ;;  %v1621_v16 = vpop.f32.mrf.mxu1  ;;  %v1072_v13 = vpop.f32.mrf.mxu3 }
 0x117   : > { %v5572_v60 = vadd.f32 %v1072_v13, %v852_v31  ;;  %v481_v13 = vsel %vm454_vm4, %v448_v15, %v432_v44 }
 0x118   : > { %4574 = vmatmul.msk.bf16.gmra.mxu2 %vm713_vm1, %v5530_v25  ;;  %v514_v58 = vsel %vm318_vm5, 0.0, %v481_v13 }
 0x119   : > { %8118 = vst [vmem:[#allocation59_spill] sm:$0xff] %v5572_v60 }
 0x11b   : > { %v1215_v30 = vpop.f32.mrf.mxu2  ;;  %v1485_v33 = vpop.f32.mrf.mxu0  ;;  %4590 = vmatmul.msk.bf16.gmra.mxu3 %vm713_vm1, %v5036_v23 }
 0x11c   : > { %v1295_v7 = vadd.f32 %v1215_v30, %v5363_v22 }
 0x11e   : > { %v1624_v19 = vpop.f32.mrf.mxu1  ;;  %v1351_v12 = vpop.f32.mrf.mxu3 }
 0x11f   : > { %v1431_v31 = vadd.f32 %v1351_v12, %v1295_v7  ;;  %v614_v12 = vpack.c.bf16 %v465_v3, %v465_v3  ;;  %v615_v7 = vpack.c.bf16 %v514_v58, %v514_v58  ;;  %v8123_v3 = vld [vmem:[#allocation22_spill] sm:$0xff] }
 0x121   : > { %4623 = vmatmul.msk.bf16.gmra.mxu1 %vm713_vm1, %v5579_v28  ;;  %v1563_v30 = vadd.f32 %v1483_v48, %v1431_v31  ;;  %v1129_v31 = vunpack.c.l.b16 %v614_v12  ;;  %v1130_v44 = vunpack.c.l.b16 %v615_v7 }
 0x123   : > { %v1217_v14 = vpop.f32.mrf.mxu2  ;;  %v1488_v22 = vpop.f32.mrf.mxu0  ;;  %v5590_v63 = vadd.f32 %v1619_v45, %v1563_v30  ;;  %v8122_v30 = vld [vmem:[#allocation21_spill] sm:$0xff] }
 0x124   : > { %v1296_v61 = vadd.f32 %v1217_v14, %v5369_v39  ;;  %v8121_v14 = vld [vmem:[#allocation17_spill] sm:$0xff]  ;;  %v433_v58 = vrot.slane %v8122_v30, 1 }
 0x125   : > { %8119 = vst [vmem:[#allocation60_spill] sm:$0xff] %v5590_v63  ;;  %v5603_v63 = vpack.c.b16 %v1130_v44, %v1129_v31  ;;  %v8125_v44 = vld [vmem:[#allocation20_spill] sm:$0xff] }
 0x126   : > { %4607 = vmatmul.msk.bf16.gmra.mxu0 %vm713_vm1, %v5074_v56  ;;  %v1626_v57 = vpop.f32.mrf.mxu1  ;;  %v1353_v60 = vpop.f32.mrf.mxu3  ;;  %v449_v56 = vrot.slane %v8123_v3, 1 }
 0x127   : > { %v1432_v48 = vadd.f32 %v1353_v60, %v1296_v61 }
 0x128   : > { %4575 = vmatmul.msk.bf16.gmra.mxu2 %vm713_vm1, %v5556_v35  ;;  %v482_v61 = vsel %vm454_vm4, %v449_v56, %v433_v58  ;;  %v466_v12 = vsel %vm454_vm4, %v433_v58, %v449_v56 }
 0x129   : > { %v1564_v23 = vadd.f32 %v1485_v33, %v1432_v48  ;;  %v516_v7 = vsel %vm318_vm5, 0.0, %v482_v61 }
 0x12b   : > { %v1220_v15 = vpop.f32.mrf.mxu2  ;;  %v1490_v13 = vpop.f32.mrf.mxu0  ;;  %v5597_v45 = vadd.f32 %v1621_v16, %v1564_v23  ;;  %4591 = vmatmul.msk.bf16.gmra.mxu3 %vm713_vm1, %v8121_v14 }
 0x12c   : > { %v1297_v39 = vadd.f32 %v1220_v15, %v5387_v9  ;;  %v616_v15 = vpack.c.bf16 %v466_v12, %v466_v12 }
 0x12d   : > { %8120 = vst [vmem:[#allocation61_spill] sm:$0xff] %v5597_v45 }
 0x12e   : > { %v1629_v35 = vpop.f32.mrf.mxu1  ;;  %v1356_v60 = vpop.f32.mrf.mxu3 }
 0x12f   : > { %v1433_v33 = vadd.f32 %v1356_v60, %v1297_v39  ;;  %v617_v39 = vpack.c.bf16 %v516_v7, %v516_v7  ;;  %v8129_v7 = vld [vmem:[#allocation29_spill] sm:$0xff] }
 0x131   : > { %4624 = vmatmul.msk.bf16.gmra.mxu1 %vm713_vm1, %v5603_v63  ;;  %v1565_v23 = vadd.f32 %v1488_v22, %v1433_v33  ;;  %v1131_v33 = vunpack.c.l.b16 %v616_v15  ;;  %v1132_v56 = vunpack.c.l.b16 %v617_v39 }
 0x133   : > { %v1222_v16 = vpop.f32.mrf.mxu2  ;;  %v1493_v9 = vpop.f32.mrf.mxu0  ;;  %v5614_v31 = vadd.f32 %v1624_v19, %v1565_v23  ;;  %v8128_v23 = vld [vmem:[#allocation28_spill] sm:$0xff] }
 0x134   : > { %v1298_v48 = vadd.f32 %v1222_v16, %v5394_v50  ;;  %v8127_v16 = vld [vmem:[#allocation23_spill] sm:$0xff]  ;;  %v434_v12 = vrot.slane %v8128_v23, 1 }
 0x135   : > { %8124 = vst [vmem:[#allocation17_spill] sm:$0xff] %v5614_v31  ;;  %v5627_v31 = vpack.c.b16 %v1132_v56, %v1131_v33  ;;  %v8131_v56 = vld [vmem:[#allocation27_spill] sm:$0xff] }
 0x136   : > { %4608 = vmatmul.msk.bf16.gmra.mxu0 %vm713_vm1, %v8125_v44  ;;  %v1631_v60 = vpop.f32.mrf.mxu1  ;;  %v1358_v3 = vpop.f32.mrf.mxu3  ;;  %v450_v44 = vrot.slane %v8129_v7, 1 }
 0x137   : > { %v1434_v22 = vadd.f32 %v1358_v3, %v1298_v48 }
 0x138   : > { %4576 = vmatmul.msk.bf16.gmra.mxu2 %vm713_vm1, %v5579_v28  ;;  %v483_v48 = vsel %vm454_vm4, %v450_v44, %v434_v12  ;;  %v467_v15 = vsel %vm454_vm4, %v434_v12, %v450_v44 }
 0x139   : > { %v1566_v30 = vadd.f32 %v1490_v13, %v1434_v22  ;;  %v518_v39 = vsel %vm318_vm5, 0.0, %v483_v48 }
 0x13b   : > { %v1225_v58 = vpop.f32.mrf.mxu2  ;;  %v1495_v61 = vpop.f32.mrf.mxu0  ;;  %v5621_v19 = vadd.f32 %v1626_v57, %v1566_v30  ;;  %4592 = vmatmul.msk.bf16.gmra.mxu3 %vm713_vm1, %v8127_v16 }
 0x13c   : > { %v1299_v50 = vadd.f32 %v1225_v58, %v5412_v27  ;;  %v618_v58 = vpack.c.bf16 %v467_v15, %v467_v15 }
 0x13d   : > { %8126 = vst [vmem:[#allocation62_spill] sm:$0xff] %v5621_v19 }
 0x13e   : > { %v1634_v45 = vpop.f32.mrf.mxu1  ;;  %v1361_v3 = vpop.f32.mrf.mxu3 }
 0x13f   : > { %v1435_v13 = vadd.f32 %v1361_v3, %v1299_v50  ;;  %v619_v50 = vpack.c.bf16 %v518_v39, %v518_v39  ;;  %v8134_v39 = vld [vmem:[#allocation36_spill] sm:$0xff] }
 0x141   : > { %4625 = vmatmul.msk.bf16.gmra.mxu1 %vm713_vm1, %v5627_v31  ;;  %v1567_v27 = vadd.f32 %v1493_v9, %v1435_v13  ;;  %v1133_v13 = vunpack.c.l.b16 %v618_v58  ;;  %v1134_v44 = vunpack.c.l.b16 %v619_v50 }
 0x143   : > { %v1227_v57 = vpop.f32.mrf.mxu2  ;;  %v1498_v30 = vpop.f32.mrf.mxu0  ;;  %v5638_v33 = vadd.f32 %v1629_v35, %v1567_v27  ;;  %v8133_v27 = vld [vmem:[#allocation35_spill] sm:$0xff] }
 0x144   : > { %v1300_v22 = vadd.f32 %v1227_v57, %v5420_v4  ;;  %v8132_v57 = vld [vmem:[#allocation30_spill] sm:$0xff]  ;;  %v435_v15 = vrot.slane %v8133_v27, 1 }
 0x145   : > { %8130 = vst [vmem:[#allocation23_spill] sm:$0xff] %v5638_v33  ;;  %v5651_v33 = vpack.c.b16 %v1134_v44, %v1133_v13  ;;  %v8136_v44 = vld [vmem:[#allocation34_spill] sm:$0xff] }
 0x146   : > { %4609 = vmatmul.msk.bf16.gmra.mxu0 %vm713_vm1, %v8131_v56  ;;  %v1636_v3 = vpop.f32.mrf.mxu1  ;;  %v1363_v7 = vpop.f32.mrf.mxu3  ;;  %v451_v56 = vrot.slane %v8134_v39, 1 }
 0x147   : > { %v1436_v9 = vadd.f32 %v1363_v7, %v1300_v22 }
 0x148   : > { %4577 = vmatmul.msk.bf16.gmra.mxu2 %vm713_vm1, %v5603_v63  ;;  %v484_v22 = vsel %vm454_vm4, %v451_v56, %v435_v15  ;;  %v468_v58 = vsel %vm454_vm4, %v435_v15, %v451_v56 }
 0x149   : > { %v1568_v23 = vadd.f32 %v1495_v61, %v1436_v9  ;;  %v520_v50 = vsel %vm318_vm5, 0.0, %v484_v22 }
 0x14b   : > { %v1230_v12 = vpop.f32.mrf.mxu2  ;;  %v1500_v48 = vpop.f32.mrf.mxu0  ;;  %v5645_v35 = vadd.f32 %v1631_v60, %v1568_v23  ;;  %4593 = vmatmul.msk.bf16.gmra.mxu3 %vm713_vm1, %v8132_v57 }
 0x14c   : > { %v1301_v4 = vadd.f32 %v1230_v12, %v5438_v59  ;;  %v620_v12 = vpack.c.bf16 %v468_v58, %v468_v58 }
 0x14e   : > { %v1639_v19 = vpop.f32.mrf.mxu1  ;;  %v1366_v7 = vpop.f32.mrf.mxu3  ;;  %v1135_v56 = vunpack.c.l.b16 %v620_v12 }
 0x14f   : > { %v1437_v61 = vadd.f32 %v1366_v7, %v1301_v4  ;;  %v621_v4 = vpack.c.bf16 %v520_v50, %v520_v50  ;;  %v8140_v50 = vld [vmem:[#allocation43_spill] sm:$0xff] }
 0x151   : > { %4626 = vmatmul.msk.bf16.gmra.mxu1 %vm713_vm1, %v5651_v33  ;;  %v1569_v60 = vadd.f32 %v1498_v30, %v1437_v61  ;;  %v1136_v15 = vunpack.c.l.b16 %v621_v4 }
 0x153   : > { %v1232_v59 = vpop.f32.mrf.mxu2  ;;  %v1503_v23 = vpop.f32.mrf.mxu0  ;;  %v5662_v13 = vadd.f32 %v1634_v45, %v1569_v60  ;;  %v8139_v60 = vld [vmem:[#allocation42_spill] sm:$0xff] }
 0x154   : > { %v1302_v9 = vadd.f32 %v1232_v59, %v5446_v10  ;;  %v8138_v59 = vld [vmem:[#allocation37_spill] sm:$0xff]  ;;  %v436_v58 = vrot.slane %v8139_v60, 1 }
 0x155   : > { %8135 = vst [vmem:[#allocation30_spill] sm:$0xff] %v5662_v13 }
 0x156   : > { %4610 = vmatmul.msk.bf16.gmra.mxu0 %vm713_vm1, %v8136_v44  ;;  %v5666_v7 = vpop.f32.mrf.mxu1  ;;  %v1368_v39 = vpop.f32.mrf.mxu3  ;;  %v5677_v44 = vpack.c.b16 %v1136_v15, %v1135_v56 }
 0x157   : > { %8137 = vst [vmem:[#allocation63_spill] sm:$0xff] %v5666_v7  ;;  %v1438_v30 = vadd.f32 %v1368_v39, %v1302_v9  ;;  %v452_v7 = vrot.slane %v8140_v50, 1 }
 0x158   : > { %4578 = vmatmul.msk.bf16.gmra.mxu2 %vm713_vm1, %v5627_v31 }
 0x159   : > { %v1570_v22 = vadd.f32 %v1500_v48, %v1438_v30  ;;  %v485_v9 = vsel %vm454_vm4, %v452_v7, %v436_v58  ;;  %v469_v4 = vsel %vm454_vm4, %v436_v58, %v452_v7 }
 0x15a   : > { %v522_v30 = vsel %vm318_vm5, 0.0, %v485_v9 }
 0x15b   : > { %v1235_v61 = vpop.f32.mrf.mxu2  ;;  %v1505_v27 = vpop.f32.mrf.mxu0  ;;  %v5671_v45 = vadd.f32 %v1636_v3, %v1570_v22  ;;  %4594 = vmatmul.msk.bf16.gmra.mxu3 %vm713_vm1, %v8138_v59  ;;  %v622_v22 = vpack.c.bf16 %v469_v4, %v469_v4  ;;  %v8146_v4 = vld [vmem:[#allocation44_spill] sm:$0xff] }
 0x15c   : > { %v1303_v10 = vadd.f32 %v1235_v61, %v5464_v26  ;;  %v8141_v61 = vld [vmem:[#allocation41_spill] sm:$0xff] }
 0x15d   : > { %v1137_v58 = vunpack.c.l.b16 %v622_v22 }
 0x15e   : > { %v1644_v13 = vpop.f32.mrf.mxu1  ;;  %v1371_v39 = vpop.f32.mrf.mxu3 }
 0x15f   : > { %v1439_v48 = vadd.f32 %v1371_v39, %v1303_v10  ;;  %v623_v10 = vpack.c.bf16 %v522_v30, %v522_v30 }
 0x161   : > { %4627 = vmatmul.msk.bf16.gmra.mxu1 %vm713_vm1, %v5677_v44  ;;  %v1571_v3 = vadd.f32 %v1503_v23, %v1439_v48  ;;  %v1138_v9 = vunpack.c.l.b16 %v623_v10 }
 0x163   : > { %v1237_v26 = vpop.f32.mrf.mxu2  ;;  %v1508_v12 = vpop.f32.mrf.mxu0  ;;  %v5688_v15 = vadd.f32 %v1639_v19, %v1571_v3  ;;  %v5703_v3 = vld [vmem:[%s4927_s12 + $0xf8] sm:$0xff] }
 0x164   : > { %v1304_v56 = vadd.f32 %v1237_v26, %v5472_v43  ;;  %v5700_v26 = vld [vmem:[%s4927_s12 + $0xf0] sm:$0xff]  ;;  %8145 = vst [vmem:[#allocation66_spill] sm:$0xff] %v5703_v3  ;;  %v453_v60 = vrot.slane %v5703_v3, 1 }
 0x165   : > { %8144 = vst [vmem:[#allocation65_spill] sm:$0xff] %v5700_v26  ;;  %v437_v30 = vrot.slane %v5700_v26, 1 }
 0x166   : > { %4611 = vmatmul.msk.bf16.gmra.mxu0 %vm713_vm1, %v8141_v61  ;;  %v1373_v39 = vpop.f32.mrf.mxu3  ;;  %v5694_v23 = vpop.f32.mrf.mxu1  ;;  %v334_v61 = vrot.slane %v5700_v26, 7 }
 0x167   : > { %8142 = vst [vmem:[#allocation37_spill] sm:$0xff] %v5694_v23  ;;  %v1440_v7 = vadd.f32 %v1373_v39, %v1304_v56  ;;  %v5709_v56 = vpack.c.b16 %v1138_v9, %v1137_v58  ;;  %v470_v23 = vsel %vm454_vm4, %v437_v30, %v453_v60 }
 0x168   : > { %4579 = vmatmul.msk.bf16.gmra.mxu2 %vm713_vm1, %v5651_v33 }
 0x169   : > { %v5696_v50 = vadd.f32 %v1505_v27, %v1440_v7  ;;  %v486_v27 = vsel %vm454_vm4, %v453_v60, %v437_v30  ;;  %v556_v30 = vpack.c.bf16 %v5700_v26, %v5700_v26 }
 0x16b   : > { %v1240_v48 = vpop.f32.mrf.mxu2  ;;  %8143 = vst [vmem:[#allocation64_spill] sm:$0xff] %v5696_v50  ;;  %v1510_v43 = vpop.f32.mrf.mxu0  ;;  %4595 = vmatmul.msk.bf16.gmra.mxu3 %vm713_vm1, %v8146_v4  ;;  %v524_v50 = vsel %vm318_vm5, 0.0, %v486_v27 }
 0x16c   : > { %v1305_v19 = vadd.f32 %v1240_v48, %v5490_v62 }
 0x16e   : > { %v1376_v22 = vpop.f32.mrf.mxu3  ;;  %v1649_v39 = vpop.f32.mrf.mxu1 }
 0x16f   : > { %v1441_v10 = vadd.f32 %v1376_v22, %v1305_v19  ;;  %v624_v19 = vpack.c.bf16 %v470_v23, %v470_v23  ;;  %v625_v22 = vpack.c.bf16 %v524_v50, %v524_v50 }
 0x171   : > { %4628 = vmatmul.msk.bf16.gmra.mxu1 %vm713_vm1, %v5709_v56  ;;  %v1573_v7 = vadd.f32 %v1508_v12, %v1441_v10  ;;  %v350_v12 = vrot.slane %v5703_v3, 7  ;;  %v1598_v27 = vunpack.c.l.b16 %v625_v22  ;;  %v1465_v22 = vunpack.c.l.b16 %v556_v30 }
 0x173   : > { %v1242_v62 = vpop.f32.mrf.mxu2  ;;  %v1513_v48 = vpop.f32.mrf.mxu0  ;;  %v5720_v9 = vadd.f32 %v1644_v13, %v1573_v7  ;;  %v1597_v13 = vunpack.c.l.b16 %v624_v19  ;;  %v383_v7 = vsel %vm351_vm2, %v350_v12, %v334_v61 }
 0x174   : > { %v1306_v58 = vadd.f32 %v1242_v62, %v5498_v17  ;;  %v557_v17 = vpack.c.bf16 %v5703_v3, %v5703_v3  ;;  %v420_v19 = vsel %vm315_vm3, 0.0, %v383_v7 }
 0x175   : > { %8147 = vst [vmem:[#allocation44_spill] sm:$0xff] %v5720_v9  ;;  %v590_v26 = vpack.c.bf16 %v420_v19, %v420_v19 }
 0x176   : > { %4612 = vmatmul.msk.bf16.gmra.mxu0 %vm713_vm1, %v5343_v46  ;;  %v1378_v10 = vpop.f32.mrf.mxu3  ;;  %v5737_v46 = vpop.f32.mrf.mxu1 }
 0x177   : > { %v1442_v60 = vadd.f32 %v1378_v10, %v1306_v58  ;;  %8149 = vst [vmem:[#allocation68_spill] sm:$0xff] %v5737_v46  ;;  %v367_v58 = vsel %vm351_vm2, %v334_v61, %v350_v12  ;;  %v5745_v10 = vpack.c.b16 %v1598_v27, %v1597_v13  ;;  %v1329_v30 = vunpack.c.l.b16 %v590_v26 }
 0x178   : > { %4580 = vmatmul.msk.bf16.gmra.mxu2 %vm713_vm1, %v5677_v44 }
 0x179   : > { %v5732_v23 = vadd.f32 %v1510_v43, %v1442_v60  ;;  %v1466_v43 = vunpack.c.l.b16 %v557_v17 }
 0x17b   : > { %v1245_v62 = vpop.f32.mrf.mxu2  ;;  %8148 = vst [vmem:[#allocation67_spill] sm:$0xff] %v5732_v23  ;;  %v1515_v50 = vpop.f32.mrf.mxu0  ;;  %4596 = vmatmul.msk.bf16.gmra.mxu3 %vm713_vm1, %v5350_v0  ;;  %v591_v23 = vpack.c.bf16 %v367_v58, %v367_v58 }
 0x17c   : > { %v1307_v11 = vadd.f32 %v1245_v62, %v5516_v18  ;;  %v5747_v18 = vpack.c.b16 %v1466_v43, %v1465_v22 }
 0x17d   : > { %v1330_v17 = vunpack.c.l.b16 %v591_v23 }
 0x17e   : > { %v1381_v60 = vpop.f32.mrf.mxu3 }
 0x17f   : > { %v1443_v3 = vadd.f32 %v1381_v60, %v1307_v11  ;;  %v1654_v11 = vpop.f32.mrf.mxu1  ;;  %v5758_v7 = vpack.c.b16 %v1330_v17, %v1329_v30 }
 0x181   : > { %4629 = vmatmul.msk.bf16.gmra.mxu1 %vm713_vm1, %v5745_v10  ;;  %v1575_v46 = vadd.f32 %v1513_v48, %v1443_v3 }
 0x183   : > { %v1247_v62 = vpop.f32.mrf.mxu2  ;;  %v1518_v9 = vpop.f32.mrf.mxu0  ;;  %v5752_v12 = vadd.f32 %v1649_v39, %v1575_v46 }
 0x184   : > { %v1308_v61 = vadd.f32 %v1247_v62, %v5524_v38 }
 0x186   : > { %4613 = vmatmul.msk.bf16.gmra.mxu0 %vm713_vm1, %v5747_v18  ;;  %v1383_v13 = vpop.f32.mrf.mxu3 }
 0x187   : > { %v1444_v27 = vadd.f32 %v1383_v13, %v1308_v61  ;;  %v5765_v26 = vpop.f32.mrf.mxu1 }
 0x188   : > { %4581 = vmatmul.msk.bf16.gmra.mxu2 %vm713_vm1, %v5709_v56 }
 0x189   : > { %v5760_v3 = vadd.f32 %v1515_v50, %v1444_v27 }
 0x18b   : > { %v1250_v58 = vpop.f32.mrf.mxu2  ;;  %v1520_v48 = vpop.f32.mrf.mxu0  ;;  %4597 = vmatmul.msk.bf16.gmra.mxu3 %vm713_vm1, %v5758_v7 }
 0x18c   : > { %v1309_v38 = vadd.f32 %v1250_v58, %v5542_v40 }
 0x18e   : > { %v1386_v46 = vpop.f32.mrf.mxu3 }
 0x18f   : > { %v1445_v39 = vadd.f32 %v1386_v46, %v1309_v38  ;;  %v1659_v62 = vpop.f32.mrf.mxu1 }
 0x191   : > { %v1577_v19 = vadd.f32 %v1518_v9, %v1445_v39 }
 0x193   : > { %v1252_v23 = vpop.f32.mrf.mxu2  ;;  %v1523_v22 = vpop.f32.mrf.mxu0  ;;  %v5768_v60 = vadd.f32 %v1654_v11, %v1577_v19 }
 0x194   : > { %v1310_v43 = vadd.f32 %v1252_v23, %v5550_v24 }
 0x196   : > { %4662 = vmatmul.msk.bf16.vlgmr.msra.gmra.mxu0 %vm713_vm1, %v5375_v21  ;;  %v1388_v50 = vpop.f32.mrf.mxu3 }
 0x197   : > { %v1446_v40 = vadd.f32 %v1388_v50, %v1310_v43  ;;  %v5780_v38 = vpop.f32.mrf.mxu1 }
 0x198   : > { %4630 = vmatmul.msk.bf16.vlgmr.msra.gmra.mxu2 %vm713_vm1, %v5058_v42 }
 0x199   : > { %v5774_v30 = vadd.f32 %v1520_v48, %v1446_v40 }
 0x19b   : > { %v1255_v61 = vpop.f32.mrf.mxu2  ;;  %v1525_v17 = vpop.f32.mrf.mxu0  ;;  %4646 = vmatmul.msk.bf16.vlgmr.msra.gmra.mxu3 %vm713_vm1, %v5066_v52 }
 0x19c   : > { %v1311_v9 = vadd.f32 %v1255_v61, %v5379_v1 }
 0x19e   : > { %v1391_v24 = vpop.f32.mrf.mxu3 }
 0x19f   : > { %v1447_v11 = vadd.f32 %v1391_v24, %v1311_v9 }
 0x1a1   : > { %v1579_v27 = vadd.f32 %v1523_v22, %v1447_v11  ;;  %v8150_v11 = vld [vmem:[#allocation26_spill] sm:$0xff] }
 0x1a3   : > { %v1257_v13 = vpop.f32.mrf.mxu2  ;;  %v1528_v21 = vpop.f32.mrf.mxu0  ;;  %v5782_v42 = vadd.f32 %v1659_v62, %v1579_v27 }
 0x1a4   : > { %v1312_v58 = vadd.f32 %v1257_v13, %v5392_v51  ;;  %v1664_v51 = vpop.f32.mrf.mxu1 }
 0x1a6   : > { %4663 = vmatmul.msk.bf16.gmra.mxu0 %vm713_vm1, %v5400_v6  ;;  %v1393_v48 = vpop.f32.mrf.mxu3 }
 0x1a7   : > { %v1448_v1 = vadd.f32 %v1393_v48, %v1312_v58  ;;  %v8151_v48 = vld [vmem:[#allocation48_spill] sm:$0xff] }
 0x1a8   : > { %4631 = vmatmul.msk.bf16.gmra.mxu2 %vm713_vm1, %v5112_v34 }
 0x1a9   : > { %v5788_v46 = vadd.f32 %v1525_v17, %v1448_v1 }
 0x1ab   : > { %v1260_v52 = vpop.f32.mrf.mxu2  ;;  %v1530_v39 = vpop.f32.mrf.mxu0  ;;  %4647 = vmatmul.msk.bf16.gmra.mxu3 %vm713_vm1, %v5118_v41 }
 0x1ac   : > { %v1313_v23 = vadd.f32 %v1260_v52, %v5404_v53  ;;  %v5800_v53 = vpop.f32.mrf.mxu1 }
 0x1ae   : > { %v1396_v19 = vpop.f32.mrf.mxu3 }
 0x1af   : > { %v1449_v22 = vadd.f32 %v1396_v19, %v1313_v23  ;;  %v8152_v19 = vld [vmem:[#allocation49_spill] sm:$0xff] }
 0x1b1   : > { %v1581_v50 = vadd.f32 %v1528_v21, %v1449_v22 }
 0x1b3   : > { %v1262_v43 = vpop.f32.mrf.mxu2  ;;  %v1533_v6 = vpop.f32.mrf.mxu0  ;;  %v5794_v62 = vadd.f32 %v1664_v51, %v1581_v50 }
 0x1b4   : > { %v1314_v40 = vadd.f32 %v1262_v43, %v5418_v36  ;;  %v1669_v27 = vpop.f32.mrf.mxu1  ;;  %v8153_v43 = vld [vmem:[#allocation33_spill] sm:$0xff] }
 0x1b6   : > { %4664 = vmatmul.msk.bf16.gmra.mxu0 %vm713_vm1, %v5426_v2  ;;  %v1398_v34 = vpop.f32.mrf.mxu3 }
 0x1b7   : > { %v1450_v41 = vadd.f32 %v1398_v34, %v1314_v40 }
 0x1b8   : > { %4632 = vmatmul.msk.bf16.gmra.mxu2 %vm713_vm1, %v5164_v29 }
 0x1b9   : > { %v5802_v17 = vadd.f32 %v1530_v39, %v1450_v41  ;;  %v8154_v41 = vld [vmem:[#allocation50_spill] sm:$0xff] }
 0x1bb   : > { %v1265_v61 = vpop.f32.mrf.mxu2  ;;  %v1535_v9 = vpop.f32.mrf.mxu0  ;;  %4648 = vmatmul.msk.bf16.gmra.mxu3 %vm713_vm1, %v8150_v11 }
 0x1bc   : > { %v1315_v24 = vadd.f32 %v1265_v61, %v5430_v32 }
 0x1be   : > { %v1401_v36 = vpop.f32.mrf.mxu3 }
 0x1bf   : > { %v1451_v13 = vadd.f32 %v1401_v36, %v1315_v24 }
 0x1c1   : > { %v1583_v21 = vadd.f32 %v1533_v6, %v1451_v13  ;;  %v8155_v13 = vld [vmem:[#allocation51_spill] sm:$0xff] }
 0x1c3   : > { %v1267_v2 = vpop.f32.mrf.mxu2  ;;  %v1538_v58 = vpop.f32.mrf.mxu0  ;;  %v5808_v1 = vadd.f32 %v1669_v27, %v1583_v21 }
 0x1c4   : > { %v1316_v29 = vadd.f32 %v1267_v2, %v8151_v48  ;;  %v8156_v2 = vld [vmem:[#allocation40_spill] sm:$0xff] }
 0x1c6   : > { %4665 = vmatmul.msk.bf16.gmra.mxu0 %vm713_vm1, %v5452_v55  ;;  %v1403_v52 = vpop.f32.mrf.mxu3 }
 0x1c7   : > { %v1452_v32 = vadd.f32 %v1403_v52, %v1316_v29  ;;  %v8157_v52 = vld [vmem:[#allocation52_spill] sm:$0xff] }
 0x1c8   : > { %4633 = vmatmul.msk.bf16.gmra.mxu2 %vm713_vm1, %v5216_v49 }
 0x1c9   : > { %v5814_v23 = vadd.f32 %v1535_v9, %v1452_v32 }
 0x1cb   : > { %v1270_v39 = vpop.f32.mrf.mxu2  ;;  %v1540_v51 = vpop.f32.mrf.mxu0  ;;  %4649 = vmatmul.msk.bf16.gmra.mxu3 %vm713_vm1, %v8153_v43  ;;  %v8159_v43 = vld [vmem:[#allocation53_spill] sm:$0xff] }
 0x1cc   : > { %v1317_v22 = vadd.f32 %v1270_v39, %v8152_v19 }
 0x1ce   : > { %v1406_v50 = vpop.f32.mrf.mxu3 }
 0x1cf   : > { %v1453_v6 = vadd.f32 %v1406_v50, %v1317_v22 }
 0x1d1   : > { %v5819_v34 = vadd.f32 %v1538_v58, %v1453_v6  ;;  %v8160_v6 = vld [vmem:[#allocation46_spill] sm:$0xff] }
 0x1d3   : > { %v1272_v40 = vpop.f32.mrf.mxu2  ;;  %v1543_v55 = vpop.f32.mrf.mxu0 }
 0x1d4   : > { %v1318_v61 = vadd.f32 %v1272_v40, %v8154_v41 }
 0x1d6   : > { %4666 = vmatmul.msk.bf16.gmra.mxu0 %vm713_vm1, %v5478_v37  ;;  %v1408_v49 = vpop.f32.mrf.mxu3 }
 0x1d7   : > { %v1454_v9 = vadd.f32 %v1408_v49, %v1318_v61  ;;  %v8162_v49 = vld [vmem:[#allocation54_spill] sm:$0xff] }
 0x1d8   : > { %4634 = vmatmul.msk.bf16.gmra.mxu2 %vm713_vm1, %v5268_v20 }
 0x1d9   : > { %v5826_v11 = vadd.f32 %v1540_v51, %v1454_v9 }
 0x1db   : > { %v1275_v24 = vpop.f32.mrf.mxu2  ;;  %v1545_v36 = vpop.f32.mrf.mxu0  ;;  %4650 = vmatmul.msk.bf16.gmra.mxu3 %vm713_vm1, %v8156_v2  ;;  %v8164_v2 = vld [vmem:[#allocation55_spill] sm:$0xff] }
 0x1dc   : > { %v1319_v27 = vadd.f32 %v1275_v24, %v8155_v13 }
 0x1de   : > { %v1411_v21 = vpop.f32.mrf.mxu3 }
 0x1df   : > { %v1455_v58 = vadd.f32 %v1411_v21, %v1319_v27 }
 0x1e1   : > { %v5831_v29 = vadd.f32 %v1543_v55, %v1455_v58  ;;  %v8165_v58 = vld [vmem:[#allocation8_spill] sm:$0xff] }
 0x1e3   : > { %v1277_v48 = vpop.f32.mrf.mxu2  ;;  %v1548_v37 = vpop.f32.mrf.mxu0 }
 0x1e4   : > { %v1320_v32 = vadd.f32 %v1277_v48, %v8157_v52 }
 0x1e6   : > { %4667 = vmatmul.msk.bf16.gmra.mxu0 %vm713_vm1, %v5504_v5  ;;  %v1413_v20 = vpop.f32.mrf.mxu3 }
 0x1e7   : > { %v1456_v39 = vadd.f32 %v1413_v20, %v1320_v32  ;;  %v8167_v20 = vld [vmem:[#allocation56_spill] sm:$0xff] }
 0x1e8   : > { %4635 = vmatmul.msk.bf16.gmra.mxu2 %vm713_vm1, %v5323_v54 }
 0x1e9   : > { %v5838_v19 = vadd.f32 %v1545_v36, %v1456_v39 }
 0x1eb   : > { %v1280_v51 = vpop.f32.mrf.mxu2  ;;  %8158 = vst [vmem:[#allocation26_spill] sm:$0xff] %v5838_v19  ;;  %v1550_v22 = vpop.f32.mrf.mxu0  ;;  %4651 = vmatmul.msk.bf16.gmra.mxu3 %vm713_vm1, %v8160_v6 }
 0x1ec   : > { %v1321_v50 = vadd.f32 %v1280_v51, %v8159_v43  ;;  %v8168_v51 = vld [vmem:[#allocation57_spill] sm:$0xff] }
 0x1ee   : > { %v1416_v40 = vpop.f32.mrf.mxu3 }
 0x1ef   : > { %v1457_v55 = vadd.f32 %v1416_v40, %v1321_v50 }
 0x1f1   : > { %v5843_v61 = vadd.f32 %v1548_v37, %v1457_v55  ;;  %v8171_v55 = vld [vmem:[#allocation58_spill] sm:$0xff] }
 0x1f3   : > { %v1282_v41 = vpop.f32.mrf.mxu2  ;;  %8161 = vst [vmem:[#allocation48_spill] sm:$0xff] %v5843_v61  ;;  %v1553_v5 = vpop.f32.mrf.mxu0 }
 0x1f4   : > { %v1322_v9 = vadd.f32 %v1282_v41, %v8162_v49  ;;  %v8172_v49 = vld [vmem:[#allocation9_spill] sm:$0xff] }
 0x1f6   : > { %4668 = vmatmul.msk.bf16.gmra.mxu0 %vm713_vm1, %v5530_v25  ;;  %v1418_v54 = vpop.f32.mrf.mxu3 }
 0x1f7   : > { %v1458_v24 = vadd.f32 %v1418_v54, %v1322_v9 }
 0x1f8   : > { %4636 = vmatmul.msk.bf16.gmra.mxu2 %vm713_vm1, %v4986_v47 }
 0x1f9   : > { %v5850_v13 = vadd.f32 %v1550_v22, %v1458_v24  ;;  %v8169_v22 = vld [vmem:[#allocation12_spill] sm:$0xff] }
 0x1fb   : > { %v1285_v36 = vpop.f32.mrf.mxu2  ;;  %8163 = vst [vmem:[#allocation49_spill] sm:$0xff] %v5850_v13  ;;  %v1555_v27 = vpop.f32.mrf.mxu0  ;;  %4652 = vmatmul.msk.bf16.gmra.mxu3 %vm713_vm1, %v8165_v58 }
 0x1fc   : > { %v1323_v21 = vadd.f32 %v1285_v36, %v8164_v2  ;;  %v8174_v2 = vld [vmem:[#allocation59_spill] sm:$0xff] }
 0x1fe   : > { %v1421_v48 = vpop.f32.mrf.mxu3 }
 0x1ff   : > { %v1459_v37 = vadd.f32 %v1421_v48, %v1323_v21 }
 0x201   : > { %v5855_v32 = vadd.f32 %v1553_v5, %v1459_v37 }
 0x203   : > { %v1287_v52 = vpop.f32.mrf.mxu2  ;;  %8166 = vst [vmem:[#allocation33_spill] sm:$0xff] %v5855_v32  ;;  %v1558_v25 = vpop.f32.mrf.mxu0 }
 0x204   : > { %v1324_v39 = vadd.f32 %v1287_v52, %v8167_v20  ;;  %v8176_v20 = vld [vmem:[#allocation60_spill] sm:$0xff] }
 0x206   : > { %4669 = vmatmul.msk.bf16.gmra.mxu0 %vm713_vm1, %v8168_v51  ;;  %v1423_v47 = vpop.f32.mrf.mxu3  ;;  %v8177_v51 = vld [vmem:[#allocation14_spill] sm:$0xff] }
 0x207   : > { %v1460_v43 = vadd.f32 %v1423_v47, %v1324_v39 }
 0x208   : > { %4637 = vmatmul.msk.bf16.gmra.mxu2 %vm713_vm1, %v8169_v22 }
 0x209   : > { %v5862_v6 = vadd.f32 %v1555_v27, %v1460_v43 }
 0x20b   : > { %v1290_v50 = vpop.f32.mrf.mxu2  ;;  %8170 = vst [vmem:[#allocation50_spill] sm:$0xff] %v5862_v6  ;;  %v1560_v40 = vpop.f32.mrf.mxu0  ;;  %4653 = vmatmul.msk.bf16.gmra.mxu3 %vm713_vm1, %v8172_v49 }
 0x20c   : > { %v1325_v41 = vadd.f32 %v1290_v50, %v8171_v55  ;;  %v8179_v50 = vld [vmem:[#allocation61_spill] sm:$0xff] }
 0x20e   : > { %v1426_v5 = vpop.f32.mrf.mxu3 }
 0x20f   : > { %v1461_v9 = vadd.f32 %v1426_v5, %v1325_v41 }
 0x211   : > { %v5867_v24 = vadd.f32 %v1558_v25, %v1461_v9  ;;  %v8181_v9 = vld [vmem:[#allocation17_spill] sm:$0xff] }
 0x213   : > { %v1292_v54 = vpop.f32.mrf.mxu2  ;;  %8173 = vst [vmem:[#allocation51_spill] sm:$0xff] %v5867_v24  ;;  %v1995_v36 = vpop.f32.mrf.mxu0 }
 0x214   : > { %v1326_v21 = vadd.f32 %v1292_v54, %v8174_v2 }
 0x216   : > { %4670 = vmatmul.msk.bf16.gmra.mxu0 %vm713_vm1, %v5579_v28  ;;  %v1428_v58 = vpop.f32.mrf.mxu3 }
 0x217   : > { %v1462_v27 = vadd.f32 %v1428_v58, %v1326_v21  ;;  %v5894_v21 = vld [vmem:[%s7940_s4] sm:$0xf] }
 0x218   : > { %4638 = vmatmul.msk.bf16.gmra.mxu2 %vm713_vm1, %v8121_v14  ;;  %8183 = vst [vmem:[#allocation46_spill] sm:$0xff] %v5894_v21  ;;  %v2769_v58 = vunpack.c.l.b16 %v5894_v21 }
 0x219   : > { %v5874_v48 = vadd.f32 %v1560_v40, %v1462_v27 }
 0x21b   : > { %8175 = vst [vmem:[#allocation40_spill] sm:$0xff] %v5874_v48  ;;  %v1743_v37 = vpop.f32.mrf.mxu2  ;;  %v1997_v52 = vpop.f32.mrf.mxu0  ;;  %4654 = vmatmul.msk.bf16.gmra.mxu3 %vm713_vm1, %v8177_v51 }
 0x21c   : > { %v1823_v39 = vadd.f32 %v1743_v37, %v8176_v20  ;;  %v8185_v20 = vld [vmem:[#allocation62_spill] sm:$0xff] }
 0x21e   : > { %v1871_v25 = vpop.f32.mrf.mxu3 }
 0x21f   : > { %v1951_v47 = vadd.f32 %v1871_v25, %v1823_v39 }
 0x221   : > { %v5879_v22 = vadd.f32 %v1995_v36, %v1951_v47  ;;  %v8182_v36 = vld [vmem:[#allocation20_spill] sm:$0xff] }
 0x223   : > { %8178 = vst [vmem:[#allocation52_spill] sm:$0xff] %v5879_v22  ;;  %v1745_v43 = vpop.f32.mrf.mxu2  ;;  %v2000_v28 = vpop.f32.mrf.mxu0  ;;  %v2109_v13 = vsel %vm713_vm1, %v5879_v22, 0.0 }
 0x224   : > { %v1824_v55 = vadd.f32 %v1745_v43, %v8179_v50 }
 0x226   : > { %4671 = vmatmul.msk.bf16.gmra.mxu0 %vm713_vm1, %v5603_v63  ;;  %v1873_v14 = vpop.f32.mrf.mxu3 }
 0x227   : > { %v1952_v40 = vadd.f32 %v1873_v14, %v1824_v55  ;;  %v8186_v14 = vld [vmem:[#allocation3_spill] sm:$0xff] }
 0x228   : > { %4639 = vmatmul.msk.bf16.gmra.mxu2 %vm713_vm1, %v8127_v16 }
 0x229   : > { %v5886_v41 = vadd.f32 %v1997_v52, %v1952_v40  ;;  %v2770_v52 = vpack.c.b16 %v2769_v58, %v2769_v58  ;;  %v8187_v40 = vld [vmem:[#allocation23_spill] sm:$0xff] }
 0x22b   : > { %8180 = vst [vmem:[#allocation53_spill] sm:$0xff] %v5886_v41  ;;  %v1748_v49 = vpop.f32.mrf.mxu2  ;;  %v2002_v5 = vpop.f32.mrf.mxu0  ;;  %4655 = vmatmul.msk.bf16.gmra.mxu3 %vm713_vm1, %v8182_v36  ;;  %v2771_v51 = vrot.slane %v2770_v52, 2  ;;  %v2110_v32 = vsel %vm713_vm1, %v5886_v41, 0.0 }
 0x22c   : > { %v1825_v54 = vadd.f32 %v1748_v49, %v8181_v9  ;;  %v8188_v9 = vld [vmem:[#allocation27_spill] sm:$0xff]  ;;  %v2111_v61 = vadd.f32 %v2110_v32, %v2109_v13 }
 0x22d   : > { %v2818_v25 = vsel %vm762_vm0, %v2771_v51, 0 }
 0x22e   : > { %v1876_v2 = vpop.f32.mrf.mxu3  ;;  %2827 = vmatpush.bf16.msra.mxu1 %v2818_v25 }
 0x22f   : > { %v1953_v63 = vadd.f32 %v1876_v2, %v1825_v54 }
 0x231   : > { %v5897_v16 = vadd.f32 %v2000_v28, %v1953_v63  ;;  %4678 = vmatmul.msk.bf16.vlgmr.msra.gmra.mxu1 %vm713_vm1, %v8186_v14 }
 0x233   : > { %8184 = vst [vmem:[#allocation54_spill] sm:$0xff] %v5897_v16  ;;  %v1750_v27 = vpop.f32.mrf.mxu2  ;;  %v2005_v37 = vpop.f32.mrf.mxu0 }
 0x234   : > { %v1826_v39 = vadd.f32 %v1750_v27, %v8185_v20 }
 0x236   : > { %4672 = vmatmul.msk.bf16.gmra.mxu0 %vm713_vm1, %v5627_v31  ;;  %v1878_v47 = vpop.f32.mrf.mxu3 }
 0x237   : > { %v1954_v43 = vadd.f32 %v1878_v47, %v1826_v39  ;;  %v8189_v39 = vld [vmem:[#allocation30_spill] sm:$0xff] }
 0x238   : > { %4640 = vmatmul.msk.bf16.gmra.mxu2 %vm713_vm1, %v8132_v57 }
 0x239   : > { %v5905_v50 = vadd.f32 %v2002_v5, %v1954_v43 }
 0x23b   : > { %v1753_v28 = vpop.f32.mrf.mxu2  ;;  %v2007_v55 = vpop.f32.mrf.mxu0  ;;  %4656 = vmatmul.msk.bf16.gmra.mxu3 %vm713_vm1, %v8188_v9 }
 0x23c   : > { %v1827_v49 = vadd.f32 %v1753_v28, %v8187_v40 }
 0x23e   : > { %v1881_v31 = vpop.f32.mrf.mxu3 }
 0x23f   : > { %v1955_v54 = vadd.f32 %v1881_v31, %v1827_v49 }
 0x241   : > { %v5912_v36 = vadd.f32 %v2005_v37, %v1955_v54  ;;  %v8190_v37 = vld [vmem:[#allocation34_spill] sm:$0xff]  ;;  %v8191_v54 = vld [vmem:[#allocation41_spill] sm:$0xff] }
 0x243   : > { %v1755_v2 = vpop.f32.mrf.mxu2  ;;  %v2010_v57 = vpop.f32.mrf.mxu0 }
 0x244   : > { %v1828_v63 = vadd.f32 %v1755_v2, %v5645_v35 }
 0x246   : > { %4673 = vmatmul.msk.bf16.gmra.mxu0 %vm713_vm1, %v5651_v33  ;;  %v1883_v5 = vpop.f32.mrf.mxu3 }
 0x247   : > { %v1956_v58 = vadd.f32 %v1883_v5, %v1828_v63 }
 0x248   : > { %4641 = vmatmul.msk.bf16.gmra.mxu2 %vm713_vm1, %v8138_v59 }
 0x249   : > { %v5919_v27 = vadd.f32 %v2007_v55, %v1956_v58  ;;  %v8192_v58 = vld [vmem:[#allocation44_spill] sm:$0xff] }
 0x24b   : > { %v1758_v52 = vpop.f32.mrf.mxu2  ;;  %v2012_v20 = vpop.f32.mrf.mxu0  ;;  %4657 = vmatmul.msk.bf16.gmra.mxu3 %vm713_vm1, %v8190_v37 }
 0x24c   : > { %v1829_v51 = vadd.f32 %v1758_v52, %v8189_v39 }
 0x24e   : > { %v1886_v25 = vpop.f32.mrf.mxu3 }
 0x24f   : > { %v1957_v47 = vadd.f32 %v1886_v25, %v1829_v51 }
 0x251   : > { %v5924_v35 = vadd.f32 %v2010_v57, %v1957_v47 }
 0x253   : > { %v1760_v43 = vpop.f32.mrf.mxu2  ;;  %v2015_v33 = vpop.f32.mrf.mxu0  ;;  %v2185_v32 = vmul.f32 %v5924_v35, %v5924_v35 }
 0x254   : > { %v1830_v28 = vadd.f32 %v1760_v43, %v5671_v45 }
 0x256   : > { %4674 = vmatmul.msk.bf16.gmra.mxu0 %vm713_vm1, %v5677_v44  ;;  %v1888_v59 = vpop.f32.mrf.mxu3 }
 0x257   : > { %v1958_v55 = vadd.f32 %v1888_v59, %v1830_v28 }
 0x258   : > { %4642 = vmatmul.msk.bf16.gmra.mxu2 %vm713_vm1, %v8146_v4 }
 0x259   : > { %v5931_v40 = vadd.f32 %v2012_v20, %v1958_v55  ;;  %v8193_v20 = vld [vmem:[#allocation47_spill] sm:$0xff] }
 0x25b   : > { %v1763_v49 = vpop.f32.mrf.mxu2  ;;  %v5933_v9 = vpop.f32.mrf.mxu0  ;;  %4658 = vmatmul.msk.bf16.gmra.mxu3 %vm713_vm1, %v8191_v54 }
 0x25c   : > { %v1831_v31 = vadd.f32 %v1763_v49, %v5688_v15 }
 0x25e   : > { %v1891_v2 = vpop.f32.mrf.mxu3 }
 0x25f   : > { %v1959_v45 = vadd.f32 %v1891_v2, %v1831_v31 }
 0x261   : > { %v5938_v57 = vadd.f32 %v2015_v33, %v1959_v45 }
 0x263   : > { %v5940_v44 = vpop.f32.mrf.mxu2  ;;  %v2020_v63 = vpop.f32.mrf.mxu0 }
 0x266   : > { %4675 = vmatmul.msk.bf16.gmra.mxu0 %vm713_vm1, %v5709_v56  ;;  %v5944_v4 = vpop.f32.mrf.mxu3 }
 0x268   : > { %4643 = vmatmul.msk.bf16.gmra.mxu2 %vm713_vm1, %v5350_v0 }
 0x26b   : > { %v1768_v5 = vpop.f32.mrf.mxu2  ;;  %v5948_v15 = vpop.f32.mrf.mxu0  ;;  %4659 = vmatmul.msk.bf16.gmra.mxu3 %vm713_vm1, %v8193_v20 }
 0x26c   : > { %v1833_v52 = vadd.f32 %v1768_v5, %v8192_v58 }
 0x26e   : > { %v1896_v39 = vpop.f32.mrf.mxu3 }
 0x26f   : > { %v1961_v51 = vadd.f32 %v1896_v39, %v1833_v52 }
 0x271   : > { %v5953_v37 = vadd.f32 %v2020_v63, %v1961_v51 }
 0x273   : > { %v5955_v25 = vpop.f32.mrf.mxu2  ;;  %v2025_v56 = vpop.f32.mrf.mxu0 }
 0x276   : > { %4676 = vmatmul.msk.bf16.gmra.mxu0 %vm713_vm1, %v5745_v10  ;;  %v5959_v47 = vpop.f32.mrf.mxu3 }
 0x278   : > { %4644 = vmatmul.msk.bf16.gmra.mxu2 %vm713_vm1, %v5758_v7 }
 0x27b   : > { %v1773_v0 = vpop.f32.mrf.mxu2  ;;  %v5963_v43 = vpop.f32.mrf.mxu0  ;;  %4660 = vmatmul.msk.bf16.gmra.mxu3 %vm713_vm1, %v5747_v18 }
 0x27c   : > { %v1835_v33 = vadd.f32 %v1773_v0, %v5752_v12 }
 0x27e   : > { %v1901_v28 = vpop.f32.mrf.mxu3 }
 0x27f   : > { %v1963_v59 = vadd.f32 %v1901_v28, %v1835_v33 }
 0x281   : > { %v5968_v55 = vadd.f32 %v2025_v56, %v1963_v59 }
 0x283   : > { %v5970_v49 = vpop.f32.mrf.mxu2  ;;  %v2030_v10 = vpop.f32.mrf.mxu0 }
 0x286   : > { %4677 = vmatmul.msk.bf16.gmra.mxu0 %vm713_vm1, %v8186_v14  ;;  %v5974_v31 = vpop.f32.mrf.mxu3 }
 0x288   : > { %4645 = vmatmul.msk.bf16.gmra.mxu2 %vm713_vm1, %v8186_v14 }
 0x28b   : > { %v1778_v7 = vpop.f32.mrf.mxu2  ;;  %v5978_v12 = vpop.f32.mrf.mxu0  ;;  %4661 = vmatmul.msk.bf16.gmra.mxu3 %vm713_vm1, %v8186_v14 }
 0x28c   : > { %v1837_v18 = vadd.f32 %v1778_v7, %v5768_v60 }
 0x28e   : > { %v1906_v54 = vpop.f32.mrf.mxu3 }
 0x28f   : > { %v1965_v2 = vadd.f32 %v1906_v54, %v1837_v18  ;;  %v6001_v18 = vpop.f32.mrf.mxu1 }
 0x291   : > { %v5983_v45 = vadd.f32 %v2030_v10, %v1965_v2 }
 0x293   : > { %v5985_v63 = vpop.f32.mrf.mxu2  ;;  %v2035_v5 = vpop.f32.mrf.mxu0 }
 0x296   : > { %v5987_v58 = vpop.f32.mrf.mxu3 }
 0x29b   : > { %v1783_v52 = vpop.f32.mrf.mxu2  ;;  %v5989_v20 = vpop.f32.mrf.mxu0 }
 0x29c   : > { %v1839_v39 = vadd.f32 %v1783_v52, %v5782_v42  ;;  %v6007_v52 = vpop.f32.mrf.mxu1 }
 0x29e   : > { %v1911_v51 = vpop.f32.mrf.mxu3 }
 0x29f   : > { %v1967_v56 = vadd.f32 %v1911_v51, %v1839_v39 }
 0x2a1   : > { %v5992_v60 = vadd.f32 %v2035_v5, %v1967_v56 }
 0x2a3   : > { %v5994_v0 = vpop.f32.mrf.mxu2  ;;  %v2040_v33 = vpop.f32.mrf.mxu0 }
 0x2a6   : > { %v5996_v28 = vpop.f32.mrf.mxu3 }
 0x2ab   : > { %v1788_v59 = vpop.f32.mrf.mxu2  ;;  %v5998_v10 = vpop.f32.mrf.mxu0 }
 0x2ac   : > { %8194 = vst [vmem:[#allocation55_spill] sm:$0xff] %v5998_v10  ;;  %v1841_v7 = vadd.f32 %v1788_v59, %v5794_v62  ;;  %v6014_v59 = vpop.f32.mrf.mxu1 }
 0x2ae   : > { %v1916_v54 = vpop.f32.mrf.mxu3 }
 0x2af   : > { %v1969_v2 = vadd.f32 %v1916_v54, %v1841_v7 }
 0x2b1   : > { %v6003_v8 = vadd.f32 %v2040_v33, %v1969_v2 }
 0x2b3   : > { %8195 = vst [vmem:[#allocation8_spill] sm:$0xff] %v6003_v8  ;;  %v6005_v42 = vpop.f32.mrf.mxu2  ;;  %v2045_v5 = vpop.f32.mrf.mxu0  ;;  %v8211_v8 = vld [vmem:[#allocation63_spill] sm:$0xff] }
 0x2b4   : > { %v6028_v6 = vpop.f32.mrf.mxu1 }
 0x2b6   : > { %v6009_v39 = vpop.f32.mrf.mxu3 }
 0x2bb   : > { %v1793_v51 = vpop.f32.mrf.mxu2  ;;  %v6011_v56 = vpop.f32.mrf.mxu0 }
 0x2bc   : > { %8196 = vst [vmem:[#allocation56_spill] sm:$0xff] %v6011_v56  ;;  %v1843_v14 = vadd.f32 %v1793_v51, %v5808_v1  ;;  %v2180_v51 = vmul.f32 %v5886_v41, %v5886_v41 }
 0x2be   : > { %v1921_v21 = vpop.f32.mrf.mxu3 }
 0x2bf   : > { %v1971_v62 = vadd.f32 %v1921_v21, %v1843_v14  ;;  %v6036_v14 = vpop.f32.mrf.mxu1 }
 0x2c0   : > { %8206 = vst [vmem:[#allocation20_spill] sm:$0xff] %v6036_v14 }
 0x2c1   : > { %v6016_v48 = vadd.f32 %v2045_v5, %v1971_v62 }
 0x2c3   : > { %8197 = vst [vmem:[#allocation57_spill] sm:$0xff] %v6016_v48  ;;  %v6018_v33 = vpop.f32.mrf.mxu2  ;;  %v6020_v7 = vpop.f32.mrf.mxu0  ;;  %v2181_v48 = vmul.f32 %v5897_v16, %v5897_v16 }
 0x2c4   : > { %8198 = vst [vmem:[#allocation12_spill] sm:$0xff] %v6018_v33 }
 0x2c5   : > { %8199 = vst [vmem:[#allocation58_spill] sm:$0xff] %v6020_v7 }
 0x2c6   : > { %v6022_v54 = vpop.f32.mrf.mxu3 }
 0x2c7   : > { %8200 = vst [vmem:[#allocation9_spill] sm:$0xff] %v6022_v54  ;;  %v8215_v54 = vld [vmem:[#allocation37_spill] sm:$0xff] }
 0x2cb   : > { %v6024_v2 = vpop.f32.mrf.mxu2  ;;  %v6026_v24 = vpop.f32.mrf.mxu0 }
 0x2cc   : > { %8201 = vst [vmem:[#allocation59_spill] sm:$0xff] %v6024_v2 }
 0x2cd   : > { %8202 = vst [vmem:[#allocation60_spill] sm:$0xff] %v6026_v24  ;;  %v2179_v24 = vmul.f32 %v5879_v22, %v5879_v22 }
 0x2ce   : > { %v6030_v56 = vpop.f32.mrf.mxu3 }
 0x2cf   : > { %8203 = vst [vmem:[#allocation14_spill] sm:$0xff] %v6030_v56  ;;  %v2182_v56 = vmul.f32 %v5905_v50, %v5905_v50  ;;  %v2211_v10 = vsel %vm713_vm1, %v2179_v24, 0.0  ;;  %v2114_v24 = vsel %vm713_vm1, %v5905_v50, 0.0 }
 0x2d1   : > { %v2216_v22 = vsel %vm713_vm1, %v2182_v56, 0.0  ;;  %v8216_v56 = vld [vmem:[#allocation68_spill] sm:$0xff] }
 0x2d3   : > { %v6032_v1 = vpop.f32.mrf.mxu2  ;;  %v6034_v21 = vpop.f32.mrf.mxu0 }
 0x2d4   : > { %8204 = vst [vmem:[#allocation61_spill] sm:$0xff] %v6032_v1  ;;  %v8210_v1 = vld [vmem:[#allocation64_spill] sm:$0xff] }
 0x2d5   : > { %8205 = vst [vmem:[#allocation17_spill] sm:$0xff] %v6034_v21  ;;  %v1708_v21 = vadd.f32 %v8211_v8, %v8210_v1  ;;  %v2112_v8 = vsel %vm713_vm1, %v5897_v16, 0.0  ;;  %v2214_v1 = vsel %vm713_vm1, %v2181_v48, 0.0  ;;  %v2184_v16 = vmul.f32 %v5919_v27, %v5919_v27 }
 0x2d6   : > { %v6038_v5 = vpop.f32.mrf.mxu3  ;;  %v2113_v19 = vadd.f32 %v2112_v8, %v2111_v61 }
 0x2d7   : > { %8207 = vst [vmem:[#allocation62_spill] sm:$0xff] %v6038_v5  ;;  %v2212_v5 = vsel %vm713_vm1, %v2180_v51, 0.0  ;;  %v2183_v51 = vmul.f32 %v5912_v36, %v5912_v36  ;;  %v1832_v41 = vadd.f32 %v5940_v44, %v1708_v21  ;;  %v2116_v44 = vsel %vm713_vm1, %v5912_v36, 0.0 }
 0x2d8   : > { %v2213_v14 = vadd.f32 %v2212_v5, %v2211_v10  ;;  %v2220_v61 = vsel %vm713_vm1, %v2184_v16, 0.0  ;;  %v2187_v16 = vmul.f32 %v5938_v57, %v5938_v57 }
 0x2d9   : > { %v1960_v48 = vadd.f32 %v5944_v4, %v1832_v41  ;;  %v2218_v13 = vsel %vm713_vm1, %v2183_v51, 0.0  ;;  %v2118_v41 = vsel %vm713_vm1, %v5919_v27, 0.0  ;;  %v2186_v4 = vmul.f32 %v5931_v40, %v5931_v40 }
 0x2da   : > { %v2215_v33 = vadd.f32 %v2214_v1, %v2213_v14 }
 0x2db   : > { %v6042_v62 = vpop.f32.mrf.mxu2  ;;  %v6048_v7 = vpop.f32.mrf.mxu0  ;;  %v6094_v14 = vadd.f32 %v5933_v9, %v1960_v48  ;;  %v1714_v9 = vadd.f32 %v5765_v26, %v5774_v30  ;;  %v2224_v48 = vsel %vm713_vm1, %v2186_v4, 0.0 }
 0x2dc   : > { %8208 = vst [vmem:[#allocation23_spill] sm:$0xff] %v6042_v62  ;;  %v6057_v62 = vpop.f32.mrf.mxu1  ;;  %v2217_v21 = vadd.f32 %v2216_v22, %v2215_v33  ;;  %v2222_v22 = vsel %vm713_vm1, %v2185_v32, 0.0 }
 0x2dd   : > { %8209 = vst [vmem:[#allocation27_spill] sm:$0xff] %v6048_v7  ;;  %v8214_v7 = vld [vmem:[#allocation67_spill] sm:$0xff] }
 0x2de   : > { %8212 = vst [vmem:[#allocation30_spill] sm:$0xff] %v6057_v62  ;;  %v6062_v2 = vpop.f32.mrf.mxu3  ;;  %v1710_v62 = vadd.f32 %v8215_v54, %v8214_v7  ;;  %v1712_v7 = vadd.f32 %v8216_v56, %v5760_v3  ;;  %v2115_v54 = vadd.f32 %v2114_v24, %v2113_v19  ;;  %v2120_v19 = vsel %vm713_vm1, %v5924_v35, 0.0 }
 0x2df   : > { %8213 = vst [vmem:[#allocation34_spill] sm:$0xff] %v6062_v2  ;;  %v2122_v24 = vsel %vm713_vm1, %v5931_v40, 0.0  ;;  %v2226_v56 = vsel %vm713_vm1, %v2187_v16, 0.0 }
 0x2e0   : > { %v1834_v10 = vadd.f32 %v5955_v25, %v1710_v62  ;;  %v2117_v8 = vadd.f32 %v2116_v44, %v2115_v54  ;;  %v2219_v25 = vadd.f32 %v2218_v13, %v2217_v21  ;;  %v1836_v33 = vadd.f32 %v5970_v49, %v1712_v7 }
 0x2e1   : > { %v2188_v44 = vmul.f32 %v6094_v14, %v6094_v14  ;;  %v2189_v7 = vmul.f32 %v5953_v37, %v5953_v37  ;;  %v1838_v54 = vadd.f32 %v5985_v63, %v1714_v9  ;;  %v1716_v63 = vadd.f32 %v5780_v38, %v5788_v46 }
 0x2e2   : > { %v1962_v5 = vadd.f32 %v5959_v47, %v1834_v10  ;;  %v2119_v1 = vadd.f32 %v2118_v41, %v2117_v8  ;;  %v2221_v51 = vadd.f32 %v2220_v61, %v2219_v25  ;;  %v1964_v49 = vadd.f32 %v5974_v31, %v1836_v33 }
 0x2e3   : > { %v6078_v2 = vpop.f32.mrf.mxu2  ;;  %v6099_v3 = vpop.f32.mrf.mxu0  ;;  %v2124_v10 = vsel %vm713_vm1, %v5938_v57, 0.0  ;;  %v2228_v31 = vsel %vm713_vm1, %v2188_v44, 0.0  ;;  %v2230_v16 = vsel %vm713_vm1, %v2189_v7, 0.0  ;;  %v2191_v33 = vmul.f32 %v5968_v55, %v5968_v55 }
 0x2e4   : > { %v6109_v47 = vpop.f32.mrf.mxu1  ;;  %v6117_v13 = vadd.f32 %v5948_v15, %v1962_v5  ;;  %v2121_v26 = vadd.f32 %v2120_v19, %v2119_v1  ;;  %v2223_v30 = vadd.f32 %v2222_v22, %v2221_v51  ;;  %v2126_v15 = vsel %vm713_vm1, %v6094_v14, 0.0 }
 0x2e5   : > { %v6134_v4 = vadd.f32 %v5963_v43, %v1964_v49  ;;  %v1966_v5 = vadd.f32 %v5987_v58, %v1838_v54  ;;  %v2128_v22 = vsel %vm713_vm1, %v5953_v37, 0.0  ;;  %v1718_v44 = vadd.f32 %v5800_v53, %v5802_v17 }
 0x2e6   : > { %v6097_v62 = vpop.f32.mrf.mxu3  ;;  %v2123_v21 = vadd.f32 %v2122_v24, %v2121_v26  ;;  %v2225_v41 = vadd.f32 %v2224_v48, %v2223_v30  ;;  %v2190_v61 = vmul.f32 %v6117_v13, %v6117_v13  ;;  %v2130_v58 = vsel %vm713_vm1, %v6117_v13, 0.0 }
 0x2e7   : > { %v2192_v38 = vmul.f32 %v6134_v4, %v6134_v4  ;;  %v6154_v46 = vadd.f32 %v5978_v12, %v1966_v5  ;;  %v1840_v24 = vadd.f32 %v5994_v0, %v1716_v63  ;;  %v2193_v7 = vmul.f32 %v5983_v45, %v5983_v45  ;;  %v8217_v63 = vld [vmem:[#allocation12_spill] sm:$0xff] }
 0x2e8   : > { %v2125_v8 = vadd.f32 %v2124_v10, %v2123_v21  ;;  %v2227_v25 = vadd.f32 %v2226_v56, %v2225_v41  ;;  %v2232_v51 = vsel %vm713_vm1, %v2190_v61, 0.0  ;;  %v2132_v10 = vsel %vm713_vm1, %v5968_v55, 0.0 }
 0x2e9   : > { %v2234_v56 = vsel %vm713_vm1, %v2191_v33, 0.0  ;;  %v1968_v12 = vadd.f32 %v5996_v28, %v1840_v24  ;;  %v1720_v0 = vadd.f32 %v6001_v18, %v5814_v23  ;;  %v1721_v54 = vadd.f32 %v6007_v52, %v5819_v34  ;;  %v8219_v33 = vld [vmem:[#allocation20_spill] sm:$0xff] }
 0x2ea   : > { %v2127_v9 = vadd.f32 %v2126_v15, %v2125_v8  ;;  %v2229_v43 = vadd.f32 %v2228_v31, %v2227_v25  ;;  %v2134_v21 = vsel %vm713_vm1, %v6134_v4, 0.0  ;;  %v2236_v41 = vsel %vm713_vm1, %v2192_v38, 0.0 }
 0x2eb   : > { %v6120_v32 = vpop.f32.mrf.mxu2  ;;  %v6148_v1 = vpop.f32.mrf.mxu0  ;;  %v2194_v15 = vmul.f32 %v6154_v46, %v6154_v46  ;;  %v1842_v31 = vadd.f32 %v6005_v42, %v1718_v44  ;;  %v1722_v28 = vadd.f32 %v6014_v59, %v5826_v11  ;;  %v2136_v34 = vsel %vm713_vm1, %v5983_v45, 0.0 }
 0x2ec   : > { %v1689_v49 = vpop.f32.mrf.mxu1  ;;  %v2129_v26 = vadd.f32 %v2128_v22, %v2127_v9  ;;  %v2231_v30 = vadd.f32 %v2230_v16, %v2229_v43  ;;  %v2238_v52 = vsel %vm713_vm1, %v2193_v7, 0.0  ;;  %v2195_v5 = vmul.f32 %v5992_v60, %v5992_v60  ;;  %v8218_v16 = vld [vmem:[#allocation26_spill] sm:$0xff]  ;;  %v8220_v43 = vld [vmem:[#allocation48_spill] sm:$0xff] }
 0x2ed   : > { %v6187_v8 = vadd.f32 %v5989_v20, %v1968_v12  ;;  %v1970_v42 = vadd.f32 %v6009_v39, %v1842_v31  ;;  %v1723_v11 = vadd.f32 %v6028_v6, %v5831_v29  ;;  %v1844_v22 = vadd.f32 %v8217_v63, %v1720_v0  ;;  %v8222_v29 = vld [vmem:[#allocation9_spill] sm:$0xff]  ;;  %v8224_v0 = vld [vmem:[#allocation55_spill] sm:$0xff] }
 0x2ee   : > { %v6137_v19 = vpop.f32.mrf.mxu3  ;;  %v2131_v53 = vadd.f32 %v2130_v58, %v2129_v26  ;;  %v2233_v17 = vadd.f32 %v2232_v51, %v2231_v30  ;;  %v1724_v9 = vadd.f32 %v8219_v33, %v8218_v16  ;;  %v8221_v58 = vld [vmem:[#allocation30_spill] sm:$0xff]  ;;  %v2138_v38 = vsel %vm713_vm1, %v6154_v46, 0.0  ;;  %v8223_v26 = vld [vmem:[#allocation59_spill] sm:$0xff]  ;;  %v8230_v16 = vld [vmem:[#allocation56_spill] sm:$0xff] }
 0x2ef   : > { %v1725_v51 = vadd.f32 %v8221_v58, %v8220_v43  ;;  %v2240_v20 = vsel %vm713_vm1, %v2194_v15, 0.0  ;;  %v1972_v6 = vadd.f32 %v8222_v29, %v1844_v22  ;;  %v1845_v30 = vadd.f32 %v8223_v26, %v1721_v54  ;;  %v8226_v54 = vld [vmem:[#allocation14_spill] sm:$0xff] }
 0x2f0   : > { %v2133_v61 = vadd.f32 %v2132_v10, %v2131_v53  ;;  %v2235_v23 = vadd.f32 %v2234_v56, %v2233_v17  ;;  %v2140_v56 = vsel %vm713_vm1, %v5992_v60, 0.0  ;;  %v2242_v7 = vsel %vm713_vm1, %v2195_v5, 0.0  ;;  %v8225_v17 = vld [vmem:[#allocation49_spill] sm:$0xff]  ;;  %v8228_v5 = vld [vmem:[#allocation8_spill] sm:$0xff] }
 0x2f1   : > { %v2196_v12 = vmul.f32 %v6187_v8, %v6187_v8  ;;  %v6212_v53 = vadd.f32 %v8224_v0, %v1970_v42  ;;  %v6224_v33 = vadd.f32 %v8230_v16, %v1972_v6  ;;  %v8238_v16 = vld [vmem:[#allocation17_spill] sm:$0xff] }
 0x2f2   : > { %v2135_v59 = vadd.f32 %v2134_v21, %v2133_v61  ;;  %v2237_v25 = vadd.f32 %v2236_v41, %v2235_v23  ;;  %v1726_v21 = vadd.f32 %v6109_v47, %v8225_v17  ;;  %v1973_v61 = vadd.f32 %v8226_v54, %v1845_v30  ;;  %v8227_v23 = vld [vmem:[#allocation33_spill] sm:$0xff]  ;;  %v8231_v47 = vld [vmem:[#allocation23_spill] sm:$0xff]  ;;  %v8234_v30 = vld [vmem:[#allocation34_spill] sm:$0xff] }
 0x2f3   : > { %v6157_v48 = vpop.f32.mrf.mxu2  ;;  %v6204_v10 = vpop.f32.mrf.mxu0  ;;  %v1847_v43 = vadd.f32 %v8231_v47, %v1723_v11  ;;  %v8235_v11 = vld [vmem:[#allocation50_spill] sm:$0xff]  ;;  %v2146_v0 = vsel %vm713_vm1, %v6212_v53, 0.0  ;;  %v8236_v17 = vld [vmem:[#allocation57_spill] sm:$0xff] }
 0x2f4   : > { %v2137_v39 = vadd.f32 %v2136_v34, %v2135_v59  ;;  %v2239_v44 = vadd.f32 %v2238_v52, %v2237_v25  ;;  %v1691_v41 = vpop.f32.mrf.mxu1  ;;  %v1727_v34 = vadd.f32 %v1689_v49, %v8227_v23  ;;  %v2142_v52 = vsel %vm713_vm1, %v6187_v8, 0.0  ;;  %v8229_v25 = vld [vmem:[#allocation61_spill] sm:$0xff] }
 0x2f5   : > { %v2197_v59 = vmul.f32 %v8228_v5, %v8228_v5  ;;  %v1846_v63 = vadd.f32 %v8229_v25, %v1722_v28  ;;  %v2144_v49 = vsel %vm713_vm1, %v8228_v5, 0.0  ;;  %v8233_v28 = vld [vmem:[#allocation58_spill] sm:$0xff]  ;;  %v1975_v6 = vadd.f32 %v8234_v30, %v1847_v43 }
 0x2f6   : > { %v6181_v18 = vpop.f32.mrf.mxu3  ;;  %v2139_v15 = vadd.f32 %v2138_v38, %v2137_v39  ;;  %v2241_v31 = vadd.f32 %v2240_v20, %v2239_v44  ;;  %v2244_v38 = vsel %vm713_vm1, %v2196_v12, 0.0  ;;  %v2198_v20 = vmul.f32 %v6212_v53, %v6212_v53  ;;  %v8232_v39 = vld [vmem:[#allocation62_spill] sm:$0xff] }
 0x2f7   : > { %v1974_v44 = vadd.f32 %v8232_v39, %v1846_v63  ;;  %v6234_v26 = vadd.f32 %v8233_v28, %v1973_v61  ;;  %v2246_v12 = vsel %vm713_vm1, %v2197_v59, 0.0  ;;  %v2200_v61 = vmul.f32 %v6224_v33, %v6224_v33 }
 0x2f8   : > { %v2141_v42 = vadd.f32 %v2140_v56, %v2139_v15  ;;  %v2243_v22 = vadd.f32 %v2242_v7, %v2241_v31  ;;  %v1848_v56 = vadd.f32 %v6078_v2, %v1724_v9  ;;  %v1728_v7 = vadd.f32 %v1691_v41, %v8235_v11  ;;  %v8237_v41 = vld [vmem:[#allocation60_spill] sm:$0xff] }
 0x2f9   : > { %v2199_v15 = vmul.f32 %v8236_v17, %v8236_v17  ;;  %v2248_v2 = vsel %vm713_vm1, %v2198_v20, 0.0  ;;  %v2148_v9 = vsel %vm713_vm1, %v8236_v17, 0.0  ;;  %v6251_v59 = vadd.f32 %v8237_v41, %v1974_v44 }
 0x2fa   : > { %v2143_v29 = vadd.f32 %v2142_v52, %v2141_v42  ;;  %v2245_v54 = vadd.f32 %v2244_v38, %v2243_v22  ;;  %v1976_v52 = vadd.f32 %v6097_v62, %v1848_v56  ;;  %v1849_v25 = vadd.f32 %v6120_v32, %v1725_v51 }
 0x2fb   : > { %v6200_v24 = vpop.f32.mrf.mxu2  ;;  %v2201_v22 = vmul.f32 %v6234_v26, %v6234_v26  ;;  %v6257_v47 = vadd.f32 %v8238_v16, %v1975_v6  ;;  %v2067_v43 = vpop.f32.mrf.mxu0  ;;  %v2250_v62 = vsel %vm713_vm1, %v2199_v15, 0.0  ;;  %v2150_v38 = vsel %vm713_vm1, %v6224_v33, 0.0 }
 0x2fc   : > { %v2145_v23 = vadd.f32 %v2144_v49, %v2143_v29  ;;  %v2247_v63 = vadd.f32 %v2246_v12, %v2245_v54  ;;  %v1977_v49 = vadd.f32 %v6137_v19, %v1849_v25  ;;  %v1850_v20 = vadd.f32 %v6157_v48, %v1726_v21  ;;  %v1694_v39 = vpop.f32.mrf.mxu1  ;;  %v8239_v29 = vld [vmem:[#allocation27_spill] sm:$0xff] }
 0x2fd   : > { %v2252_v44 = vsel %vm713_vm1, %v2200_v61, 0.0  ;;  %v6266_v28 = vadd.f32 %v8239_v29, %v1976_v52  ;;  %v2152_v6 = vsel %vm713_vm1, %v6234_v26, 0.0  ;;  %v2202_v56 = vmul.f32 %v6251_v59, %v6251_v59 }
 0x2fe   : > { %v1941_v58 = vpop.f32.mrf.mxu3  ;;  %v2147_v42 = vadd.f32 %v2146_v0, %v2145_v23  ;;  %v2249_v32 = vadd.f32 %v2248_v2, %v2247_v63  ;;  %v1978_v11 = vadd.f32 %v6181_v18, %v1850_v20  ;;  %v1851_v19 = vadd.f32 %v6200_v24, %v1727_v34  ;;  %v8240_v2 = vld [vmem:[#allocation51_spill] sm:$0xff] }
 0x2ff   : > { %v2254_v12 = vsel %vm713_vm1, %v2201_v22, 0.0  ;;  %v2203_v0 = vmul.f32 %v6257_v47, %v6257_v47  ;;  %v2154_v15 = vsel %vm713_vm1, %v6251_v59, 0.0  ;;  %v6280_v54 = vadd.f32 %v6099_v3, %v1977_v49 }
 0x300   : > { %v2149_v51 = vadd.f32 %v2148_v9, %v2147_v42  ;;  %v2251_v48 = vadd.f32 %v2250_v62, %v2249_v32  ;;  %v1979_v23 = vadd.f32 %v1941_v58, %v1851_v19  ;;  %v1729_v18 = vadd.f32 %v1694_v39, %v8240_v2 }
 0x301   : > { %v2204_v34 = vmul.f32 %v6266_v28, %v6266_v28  ;;  %v2256_v41 = vsel %vm713_vm1, %v2202_v56, 0.0  ;;  %v2156_v25 = vsel %vm713_vm1, %v6257_v47, 0.0  ;;  %v6289_v63 = vadd.f32 %v6148_v1, %v1978_v11 }
 0x302   : > { %v2151_v21 = vadd.f32 %v2150_v38, %v2149_v51  ;;  %v2253_v9 = vadd.f32 %v2252_v44, %v2251_v48  ;;  %v2205_v22 = vmul.f32 %v6280_v54, %v6280_v54  ;;  %v6297_v16 = vadd.f32 %v6204_v10, %v1979_v23 }
 0x303   : > { %v1815_v31 = vpop.f32.mrf.mxu2  ;;  %v2260_v1 = vsel %vm713_vm1, %v2204_v34, 0.0  ;;  %v2070_v20 = vpop.f32.mrf.mxu0  ;;  %v2160_v32 = vsel %vm713_vm1, %v6280_v54, 0.0  ;;  %v2206_v51 = vmul.f32 %v6289_v63, %v6289_v63  ;;  %v2162_v11 = vsel %vm713_vm1, %v6289_v63, 0.0 }
 0x304   : > { %v1852_v61 = vadd.f32 %v1815_v31, %v1728_v7  ;;  %v2153_v24 = vadd.f32 %v2152_v6, %v2151_v21  ;;  %v2255_v42 = vadd.f32 %v2254_v12, %v2253_v9  ;;  %v2258_v7 = vsel %vm713_vm1, %v2203_v0, 0.0 }
 0x305   : > { %v2158_v31 = vsel %vm713_vm1, %v6266_v28, 0.0  ;;  %v2262_v56 = vsel %vm713_vm1, %v2205_v22, 0.0  ;;  %v2207_v19 = vmul.f32 %v6297_v16, %v6297_v16  ;;  %v2264_v23 = vsel %vm713_vm1, %v2206_v51, 0.0 }
 0x306   : > { %v1943_v30 = vpop.f32.mrf.mxu3  ;;  %v2155_v58 = vadd.f32 %v2154_v15, %v2153_v24  ;;  %v2257_v38 = vadd.f32 %v2256_v41, %v2255_v42  ;;  %v8241_v15 = vld [vmem:[#allocation40_spill] sm:$0xff] }
 0x307   : > { %v1980_v3 = vadd.f32 %v1943_v30, %v1852_v61  ;;  %v1696_v30 = vpop.f32.mrf.mxu1  ;;  %v2164_v61 = vsel %vm713_vm1, %v6297_v16, 0.0  ;;  %v2266_v9 = vsel %vm713_vm1, %v2207_v19, 0.0 }
 0x308   : > { %v2157_v49 = vadd.f32 %v2156_v25, %v2155_v58  ;;  %v2259_v6 = vadd.f32 %v2258_v7, %v2257_v38 }
 0x309   : > { %v6304_v44 = vadd.f32 %v2067_v43, %v1980_v3  ;;  %v1730_v43 = vadd.f32 %v1696_v30, %v8241_v15 }
 0x30a   : > { %v2159_v10 = vadd.f32 %v2158_v31, %v2157_v49  ;;  %v2261_v21 = vadd.f32 %v2260_v1, %v2259_v6 }
 0x30b   : > { %v1818_v52 = vpop.f32.mrf.mxu2  ;;  %v2166_v24 = vsel %vm713_vm1, %v6304_v44, 0.0  ;;  %v2072_v38 = vpop.f32.mrf.mxu0 }
 0x30c   : > { %v1853_v62 = vadd.f32 %v1818_v52, %v1729_v18  ;;  %v2161_v12 = vadd.f32 %v2160_v32, %v2159_v10  ;;  %v2208_v52 = vmul.f32 %v6304_v44, %v6304_v44  ;;  %v2263_v2 = vadd.f32 %v2262_v56, %v2261_v21 }
 0x30e   : > { %v1946_v39 = vpop.f32.mrf.mxu3  ;;  %v2163_v18 = vadd.f32 %v2162_v11, %v2161_v12  ;;  %v2265_v25 = vadd.f32 %v2264_v23, %v2263_v2  ;;  %v2268_v58 = vsel %vm713_vm1, %v2208_v52, 0.0  ;;  %v8242_v11 = vld [vmem:[#allocation46_spill] sm:$0xff] }
 0x30f   : > { %v1981_v29 = vadd.f32 %v1946_v39, %v1853_v62  ;;  %v3030_v19 = vsel %vm762_vm0, %v8242_v11, 0  ;;  %v6337_v23 = vld [vmem:[%s7940_s4 + $0x4] sm:$0xf] }
 0x310   : > { %v2165_v3 = vadd.f32 %v2164_v61, %v2163_v18  ;;  %v2267_v22 = vadd.f32 %v2266_v9, %v2265_v25  ;;  %3039 = vmatpush.bf16.msrb.mxu2 %v3030_v19  ;;  %v3242_v2 = vsel %vm762_vm0, %v6337_v23, 0  ;;  %v8244_v19 = vld [vmem:[#allocation52_spill] sm:$0xff] }
 0x311   : > { %v6311_v48 = vadd.f32 %v2070_v20, %v1981_v29  ;;  %3251 = vmatpush.bf16.msrb.mxu3 %v3242_v2 }
 0x312   : > { %v2167_v62 = vadd.f32 %v2166_v24, %v2165_v3  ;;  %v2269_v20 = vadd.f32 %v2268_v58, %v2267_v22 }
 0x313   : > { %v1820_v0 = vpop.f32.mrf.mxu2  ;;  %v2209_v34 = vmul.f32 %v6311_v48, %v6311_v48  ;;  %v2168_v7 = vsel %vm713_vm1, %v6311_v48, 0.0 }
 0x314   : > { %v1854_v41 = vadd.f32 %v1820_v0, %v1730_v43  ;;  %v2169_v39 = vadd.f32 %v2168_v7, %v2167_v62  ;;  %v8243_v43 = vld [vmem:[#allocation3_spill] sm:$0xff] }
 0x315   : > { %v2270_v49 = vsel %vm713_vm1, %v2209_v34, 0.0  ;;  %4694 = vmatmul.msk.bf16.vlgmr.msrb.gmra.mxu2 %vm713_vm1, %v8243_v43  ;;  %4710 = vmatmul.msk.bf16.vlgmr.msrb.gmra.mxu3 %vm713_vm1, %v8243_v43 }
 0x316   : > { %v1948_v42 = vpop.f32.mrf.mxu3  ;;  %v2271_v29 = vadd.f32 %v2270_v49, %v2269_v20 }
 0x317   : > { %v1982_v31 = vadd.f32 %v1948_v42, %v1854_v41 }
 0x319   : > { %v2106_v1 = vadd.f32 %v2072_v38, %v1982_v31 }
 0x31b   : > { %v2170_v32 = vsel %vm713_vm1, %v2106_v1, 0.0  ;;  %v2210_v51 = vmul.f32 %v2106_v1, %v2106_v1 }
 0x31c   : > { %v2171_v30 = vadd.f32 %v2170_v32, %v2169_v39  ;;  %v2107_v39 = vld [vmem:[%s7938_s2] sm:$0x1] }
 0x31d   : > { %v2272_v6 = vsel %vm713_vm1, %v2210_v51, 0.0 }
 0x31e   : > { %v2172_v10 = vrot.slane %v2171_v30, 4  ;;  %v2273_v56 = vadd.f32 %v2272_v6, %v2271_v29 }
 0x320   : > { %v2173_v21 = vadd.f32 %v2172_v10, %v2171_v30  ;;  %v2274_v12 = vrot.slane %v2273_v56, 4  ;;  %v2108_v30 = vld [vmem:[%s7939_s3] sm:$0x1] }
 0x322   : > { %v2174_v0 = vrot.slane %v2173_v21, 2  ;;  %v2275_v15 = vadd.f32 %v2274_v12, %v2273_v56  ;;  %v8245_v12 = vld [vmem:[#allocation53_spill] sm:$0xff] }
 0x324   : > { %v2175_v61 = vadd.f32 %v2174_v0, %v2173_v21  ;;  %v2276_v52 = vrot.slane %v2275_v15, 2 }
 0x326   : > { %v2176_v18 = vrot.slane %v2175_v61, 1  ;;  %v2277_v9 = vadd.f32 %v2276_v52, %v2275_v15  ;;  %v8246_v15 = vld [vmem:[#allocation54_spill] sm:$0xff] }
 0x328   : > { %v2177_v24 = vadd.f32 %v2176_v18, %v2175_v61  ;;  %v2278_v34 = vrot.slane %v2277_v9, 1 }
 0x32a   : > { %v2178_v41 = vmul.f32 0.00390625, %v2177_v24  ;;  %v2279_v25 = vadd.f32 %v2278_v34, %v2277_v9 }
 0x32c   : > { %v2280_v3 = vmul.f32 0.00390625, %v2279_v25  ;;  %v2281_v42 = vmul.f32 %v2178_v41, %v2178_v41 }
 0x32e   : > { %v2282_v58 = vsub.f32 %v2280_v3, %v2281_v42 }
 0x330   : > { %v2283_v7 = vmax.f32 %v2282_v58, 0.0 }
 0x332   : > { %v2284_v31 = vadd.f32 1e-05, %v2283_v7 }
 0x334   : > { %4837 = vrsqrt.f32 %v2284_v31  ;;  %vm2291_vm7 = vweird.f32 %v2284_v31 }
 0x33a   : > { %v4838_v22 = vpop.eup %4837 }
 0x33b   : > { %v2286_v62 = vmul.f32 %v4838_v22, %v2284_v31  ;;  %vm2292_vm6 = vweird.f32 %v4838_v22 }
 0x33c   : > { %vm2293_vm8 = vmor %vm2291_vm7, %vm2292_vm6 }
 0x33d   : > { %v2287_v38 = vmul.f32 %v4838_v22, %v2286_v62 }
 0x33f   : > { %v2288_v49 = vmul.f32 0.5, %v2287_v38 }
 0x341   : > { %v2289_v20 = vsub.f32 1.5, %v2288_v49 }
 0x343   : > { %v2290_v32 = vmul.f32 %v4838_v22, %v2289_v20 }
 0x345   : > { %v2294_v51 = vsel %vm2293_vm8, %v4838_v22, %v2290_v32 }
 0x346   : > { %v2295_v29 = vmul.f32 %v2294_v51, %v2107_v39 }
 0x348   : > { %v2296_v6 = vmul.f32 %v2295_v29, %v2178_v41  ;;  %v2299_v10 = vperm.slane %v2295_v29, 0 }
 0x34a   : > { %v2297_v56 = vsub.f32 %v2108_v30, %v2296_v6  ;;  %v2332_v11 = vmul.f32 %v2299_v10, %v2106_v1  ;;  %v2301_v21 = vmul.f32 %v2299_v10, %v8244_v19  ;;  %v2302_v0 = vmul.f32 %v2299_v10, %v8245_v12 }
 0x34b   : > { %v2303_v61 = vmul.f32 %v2299_v10, %v8246_v15  ;;  %v2304_v52 = vmul.f32 %v2299_v10, %v5905_v50  ;;  %v2305_v2 = vmul.f32 %v2299_v10, %v5912_v36  ;;  %v2306_v9 = vmul.f32 %v2299_v10, %v5919_v27 }
 0x34c   : > { %v2334_v18 = vperm.slane %v2297_v56, 0  ;;  %v2307_v24 = vmul.f32 %v2299_v10, %v5924_v35  ;;  %v2308_v34 = vmul.f32 %v2299_v10, %v5931_v40  ;;  %v2309_v41 = vmul.f32 %v2299_v10, %v5938_v57 }
 0x34d   : > { %v2310_v1 = vmul.f32 %v2299_v10, %v6094_v14  ;;  %v2311_v25 = vmul.f32 %v2299_v10, %v5953_v37  ;;  %v2312_v3 = vmul.f32 %v2299_v10, %v6117_v13  ;;  %v2313_v50 = vmul.f32 %v2299_v10, %v5968_v55 }
 0x34e   : > { %v6361_v42 = vadd.f32 %v2334_v18, %v2332_v11  ;;  %v2314_v36 = vmul.f32 %v2299_v10, %v6134_v4  ;;  %v2315_v27 = vmul.f32 %v2299_v10, %v5983_v45  ;;  %v2316_v35 = vmul.f32 %v2299_v10, %v6154_v46 }
 0x34f   : > { %v2317_v40 = vmul.f32 %v2299_v10, %v5992_v60  ;;  %v2318_v57 = vmul.f32 %v2299_v10, %v6187_v8  ;;  %v2319_v14 = vmul.f32 %v2299_v10, %v8228_v5  ;;  %v2320_v37 = vmul.f32 %v2299_v10, %v6212_v53 }
 0x350   : > { %v2321_v13 = vmul.f32 %v2299_v10, %v8236_v17  ;;  %v2322_v58 = vmul.f32 %v2299_v10, %v6224_v33  ;;  %v2323_v55 = vmul.f32 %v2299_v10, %v6234_v26  ;;  %v2324_v4 = vmul.f32 %v2299_v10, %v6251_v59 }
 0x351   : > { %v2325_v45 = vmul.f32 %v2299_v10, %v6257_v47  ;;  %v2326_v46 = vmul.f32 %v2299_v10, %v6266_v28  ;;  %v2327_v60 = vmul.f32 %v2299_v10, %v6280_v54  ;;  %v2328_v8 = vmul.f32 %v2299_v10, %v6289_v63 }
 0x352   : > { %v2329_v5 = vmul.f32 %v2299_v10, %v6297_v16  ;;  %v2330_v53 = vmul.f32 %v2299_v10, %v6304_v44  ;;  %v2331_v17 = vmul.f32 %v2299_v10, %v6311_v48  ;;  %v2336_v7 = vadd.f32 %v2334_v18, %v2301_v21 }
 0x353   : > { %v2337_v33 = vadd.f32 %v2334_v18, %v2302_v0  ;;  %v2338_v31 = vadd.f32 %v2334_v18, %v2303_v61  ;;  %v2339_v26 = vadd.f32 %v2334_v18, %v2304_v52  ;;  %v2340_v22 = vadd.f32 %v2334_v18, %v2305_v2 }
 0x354   : > { %v2341_v59 = vadd.f32 %v2334_v18, %v2306_v9  ;;  %v2342_v62 = vadd.f32 %v2334_v18, %v2307_v24  ;;  %v2343_v47 = vadd.f32 %v2334_v18, %v2308_v34  ;;  %v2344_v38 = vadd.f32 %v2334_v18, %v2309_v41 }
 0x355   : > { %v2345_v28 = vadd.f32 %v2334_v18, %v2310_v1  ;;  %v2346_v49 = vadd.f32 %v2334_v18, %v2311_v25  ;;  %v2347_v54 = vadd.f32 %v2334_v18, %v2312_v3  ;;  %v2348_v20 = vadd.f32 %v2334_v18, %v2313_v50 }
 0x356   : > { %v2349_v63 = vadd.f32 %v2334_v18, %v2314_v36  ;;  %v2350_v39 = vadd.f32 %v2334_v18, %v2315_v27  ;;  %v2351_v16 = vadd.f32 %v2334_v18, %v2316_v35  ;;  %v2352_v32 = vadd.f32 %v2334_v18, %v2317_v40 }
 0x357   : > { %v2353_v44 = vadd.f32 %v2334_v18, %v2318_v57  ;;  %v2354_v51 = vadd.f32 %v2334_v18, %v2319_v14  ;;  %v2355_v48 = vadd.f32 %v2334_v18, %v2320_v37  ;;  %v2356_v29 = vadd.f32 %v2334_v18, %v2321_v13 }
 0x358   : > { %v2357_v30 = vadd.f32 %v2334_v18, %v2322_v58  ;;  %v2358_v6 = vadd.f32 %v2334_v18, %v2323_v55  ;;  %v2359_v10 = vadd.f32 %v2334_v18, %v2324_v4  ;;  %v2360_v56 = vadd.f32 %v2334_v18, %v2325_v45 }
 0x359   : > { %v2361_v11 = vadd.f32 %v2334_v18, %v2326_v46  ;;  %v2362_v19 = vadd.f32 %v2334_v18, %v2327_v60  ;;  %v2363_v21 = vadd.f32 %v2334_v18, %v2328_v8  ;;  %v2364_v12 = vadd.f32 %v2334_v18, %v2329_v5 }
 0x35a   : > { %v2365_v0 = vadd.f32 %v2334_v18, %v2330_v53  ;;  %v6382_v15 = vadd.f32 %v2334_v18, %v2331_v17  ;;  %v3371_v61 = vunpack.c.l.b16 %v6337_v23  ;;  %v6385_v52 = vmax.f32 %v2336_v7, 0.0 }
 0x35b   : > { %v6387_v2 = vmax.f32 %v2337_v33, 0.0  ;;  %v6389_v9 = vmax.f32 %v2338_v31, 0.0  ;;  %v6391_v24 = vmax.f32 %v2339_v26, 0.0  ;;  %v6393_v34 = vmax.f32 %v2340_v22, 0.0 }
 0x35c   : > { %v6395_v41 = vmax.f32 %v2341_v59, 0.0  ;;  %v6397_v1 = vmax.f32 %v2342_v62, 0.0  ;;  %v6399_v25 = vmax.f32 %v2343_v47, 0.0  ;;  %v6401_v18 = vmax.f32 %v2344_v38, 0.0 }
 0x35d   : > { %v6403_v3 = vmax.f32 %v2345_v28, 0.0  ;;  %v6405_v23 = vmax.f32 %v2346_v49, 0.0  ;;  %v6407_v50 = vmax.f32 %v2347_v54, 0.0  ;;  %v6409_v36 = vmax.f32 %v2348_v20, 0.0 }
 0x35e   : > { %v6411_v27 = vmax.f32 %v2349_v63, 0.0  ;;  %v6413_v35 = vmax.f32 %v2350_v39, 0.0  ;;  %v6415_v40 = vmax.f32 %v2351_v16, 0.0  ;;  %v6417_v57 = vmax.f32 %v2352_v32, 0.0 }
 0x35f   : > { %v6419_v14 = vmax.f32 %v2353_v44, 0.0  ;;  %v6421_v37 = vmax.f32 %v2354_v51, 0.0  ;;  %v6423_v13 = vmax.f32 %v2355_v48, 0.0  ;;  %v6425_v58 = vmax.f32 %v2356_v29, 0.0 }
 0x360   : > { %v6427_v55 = vmax.f32 %v2357_v30, 0.0  ;;  %v6429_v4 = vmax.f32 %v2358_v6, 0.0  ;;  %v6431_v45 = vmax.f32 %v2359_v10, 0.0  ;;  %v6433_v46 = vmax.f32 %v2360_v56, 0.0 }
 0x361   : > { %v6435_v60 = vmax.f32 %v2361_v11, 0.0  ;;  %v6437_v8 = vmax.f32 %v2362_v19, 0.0  ;;  %v6439_v5 = vmax.f32 %v2363_v21, 0.0  ;;  %v6441_v53 = vmax.f32 %v2364_v12, 0.0  ;;  %v6475_v21 = vld [vmem:[%s7940_s4 + $0x8] sm:$0xf] }
 0x362   : > { %v6443_v17 = vmax.f32 %v2365_v0, 0.0  ;;  %v2400_v7 = vrot.slane %v6385_v52, 7  ;;  %v2401_v33 = vrot.slane %v6389_v9, 7  ;;  %v2402_v31 = vrot.slane %v6393_v34, 7 }
 0x363   : > { %v2403_v26 = vrot.slane %v6397_v1, 7  ;;  %v2404_v22 = vrot.slane %v6401_v18, 7  ;;  %v2405_v59 = vrot.slane %v6405_v23, 7  ;;  %v2496_v16 = vrot.slane %v6385_v52, 1 }
 0x364   : > { %v2497_v32 = vrot.slane %v6389_v9, 1  ;;  %v2498_v44 = vrot.slane %v6393_v34, 1  ;;  %v2499_v51 = vrot.slane %v6397_v1, 1  ;;  %v2500_v48 = vrot.slane %v6401_v18, 1 }
 0x365   : > { %v3372_v39 = vpack.c.b16 %v3371_v61, %v3371_v61  ;;  %v3510_v63 = vsel %vm762_vm0, %v6475_v21, 0  ;;  %v2592_v54 = vpack.c.bf16 %v6385_v52, %v6385_v52  ;;  %v2593_v19 = vpack.c.bf16 %v6387_v2, %v6387_v2 }
 0x366   : > { %3519 = vmatpush.bf16.msrb.mxu1 %v3510_v63  ;;  %v2416_v11 = vrot.slane %v6387_v2, 7  ;;  %v2512_v12 = vrot.slane %v6387_v2, 1  ;;  %v2594_v61 = vpack.c.bf16 %v6389_v9, %v6389_v9  ;;  %v2595_v0 = vpack.c.bf16 %v6391_v24, %v6391_v24 }
 0x367   : > { %v3373_v49 = vrot.slane %v3372_v39, 2  ;;  %v2723_v56 = vunpack.c.l.b16 %v2592_v54  ;;  %v2724_v20 = vunpack.c.l.b16 %v2593_v19 }
 0x368   : > { %v2432_v28 = vsel %vm351_vm2, %v2400_v7, %v2416_v11  ;;  %v2448_v52 = vsel %vm351_vm2, %v2416_v11, %v2400_v7  ;;  %v2528_v38 = vsel %vm454_vm4, %v2496_v16, %v2512_v12  ;;  %v2544_v19 = vsel %vm454_vm4, %v2512_v12, %v2496_v16 }
 0x369   : > { %v3378_v10 = vsel %vm762_vm0, %v3373_v49, 0  ;;  %v2464_v39 = vsel %vm315_vm3, 0.0, %v2448_v52  ;;  %v2625_v2 = vpack.c.bf16 %v2432_v28, %v2432_v28  ;;  %v6501_v6 = vpack.c.b16 %v2724_v20, %v2723_v56 }
 0x36a   : > { %3387 = vmatpush.bf16.msrb.mxu0 %v3378_v10  ;;  %v2624_v54 = vpack.c.bf16 %v2464_v39, %v2464_v39  ;;  %v2656_v47 = vpack.c.bf16 %v2528_v38, %v2528_v38  ;;  %v2561_v7 = vsel %vm318_vm5, 0.0, %v2544_v19  ;;  %v2725_v49 = vunpack.c.l.b16 %v2594_v61 }
 0x36b   : > { %v2940_v30 = vunpack.c.l.b16 %v2625_v2  ;;  %v2726_v11 = vunpack.c.l.b16 %v2595_v0  ;;  %4679 = vmatmul.msk.bf16.gmra.mxu1 %vm713_vm1, %v6501_v6  ;;  %v2657_v52 = vpack.c.bf16 %v2561_v7, %v2561_v7  ;;  %v2417_v20 = vrot.slane %v6391_v24, 7 }
 0x36c   : > { %v2939_v28 = vunpack.c.l.b16 %v2624_v54  ;;  %v3151_v29 = vunpack.c.l.b16 %v2656_v47  ;;  %v2513_v56 = vrot.slane %v6391_v24, 1  ;;  %v2596_v38 = vpack.c.bf16 %v6393_v34, %v6393_v34 }
 0x36d   : > { %v6510_v10 = vpack.c.b16 %v2726_v11, %v2725_v49  ;;  %v2597_v16 = vpack.c.bf16 %v6395_v41, %v6395_v41  ;;  %v3152_v0 = vunpack.c.l.b16 %v2657_v52  ;;  %v2433_v61 = vsel %vm351_vm2, %v2401_v33, %v2417_v20 }
 0x36e   : > { %v2969_v12 = vpack.c.b16 %v2940_v30, %v2939_v28  ;;  %v2449_v47 = vsel %vm351_vm2, %v2417_v20, %v2401_v33  ;;  %v2627_v39 = vpack.c.bf16 %v2433_v61, %v2433_v61  ;;  %v2529_v2 = vsel %vm454_vm4, %v2497_v32, %v2513_v56 }
 0x36f   : > { %v2466_v24 = vsel %vm315_vm3, 0.0, %v2449_v47  ;;  %v2545_v30 = vsel %vm454_vm4, %v2513_v56, %v2497_v32  ;;  %v6532_v54 = vpack.c.b16 %v3152_v0, %v3151_v29  ;;  %v2658_v19 = vpack.c.bf16 %v2529_v2, %v2529_v2 }
 0x370   : > { %4695 = vmatmul.msk.bf16.gmra.mxu2 %vm713_vm1, %v2969_v12  ;;  %4726 = vmatmul.msk.bf16.vlgmr.msrb.gmra.mxu0 %vm713_vm1, %v2969_v12  ;;  %v2626_v9 = vpack.c.bf16 %v2466_v24, %v2466_v24  ;;  %v2563_v33 = vsel %vm318_vm5, 0.0, %v2545_v30  ;;  %v2942_v7 = vunpack.c.l.b16 %v2627_v39  ;;  %v2727_v11 = vunpack.c.l.b16 %v2596_v38 }
 0x371   : > { %v2659_v49 = vpack.c.bf16 %v2563_v33, %v2563_v33  ;;  %v2728_v28 = vunpack.c.l.b16 %v2597_v16  ;;  %4711 = vmatmul.msk.bf16.gmra.mxu3 %vm713_vm1, %v6532_v54  ;;  %v3153_v32 = vunpack.c.l.b16 %v2658_v19  ;;  %v2418_v20 = vrot.slane %v6395_v41, 7 }
 0x372   : > { %v2941_v52 = vunpack.c.l.b16 %v2626_v9  ;;  %v2514_v29 = vrot.slane %v6395_v41, 1  ;;  %v2598_v0 = vpack.c.bf16 %v6397_v1, %v6397_v1  ;;  %v2599_v61 = vpack.c.bf16 %v6399_v25, %v6399_v25 }
 0x373   : > { %v3154_v56 = vunpack.c.l.b16 %v2659_v49  ;;  %v6541_v12 = vpack.c.b16 %v2728_v28, %v2727_v11  ;;  %v2434_v16 = vsel %vm351_vm2, %v2402_v31, %v2418_v20  ;;  %v2450_v41 = vsel %vm351_vm2, %v2418_v20, %v2402_v31 }
 0x374   : > { %v6547_v38 = vpack.c.b16 %v2942_v7, %v2941_v52  ;;  %v2530_v47 = vsel %vm454_vm4, %v2498_v44, %v2514_v29  ;;  %v2468_v39 = vsel %vm315_vm3, 0.0, %v2450_v41  ;;  %v2629_v2 = vpack.c.bf16 %v2434_v16, %v2434_v16 }
 0x375   : > { %v6561_v24 = vpack.c.b16 %v3154_v56, %v3153_v32  ;;  %v2546_v30 = vsel %vm454_vm4, %v2514_v29, %v2498_v44  ;;  %v2628_v9 = vpack.c.bf16 %v2468_v39, %v2468_v39  ;;  %v2660_v33 = vpack.c.bf16 %v2530_v47, %v2530_v47 }
 0x376   : > { %v2565_v31 = vsel %vm318_vm5, 0.0, %v2546_v30  ;;  %v2729_v19 = vunpack.c.l.b16 %v2598_v0  ;;  %v2944_v7 = vunpack.c.l.b16 %v2629_v2  ;;  %v2730_v11 = vunpack.c.l.b16 %v2599_v61 }
 0x377   : > { %v2661_v49 = vpack.c.bf16 %v2565_v31, %v2565_v31  ;;  %v2419_v28 = vrot.slane %v6399_v25, 7  ;;  %v2943_v52 = vunpack.c.l.b16 %v2628_v9  ;;  %v3155_v32 = vunpack.c.l.b16 %v2660_v33 }
 0x378   : > { %v2515_v20 = vrot.slane %v6399_v25, 1  ;;  %v2600_v34 = vpack.c.bf16 %v6401_v18, %v6401_v18  ;;  %v6575_v44 = vpack.c.b16 %v2730_v11, %v2729_v19  ;;  %v2601_v31 = vpack.c.bf16 %v6403_v3, %v6403_v3 }
 0x379   : > { %v3156_v56 = vunpack.c.l.b16 %v2661_v49  ;;  %v2435_v29 = vsel %vm351_vm2, %v2403_v26, %v2419_v28  ;;  %v2451_v0 = vsel %vm351_vm2, %v2419_v28, %v2403_v26  ;;  %v6585_v61 = vpack.c.b16 %v2944_v7, %v2943_v52 }
 0x37a   : > { %8249 = vst [vmem:[#allocation41_spill] sm:$0xff] %v6575_v44  ;;  %v2470_v25 = vsel %vm315_vm3, 0.0, %v2451_v0  ;;  %v2631_v16 = vpack.c.bf16 %v2435_v29, %v2435_v29  ;;  %v2531_v41 = vsel %vm454_vm4, %v2499_v51, %v2515_v20  ;;  %v2547_v2 = vsel %vm454_vm4, %v2515_v20, %v2499_v51 }
 0x37b   : > { %v6593_v47 = vpack.c.b16 %v3156_v56, %v3155_v32  ;;  %v2630_v39 = vpack.c.bf16 %v2470_v25, %v2470_v25  ;;  %v2662_v26 = vpack.c.bf16 %v2531_v41, %v2531_v41  ;;  %4680 = vmatmul.msk.bf16.gmra.mxu1 %vm713_vm1, %v6510_v10  ;;  %v2567_v9 = vsel %vm318_vm5, 0.0, %v2547_v2 }
 0x37c   : > { %v2946_v30 = vunpack.c.l.b16 %v2631_v16  ;;  %v2731_v33 = vunpack.c.l.b16 %v2600_v34  ;;  %v2663_v7 = vpack.c.bf16 %v2567_v9, %v2567_v9  ;;  %v2420_v1 = vrot.slane %v6403_v3, 7 }
 0x37d   : > { %v2945_v19 = vunpack.c.l.b16 %v2630_v39  ;;  %v3157_v49 = vunpack.c.l.b16 %v2662_v26  ;;  %v2732_v11 = vunpack.c.l.b16 %v2601_v31  ;;  %v2516_v51 = vrot.slane %v6403_v3, 1 }
 0x37e   : > { %v2602_v28 = vpack.c.bf16 %v6405_v23, %v6405_v23  ;;  %v2603_v52 = vpack.c.bf16 %v6407_v50, %v6407_v50  ;;  %v3158_v20 = vunpack.c.l.b16 %v2663_v7  ;;  %v2436_v34 = vsel %vm351_vm2, %v2404_v22, %v2420_v1 }
 0x37f   : > { %v6611_v32 = vpack.c.b16 %v2946_v30, %v2945_v19  ;;  %v2452_v56 = vsel %vm351_vm2, %v2420_v1, %v2404_v22  ;;  %v6625_v3 = vpack.c.b16 %v2732_v11, %v2731_v33  ;;  %v2633_v0 = vpack.c.bf16 %v2436_v34, %v2436_v34 }
 0x380   : > { %4696 = vmatmul.msk.bf16.gmra.mxu2 %vm713_vm1, %v6547_v38  ;;  %4727 = vmatmul.msk.bf16.gmra.mxu0 %vm713_vm1, %v6547_v38  ;;  %v2472_v29 = vsel %vm315_vm3, 0.0, %v2452_v56  ;;  %v2532_v25 = vsel %vm454_vm4, %v2500_v48, %v2516_v51  ;;  %v6633_v16 = vpack.c.b16 %v3158_v20, %v3157_v49  ;;  %v2548_v41 = vsel %vm454_vm4, %v2516_v51, %v2500_v48 }
 0x381   : > { %8250 = vst [vmem:[#allocation44_spill] sm:$0xff] %v6625_v3  ;;  %v2632_v22 = vpack.c.bf16 %v2472_v29, %v2472_v29  ;;  %v2664_v39 = vpack.c.bf16 %v2532_v25, %v2532_v25  ;;  %4712 = vmatmul.msk.bf16.gmra.mxu3 %vm713_vm1, %v6561_v24  ;;  %v2948_v2 = vunpack.c.l.b16 %v2633_v0  ;;  %v2569_v26 = vsel %vm318_vm5, 0.0, %v2548_v41 }
 0x382   : > { %8251 = vst [vmem:[#allocation47_spill] sm:$0xff] %v6633_v16  ;;  %v2733_v30 = vunpack.c.l.b16 %v2602_v28  ;;  %v2734_v9 = vunpack.c.l.b16 %v2603_v52  ;;  %v2665_v33 = vpack.c.bf16 %v2569_v26, %v2569_v26  ;;  %v2421_v7 = vrot.slane %v6407_v50, 7 }
 0x383   : > { %v2947_v31 = vunpack.c.l.b16 %v2632_v22  ;;  %v3159_v19 = vunpack.c.l.b16 %v2664_v39  ;;  %v2517_v18 = vrot.slane %v6407_v50, 1  ;;  %v2604_v48 = vpack.c.bf16 %v6409_v36, %v6409_v36 }
 0x384   : > { %v6644_v49 = vpack.c.b16 %v2734_v9, %v2733_v30  ;;  %v2605_v1 = vpack.c.bf16 %v6411_v27, %v6411_v27  ;;  %v3160_v51 = vunpack.c.l.b16 %v2665_v33  ;;  %v2437_v28 = vsel %vm351_vm2, %v2405_v59, %v2421_v7 }
 0x385   : > { %v6651_v11 = vpack.c.b16 %v2948_v2, %v2947_v31  ;;  %v2453_v52 = vsel %vm351_vm2, %v2421_v7, %v2405_v59  ;;  %v2635_v20 = vpack.c.bf16 %v2437_v28, %v2437_v28  ;;  %v8253_v34 = vrot.slane %v6405_v23, 1 }
 0x386   : > { %v2474_v50 = vsel %vm315_vm3, 0.0, %v2453_v52  ;;  %v6671_v25 = vpack.c.b16 %v3160_v51, %v3159_v19  ;;  %v2735_v26 = vunpack.c.l.b16 %v2604_v48  ;;  %v2736_v30 = vunpack.c.l.b16 %v2605_v1 }
 0x387   : > { %8252 = vst [vmem:[#allocation64_spill] sm:$0xff] %v6651_v11  ;;  %v2533_v56 = vsel %vm454_vm4, %v8253_v34, %v2517_v18  ;;  %v8254_v29 = vmov %v8253_v34  ;;  %v2634_v22 = vpack.c.bf16 %v2474_v50, %v2474_v50  ;;  %v2950_v39 = vunpack.c.l.b16 %v2635_v20 }
 0x388   : > { %v2549_v0 = vsel %vm454_vm4, %v2517_v18, %v8254_v29  ;;  %8255 = vst [vmem:[#allocation63_spill] sm:$0xff] %v6671_v25  ;;  %v2666_v41 = vpack.c.bf16 %v2533_v56, %v2533_v56  ;;  %v2422_v33 = vrot.slane %v6411_v27, 7  ;;  %v2518_v23 = vrot.slane %v6411_v27, 1 }
 0x389   : > { %v2571_v59 = vsel %vm318_vm5, 0.0, %v2549_v0  ;;  %v2949_v9 = vunpack.c.l.b16 %v2634_v22  ;;  %v6677_v28 = vpack.c.b16 %v2736_v30, %v2735_v26  ;;  %v2606_v19 = vpack.c.bf16 %v6413_v35, %v6413_v35 }
 0x38a   : > { %v2667_v2 = vpack.c.bf16 %v2571_v59, %v2571_v59  ;;  %v3161_v31 = vunpack.c.l.b16 %v2666_v41  ;;  %v2607_v18 = vpack.c.bf16 %v6415_v40, %v6415_v40  ;;  %v8256_v48 = vrot.slane %v6409_v36, 7 }
 0x38b   : > { %v6683_v51 = vpack.c.b16 %v2950_v39, %v2949_v9  ;;  %v8258_v50 = vrot.slane %v6409_v36, 1  ;;  %4681 = vmatmul.msk.bf16.gmra.mxu1 %vm713_vm1, %v6541_v12  ;;  %v2608_v36 = vpack.c.bf16 %v6417_v57, %v6417_v57 }
 0x38c   : > { %v3162_v7 = vunpack.c.l.b16 %v2667_v2  ;;  %v2438_v1 = vsel %vm351_vm2, %v8256_v48, %v2422_v33  ;;  %v8257_v52 = vmov %v8256_v48  ;;  %v2737_v2 = vunpack.c.l.b16 %v2606_v19 }
 0x38d   : > { %v2454_v27 = vsel %vm351_vm2, %v2422_v33, %v8257_v52  ;;  %v2534_v20 = vsel %vm454_vm4, %v8258_v50, %v2518_v23  ;;  %v2637_v29 = vpack.c.bf16 %v2438_v1, %v2438_v1  ;;  %v8259_v0 = vmov %v8258_v50 }
 0x38e   : > { %v6699_v34 = vpack.c.b16 %v3162_v7, %v3161_v31  ;;  %v2476_v56 = vsel %vm315_vm3, 0.0, %v2454_v27  ;;  %v2550_v22 = vsel %vm454_vm4, %v2518_v23, %v8259_v0  ;;  %v2668_v39 = vpack.c.bf16 %v2534_v20, %v2534_v20 }
 0x38f   : > { %v2636_v59 = vpack.c.bf16 %v2476_v56, %v2476_v56  ;;  %v2573_v41 = vsel %vm318_vm5, 0.0, %v2550_v22  ;;  %v2952_v26 = vunpack.c.l.b16 %v2637_v29  ;;  %v2738_v9 = vunpack.c.l.b16 %v2607_v18 }
 0x390   : > { %v2669_v30 = vpack.c.bf16 %v2573_v41, %v2573_v41  ;;  %v2423_v31 = vrot.slane %v6415_v40, 7  ;;  %v3163_v7 = vunpack.c.l.b16 %v2668_v39  ;;  %v2519_v48 = vrot.slane %v6415_v40, 1  ;;  %4697 = vmatmul.msk.bf16.gmra.mxu2 %vm713_vm1, %v6585_v61  ;;  %4728 = vmatmul.msk.bf16.gmra.mxu0 %vm713_vm1, %v6585_v61 }
 0x391   : > { %v2951_v33 = vunpack.c.l.b16 %v2636_v59  ;;  %v6717_v19 = vpack.c.b16 %v2738_v9, %v2737_v2  ;;  %v8260_v18 = vrot.slane %v6413_v35, 7  ;;  %v8262_v56 = vrot.slane %v6413_v35, 1  ;;  %4713 = vmatmul.msk.bf16.gmra.mxu3 %vm713_vm1, %v6593_v47 }
 0x392   : > { %v3164_v23 = vunpack.c.l.b16 %v2669_v30  ;;  %v2609_v30 = vpack.c.bf16 %v6419_v14, %v6419_v14  ;;  %v2739_v9 = vunpack.c.l.b16 %v2608_v36  ;;  %v2520_v35 = vrot.slane %v6419_v14, 1 }
 0x393   : > { %v2439_v1 = vsel %vm351_vm2, %v8260_v18, %v2423_v31  ;;  %v8261_v52 = vmov %v8260_v18  ;;  %v6727_v27 = vpack.c.b16 %v2952_v26, %v2951_v33  ;;  %v2535_v29 = vsel %vm454_vm4, %v8262_v56, %v2519_v48 }
 0x394   : > { %v2455_v40 = vsel %vm351_vm2, %v2423_v31, %v8261_v52  ;;  %v2639_v20 = vpack.c.bf16 %v2439_v1, %v2439_v1  ;;  %v6737_v0 = vpack.c.b16 %v3164_v23, %v3163_v7  ;;  %v8263_v59 = vmov %v8262_v56 }
 0x395   : > { %v2478_v50 = vsel %vm315_vm3, 0.0, %v2455_v40  ;;  %v2551_v41 = vsel %vm454_vm4, %v2519_v48, %v8263_v59  ;;  %v2670_v39 = vpack.c.bf16 %v2535_v29, %v2535_v29  ;;  %v2424_v7 = vrot.slane %v6419_v14, 7 }
 0x396   : > { %v2638_v22 = vpack.c.bf16 %v2478_v50, %v2478_v50  ;;  %v2954_v2 = vunpack.c.l.b16 %v2639_v20  ;;  %v2575_v26 = vsel %vm318_vm5, 0.0, %v2551_v41  ;;  %v2740_v23 = vunpack.c.l.b16 %v2609_v30 }
 0x397   : > { %v2671_v33 = vpack.c.bf16 %v2575_v26, %v2575_v26  ;;  %v3165_v18 = vunpack.c.l.b16 %v2670_v39  ;;  %v2610_v48 = vpack.c.bf16 %v6421_v37, %v6421_v37  ;;  %v2611_v1 = vpack.c.bf16 %v6423_v13, %v6423_v13 }
 0x398   : > { %v2953_v31 = vunpack.c.l.b16 %v2638_v22  ;;  %v8264_v50 = vrot.slane %v6417_v57, 7  ;;  %v6763_v14 = vpack.c.b16 %v2740_v23, %v2739_v9  ;;  %v8266_v59 = vrot.slane %v6417_v57, 1 }
 0x399   : > { %v3166_v40 = vunpack.c.l.b16 %v2671_v33  ;;  %v2742_v23 = vunpack.c.l.b16 %v2611_v1  ;;  %v2612_v57 = vpack.c.bf16 %v6425_v58, %v6425_v58 }
 0x39a   : > { %v6753_v52 = vpack.c.b16 %v2954_v2, %v2953_v31  ;;  %v2440_v36 = vsel %vm351_vm2, %v8264_v50, %v2424_v7  ;;  %v8265_v20 = vmov %v8264_v50  ;;  %v2536_v41 = vsel %vm454_vm4, %v8266_v59, %v2520_v35 }
 0x39b   : > { %v2456_v56 = vsel %vm351_vm2, %v2424_v7, %v8265_v20  ;;  %v2641_v22 = vpack.c.bf16 %v2440_v36, %v2440_v36  ;;  %v6771_v39 = vpack.c.b16 %v3166_v40, %v3165_v18  ;;  %v8267_v26 = vmov %v8266_v59  ;;  %4682 = vmatmul.msk.bf16.gmra.mxu1 %vm713_vm1, %v6575_v44 }
 0x39c   : > { %v2480_v29 = vsel %vm315_vm3, 0.0, %v2456_v56  ;;  %v2552_v30 = vsel %vm454_vm4, %v2520_v35, %v8267_v26  ;;  %v2672_v31 = vpack.c.bf16 %v2536_v41, %v2536_v41  ;;  %v2741_v7 = vunpack.c.l.b16 %v2610_v48 }
 0x39d   : > { %v2640_v2 = vpack.c.bf16 %v2480_v29, %v2480_v29  ;;  %v2956_v9 = vunpack.c.l.b16 %v2641_v22  ;;  %v2577_v33 = vsel %vm318_vm5, 0.0, %v2552_v30  ;;  %v2425_v56 = vrot.slane %v6423_v13, 7 }
 0x39e   : > { %v2673_v36 = vpack.c.bf16 %v2577_v33, %v2577_v33  ;;  %v3167_v20 = vunpack.c.l.b16 %v2672_v31  ;;  %v6780_v18 = vpack.c.b16 %v2742_v23, %v2741_v7  ;;  %v2521_v40 = vrot.slane %v6423_v13, 1 }
 0x39f   : > { %v2955_v50 = vunpack.c.l.b16 %v2640_v2  ;;  %v2613_v35 = vpack.c.bf16 %v6427_v55, %v6427_v55  ;;  %v8269_v29 = vrot.slane %v6421_v37, 7  ;;  %v8271_v26 = vrot.slane %v6421_v37, 1 }
 0x3a0   : > { %8268 = vst [vmem:[#allocation67_spill] sm:$0xff] %v6780_v18  ;;  %v3168_v1 = vunpack.c.l.b16 %v2673_v36  ;;  %4698 = vmatmul.msk.bf16.gmra.mxu2 %vm713_vm1, %v6611_v32  ;;  %4729 = vmatmul.msk.bf16.gmra.mxu0 %vm713_vm1, %v6611_v32  ;;  %v2526_v44 = vrot.slane %v6443_v17, 1 }
 0x3a1   : > { %v6789_v48 = vpack.c.b16 %v2956_v9, %v2955_v50  ;;  %v2441_v22 = vsel %vm351_vm2, %v8269_v29, %v2425_v56  ;;  %v8270_v59 = vmov %v8269_v29  ;;  %v2537_v30 = vsel %vm454_vm4, %v8271_v26, %v2521_v40  ;;  %4714 = vmatmul.msk.bf16.gmra.mxu3 %vm713_vm1, %v6633_v16 }
 0x3a2   : > { %v2457_v13 = vsel %vm351_vm2, %v2425_v56, %v8270_v59  ;;  %v2643_v2 = vpack.c.bf16 %v2441_v22, %v2441_v22  ;;  %v8272_v31 = vmov %v8271_v26  ;;  %v6809_v33 = vpack.c.b16 %v3168_v1, %v3167_v20 }
 0x3a3   : > { %v2482_v41 = vsel %vm315_vm3, 0.0, %v2457_v13  ;;  %v2553_v9 = vsel %vm454_vm4, %v2521_v40, %v8272_v31  ;;  %v2674_v50 = vpack.c.bf16 %v2537_v30, %v2537_v30  ;;  %v2743_v29 = vunpack.c.l.b16 %v2612_v57 }
 0x3a4   : > { %v2642_v7 = vpack.c.bf16 %v2482_v41, %v2482_v41  ;;  %v2579_v23 = vsel %vm318_vm5, 0.0, %v2553_v9  ;;  %v2958_v36 = vunpack.c.l.b16 %v2643_v2  ;;  %v2744_v22 = vunpack.c.l.b16 %v2613_v35 }
 0x3a5   : > { %v2675_v56 = vpack.c.bf16 %v2579_v23, %v2579_v23  ;;  %v3169_v59 = vunpack.c.l.b16 %v2674_v50  ;;  %v2426_v20 = vrot.slane %v6427_v55, 7  ;;  %v2522_v40 = vrot.slane %v6427_v55, 1 }
 0x3a6   : > { %v2957_v37 = vunpack.c.l.b16 %v2642_v7  ;;  %v6819_v13 = vpack.c.b16 %v2744_v22, %v2743_v29  ;;  %v2614_v41 = vpack.c.bf16 %v6429_v4, %v6429_v4  ;;  %v2615_v57 = vpack.c.bf16 %v6431_v45, %v6431_v45 }
 0x3a7   : > { %v3170_v1 = vunpack.c.l.b16 %v2675_v56  ;;  %v8274_v2 = vrot.slane %v6425_v58, 7  ;;  %v8276_v31 = vrot.slane %v6425_v58, 1  ;;  %v2616_v58 = vpack.c.bf16 %v6433_v46, %v6433_v46 }
 0x3a8   : > { %8273 = vst [vmem:[#allocation37_spill] sm:$0xff] %v6819_v13  ;;  %v6827_v35 = vpack.c.b16 %v2958_v36, %v2957_v37 }
 0x3a9   : > { %v2442_v26 = vsel %vm351_vm2, %v8274_v2, %v2426_v20  ;;  %v8275_v55 = vmov %v8274_v2  ;;  %v2538_v9 = vsel %vm454_vm4, %v8276_v31, %v2522_v40  ;;  %v6841_v7 = vpack.c.b16 %v3170_v1, %v3169_v59 }
 0x3aa   : > { %v2458_v30 = vsel %vm351_vm2, %v2426_v20, %v8275_v55  ;;  %v2645_v50 = vpack.c.bf16 %v2442_v26, %v2442_v26  ;;  %v8277_v36 = vmov %v8276_v31  ;;  %v2676_v37 = vpack.c.bf16 %v2538_v9, %v2538_v9 }
 0x3ab   : > { %v2484_v23 = vsel %vm315_vm3, 0.0, %v2458_v30  ;;  %v2554_v56 = vsel %vm454_vm4, %v2522_v40, %v8277_v36  ;;  %v2745_v20 = vunpack.c.l.b16 %v2614_v41  ;;  %v2746_v31 = vunpack.c.l.b16 %v2615_v57  ;;  %4683 = vmatmul.msk.bf16.gmra.mxu1 %vm713_vm1, %v6625_v3 }
 0x3ac   : > { %v2644_v29 = vpack.c.bf16 %v2484_v23, %v2484_v23  ;;  %v2581_v22 = vsel %vm318_vm5, 0.0, %v2554_v56  ;;  %v2960_v2 = vunpack.c.l.b16 %v2645_v50  ;;  %v2427_v59 = vrot.slane %v6431_v45, 7 }
 0x3ad   : > { %v2677_v55 = vpack.c.bf16 %v2581_v22, %v2581_v22  ;;  %v3171_v43 = vunpack.c.l.b16 %v2676_v37  ;;  %v2523_v26 = vrot.slane %v6431_v45, 1  ;;  %v6855_v40 = vpack.c.b16 %v2746_v31, %v2745_v20 }
 0x3ae   : > { %v2959_v1 = vunpack.c.l.b16 %v2644_v29  ;;  %v8279_v23 = vrot.slane %v6429_v4, 7  ;;  %v8281_v56 = vrot.slane %v6429_v4, 1 }
 0x3af   : > { %v3172_v30 = vunpack.c.l.b16 %v2677_v55  ;;  %8278 = vst [vmem:[#allocation68_spill] sm:$0xff] %v6855_v40 }
 0x3b0   : > { %v2443_v41 = vsel %vm351_vm2, %v8279_v23, %v2427_v59  ;;  %v8280_v9 = vmov %v8279_v23  ;;  %v6865_v50 = vpack.c.b16 %v2960_v2, %v2959_v1  ;;  %v2539_v29 = vsel %vm454_vm4, %v8281_v56, %v2523_v26  ;;  %4699 = vmatmul.msk.bf16.gmra.mxu2 %vm713_vm1, %v6651_v11  ;;  %4730 = vmatmul.msk.bf16.gmra.mxu0 %vm713_vm1, %v6651_v11 }
 0x3b1   : > { %v2459_v57 = vsel %vm351_vm2, %v2427_v59, %v8280_v9  ;;  %v2647_v36 = vpack.c.bf16 %v2443_v41, %v2443_v41  ;;  %v6873_v22 = vpack.c.b16 %v3172_v30, %v3171_v43  ;;  %v8282_v20 = vmov %v8281_v56  ;;  %4715 = vmatmul.msk.bf16.gmra.mxu3 %vm713_vm1, %v6671_v25 }
 0x3b2   : > { %v2486_v45 = vsel %vm315_vm3, 0.0, %v2459_v57  ;;  %v2555_v55 = vsel %vm454_vm4, %v2523_v26, %v8282_v20  ;;  %v2678_v31 = vpack.c.bf16 %v2539_v29, %v2539_v29  ;;  %v2617_v1 = vpack.c.bf16 %v6435_v60, %v6435_v60 }
 0x3b3   : > { %v2646_v37 = vpack.c.bf16 %v2486_v45, %v2486_v45  ;;  %v2962_v2 = vunpack.c.l.b16 %v2647_v36  ;;  %v2583_v59 = vsel %vm318_vm5, 0.0, %v2555_v55  ;;  %v2747_v23 = vunpack.c.l.b16 %v2616_v58 }
 0x3b4   : > { %v2679_v9 = vpack.c.bf16 %v2583_v59, %v2583_v59  ;;  %v3173_v57 = vunpack.c.l.b16 %v2678_v31  ;;  %v2428_v43 = vrot.slane %v6435_v60, 7  ;;  %v2748_v4 = vunpack.c.l.b16 %v2617_v1 }
 0x3b5   : > { %v2961_v41 = vunpack.c.l.b16 %v2646_v37  ;;  %v2524_v26 = vrot.slane %v6435_v60, 1  ;;  %v2618_v30 = vpack.c.bf16 %v6437_v8, %v6437_v8  ;;  %v2619_v45 = vpack.c.bf16 %v6439_v5, %v6439_v5 }
 0x3b6   : > { %v3174_v58 = vunpack.c.l.b16 %v2679_v9  ;;  %v8283_v56 = vrot.slane %v6433_v46, 7  ;;  %v6901_v60 = vpack.c.b16 %v2748_v4, %v2747_v23  ;;  %v8290_v25 = vrot.slane %v6437_v8, 1 }
 0x3b7   : > { %v6891_v36 = vpack.c.b16 %v2962_v2, %v2961_v41  ;;  %v8286_v2 = vrot.slane %v6433_v46, 1  ;;  %v2429_v46 = vrot.slane %v6439_v5, 7 }
 0x3b8   : > { %v2444_v29 = vsel %vm351_vm2, %v8283_v56, %v2428_v43  ;;  %v8284_v37 = vmov %v8283_v56  ;;  %8285 = vst [vmem:[#allocation12_spill] sm:$0xff] %v6901_v60  ;;  %v6909_v1 = vpack.c.b16 %v3174_v58, %v3173_v57  ;;  %v2750_v57 = vunpack.c.l.b16 %v2619_v45 }
 0x3b9   : > { %v2460_v20 = vsel %vm351_vm2, %v2428_v43, %v8284_v37  ;;  %v2649_v31 = vpack.c.bf16 %v2444_v29, %v2444_v29  ;;  %v2540_v59 = vsel %vm454_vm4, %v8286_v2, %v2524_v26  ;;  %v8287_v9 = vmov %v8286_v2 }
 0x3ba   : > { %v2488_v55 = vsel %vm315_vm3, 0.0, %v2460_v20  ;;  %v2556_v56 = vsel %vm454_vm4, %v2524_v26, %v8287_v9  ;;  %v2680_v43 = vpack.c.bf16 %v2540_v59, %v2540_v59  ;;  %v2749_v29 = vunpack.c.l.b16 %v2618_v30  ;;  %v2829_v26 = vpop.f32.mrf.mxu1 }
 0x3bb   : > { %v2648_v41 = vpack.c.bf16 %v2488_v55, %v2488_v55  ;;  %v2964_v23 = vunpack.c.l.b16 %v2649_v31  ;;  %v2585_v4 = vsel %vm318_vm5, 0.0, %v2556_v56  ;;  %v3041_v55 = vpop.f32.mrf.mxu2  ;;  %v2525_v59 = vrot.slane %v6439_v5, 1  ;;  %4684 = vmatmul.msk.bf16.gmra.mxu1 %vm713_vm1, %v6644_v49 }
 0x3bc   : > { %v2681_v37 = vpack.c.bf16 %v2585_v4, %v2585_v4  ;;  %v3175_v20 = vunpack.c.l.b16 %v2680_v43  ;;  %v6924_v2 = vpack.c.b16 %v2750_v57, %v2749_v29  ;;  %v2620_v31 = vpack.c.bf16 %v6441_v53, %v6441_v53  ;;  %v3253_v4 = vpop.f32.mrf.mxu3 }
 0x3bd   : > { %v2963_v58 = vunpack.c.l.b16 %v2648_v41  ;;  %v2621_v30 = vpack.c.bf16 %v6443_v17, %v6443_v17  ;;  %v3042_v45 = vadd.f32 %v3041_v55, %v2829_v26  ;;  %v8288_v56 = vrot.slane %v6437_v8, 7 }
 0x3be   : > { %v3176_v9 = vunpack.c.l.b16 %v2681_v37  ;;  %v2541_v26 = vsel %vm454_vm4, %v8290_v25, %v2525_v59  ;;  %v2751_v16 = vunpack.c.l.b16 %v2620_v31  ;;  %v2430_v8 = vrot.slane %v6443_v17, 7 }
 0x3bf   : > { %v6931_v41 = vpack.c.b16 %v2964_v23, %v2963_v58  ;;  %v2445_v43 = vsel %vm351_vm2, %v8288_v56, %v2429_v46  ;;  %v8289_v29 = vmov %v8288_v56  ;;  %v8291_v23 = vmov %v8290_v25 }
 0x3c0   : > { %v2461_v5 = vsel %vm351_vm2, %v2429_v46, %v8289_v29  ;;  %v2651_v57 = vpack.c.bf16 %v2445_v43, %v2445_v43  ;;  %v2557_v58 = vsel %vm454_vm4, %v2525_v59, %v8291_v23  ;;  %v3333_v37 = vadd.f32 %v3253_v4, %v3042_v45  ;;  %4700 = vmatmul.msk.bf16.gmra.mxu2 %vm713_vm1, %v6683_v51 }
 0x3c1   : > { %v6949_v55 = vpack.c.b16 %v3176_v9, %v3175_v20  ;;  %v2490_v56 = vsel %vm315_vm3, 0.0, %v2461_v5  ;;  %v2587_v46 = vsel %vm318_vm5, 0.0, %v2557_v58  ;;  %v2682_v3 = vpack.c.bf16 %v2541_v26, %v2541_v26  ;;  %4731 = vmatmul.msk.bf16.gmra.mxu0 %vm713_vm1, %v6683_v51  ;;  %4716 = vmatmul.msk.bf16.gmra.mxu3 %vm713_vm1, %v6699_v34 }
 0x3c2   : > { %v2650_v43 = vpack.c.bf16 %v2490_v56, %v2490_v56  ;;  %v2966_v29 = vunpack.c.l.b16 %v2651_v57  ;;  %v2683_v11 = vpack.c.bf16 %v2587_v46, %v2587_v46  ;;  %v2752_v25 = vunpack.c.l.b16 %v2621_v30 }
 0x3c3   : > { %8292 = vst [vmem:[#allocation26_spill] sm:$0xff] %v6949_v55  ;;  %v3177_v45 = vunpack.c.l.b16 %v2682_v3  ;;  %v8294_v4 = vrot.slane %v6441_v53, 7  ;;  %v8296_v30 = vrot.slane %v6441_v53, 1 }
 0x3c4   : > { %v2965_v59 = vunpack.c.l.b16 %v2650_v43  ;;  %v3178_v20 = vunpack.c.l.b16 %v2683_v11  ;;  %v6957_v9 = vpack.c.b16 %v2752_v25, %v2751_v16 }
 0x3c5   : > { %v2446_v5 = vsel %vm351_vm2, %v8294_v4, %v2430_v8  ;;  %v8295_v57 = vmov %v8294_v4  ;;  %v2542_v17 = vsel %vm454_vm4, %v8296_v30, %v2526_v44  ;;  %v8298_v58 = vmov %v8296_v30 }
 0x3c6   : > { %8293 = vst [vmem:[#allocation20_spill] sm:$0xff] %v6957_v9  ;;  %v2462_v31 = vsel %vm351_vm2, %v2430_v8, %v8295_v57  ;;  %v6971_v26 = vpack.c.b16 %v2966_v29, %v2965_v59  ;;  %v6973_v3 = vpack.c.b16 %v3178_v20, %v3177_v45  ;;  %v2653_v11 = vpack.c.bf16 %v2446_v5, %v2446_v5  ;;  %v7013_v5 = vpop.f32.mrf.mxu2  ;;  %v7017_v57 = vpop.f32.mrf.mxu3 }
 0x3c7   : > { %v2492_v16 = vsel %vm315_vm3, 0.0, %v2462_v31  ;;  %v2558_v56 = vsel %vm454_vm4, %v2526_v44, %v8298_v58  ;;  %v2684_v46 = vpack.c.bf16 %v2542_v17, %v2542_v17  ;;  %v7009_v44 = vpop.f32.mrf.mxu1 }
 0x3c8   : > { %8297 = vst [vmem:[#allocation48_spill] sm:$0xff] %v6973_v3  ;;  %v2652_v23 = vpack.c.bf16 %v2492_v16, %v2492_v16  ;;  %v2968_v43 = vunpack.c.l.b16 %v2653_v11  ;;  %v2589_v29 = vsel %vm318_vm5, 0.0, %v2558_v56 }
 0x3c9   : > { %v2685_v8 = vpack.c.bf16 %v2589_v29, %v2589_v29  ;;  %v3179_v59 = vunpack.c.l.b16 %v2684_v46 }
 0x3ca   : > { %v2967_v25 = vunpack.c.l.b16 %v2652_v23 }
 0x3cb   : > { %v3180_v20 = vunpack.c.l.b16 %v2685_v8  ;;  %4685 = vmatmul.msk.bf16.gmra.mxu1 %vm713_vm1, %v6677_v28 }
 0x3cc   : > { %v6985_v45 = vpack.c.b16 %v2968_v43, %v2967_v25 }
 0x3cd   : > { %v6991_v53 = vpack.c.b16 %v3180_v20, %v3179_v59 }
 0x3cf   : > { %8299 = vst [vmem:[#allocation30_spill] sm:$0xff] %v6991_v53 }
 0x3d0   : > { %4701 = vmatmul.msk.bf16.gmra.mxu2 %vm713_vm1, %v6727_v27 }
 0x3d1   : > { %4732 = vmatmul.msk.bf16.gmra.mxu0 %vm713_vm1, %v6727_v27  ;;  %4717 = vmatmul.msk.bf16.gmra.mxu3 %vm713_vm1, %v6737_v0 }
 0x3db   : > { %4686 = vmatmul.msk.bf16.gmra.mxu1 %vm713_vm1, %v6717_v19 }
 0x3e0   : > { %4702 = vmatmul.msk.bf16.gmra.mxu2 %vm713_vm1, %v6753_v52 }
 0x3e1   : > { %4733 = vmatmul.msk.bf16.gmra.mxu0 %vm713_vm1, %v6753_v52  ;;  %4718 = vmatmul.msk.bf16.gmra.mxu3 %vm713_vm1, %v6771_v39 }
 0x3e8   : > { %v2834_v4 = vpop.f32.mrf.mxu1 }
 0x3eb   : > { %4687 = vmatmul.msk.bf16.gmra.mxu1 %vm713_vm1, %v6763_v14 }
 0x3ed   : > { %v3389_v31 = vpop.f32.mrf.mxu0 }
 0x3ee   : > { %v7019_v30 = vadd.f32 %v3389_v31, %v3333_v37 }
 0x3f0   : > { %4703 = vmatmul.msk.bf16.gmra.mxu2 %vm713_vm1, %v6789_v48  ;;  %v2836_v17 = vpop.f32.mrf.mxu1 }
 0x3f1   : > { %4734 = vmatmul.msk.bf16.gmra.mxu0 %vm713_vm1, %v6789_v48  ;;  %4719 = vmatmul.msk.bf16.gmra.mxu3 %vm713_vm1, %v6809_v33 }
 0x3f3   : > { %v3046_v16 = vpop.f32.mrf.mxu2 }
 0x3f4   : > { %v3047_v11 = vadd.f32 %v3046_v16, %v2834_v4  ;;  %v3258_v23 = vpop.f32.mrf.mxu3 }
 0x3f5   : > { %v7027_v58 = vpop.f32.mrf.mxu0 }
 0x3f6   : > { %v3335_v56 = vadd.f32 %v3258_v23, %v3047_v11 }
 0x3f8   : > { %v2839_v46 = vpop.f32.mrf.mxu1 }
 0x3fb   : > { %v3048_v43 = vpop.f32.mrf.mxu2  ;;  %4688 = vmatmul.msk.bf16.gmra.mxu1 %vm713_vm1, %v6780_v18 }
 0x3fc   : > { %v3049_v37 = vadd.f32 %v3048_v43, %v2836_v17  ;;  %v3260_v29 = vpop.f32.mrf.mxu3 }
 0x3fd   : > { %v3394_v25 = vpop.f32.mrf.mxu0 }
 0x3fe   : > { %v3336_v8 = vadd.f32 %v3260_v29, %v3049_v37  ;;  %v7031_v59 = vadd.f32 %v3394_v25, %v3335_v56 }
 0x400   : > { %4704 = vmatmul.msk.bf16.gmra.mxu2 %vm713_vm1, %v6827_v35  ;;  %v2841_v20 = vpop.f32.mrf.mxu1 }
 0x401   : > { %4735 = vmatmul.msk.bf16.gmra.mxu0 %vm713_vm1, %v6827_v35  ;;  %4720 = vmatmul.msk.bf16.gmra.mxu3 %vm713_vm1, %v6841_v7 }
 0x403   : > { %v3051_v4 = vpop.f32.mrf.mxu2 }
 0x404   : > { %v3052_v31 = vadd.f32 %v3051_v4, %v2839_v46  ;;  %v3263_v17 = vpop.f32.mrf.mxu3 }
 0x405   : > { %v3396_v16 = vpop.f32.mrf.mxu0 }
 0x406   : > { %v3337_v11 = vadd.f32 %v3263_v17, %v3052_v31  ;;  %v7039_v23 = vadd.f32 %v3396_v16, %v3336_v8 }
 0x408   : > { %v2844_v43 = vpop.f32.mrf.mxu1 }
 0x40b   : > { %v3053_v56 = vpop.f32.mrf.mxu2  ;;  %4689 = vmatmul.msk.bf16.gmra.mxu1 %vm713_vm1, %v6819_v13 }
 0x40c   : > { %v3054_v37 = vadd.f32 %v3053_v56, %v2841_v20  ;;  %v3265_v29 = vpop.f32.mrf.mxu3 }
 0x40d   : > { %v3399_v25 = vpop.f32.mrf.mxu0 }
 0x40e   : > { %v3338_v62 = vadd.f32 %v3265_v29, %v3054_v37  ;;  %v7043_v18 = vadd.f32 %v3399_v25, %v3337_v11 }
 0x410   : > { %8300 = vst [vmem:[#allocation9_spill] sm:$0xff] %v7043_v18  ;;  %4705 = vmatmul.msk.bf16.gmra.mxu2 %vm713_vm1, %v6865_v50  ;;  %v2846_v46 = vpop.f32.mrf.mxu1 }
 0x411   : > { %4736 = vmatmul.msk.bf16.gmra.mxu0 %vm713_vm1, %v6865_v50  ;;  %4721 = vmatmul.msk.bf16.gmra.mxu3 %vm713_vm1, %v6873_v22 }
 0x413   : > { %v3056_v8 = vpop.f32.mrf.mxu2 }
 0x414   : > { %v3057_v20 = vadd.f32 %v3056_v8, %v2844_v43  ;;  %v3268_v4 = vpop.f32.mrf.mxu3 }
 0x415   : > { %v3401_v31 = vpop.f32.mrf.mxu0 }
 0x416   : > { %v3339_v17 = vadd.f32 %v3268_v4, %v3057_v20  ;;  %v7051_v16 = vadd.f32 %v3401_v31, %v3338_v62 }
 0x418   : > { %8301 = vst [vmem:[#allocation59_spill] sm:$0xff] %v7051_v16  ;;  %v2849_v56 = vpop.f32.mrf.mxu1 }
 0x41b   : > { %v3058_v11 = vpop.f32.mrf.mxu2  ;;  %4690 = vmatmul.msk.bf16.gmra.mxu1 %vm713_vm1, %v6855_v40  ;;  %v3639_v40 = vunpack.c.l.b16 %v6475_v21 }
 0x41c   : > { %v3059_v37 = vadd.f32 %v3058_v11, %v2846_v46  ;;  %v3270_v29 = vpop.f32.mrf.mxu3 }
 0x41d   : > { %v3404_v25 = vpop.f32.mrf.mxu0 }
 0x41e   : > { %v3340_v13 = vadd.f32 %v3270_v29, %v3059_v37  ;;  %v7055_v18 = vadd.f32 %v3404_v25, %v3339_v17 }
 0x420   : > { %8302 = vst [vmem:[#allocation55_spill] sm:$0xff] %v7055_v18  ;;  %4706 = vmatmul.msk.bf16.gmra.mxu2 %vm713_vm1, %v6891_v36  ;;  %v2851_v43 = vpop.f32.mrf.mxu1 }
 0x421   : > { %4737 = vmatmul.msk.bf16.gmra.mxu0 %vm713_vm1, %v6891_v36  ;;  %4722 = vmatmul.msk.bf16.gmra.mxu3 %vm713_vm1, %v6909_v1 }
 0x423   : > { %v3061_v62 = vpop.f32.mrf.mxu2 }
 0x424   : > { %v3062_v46 = vadd.f32 %v3061_v62, %v2849_v56  ;;  %v3273_v8 = vpop.f32.mrf.mxu3  ;;  %v3640_v56 = vpack.c.b16 %v3639_v40, %v3639_v40 }
 0x425   : > { %v3406_v20 = vpop.f32.mrf.mxu0 }
 0x426   : > { %v3341_v4 = vadd.f32 %v3273_v8, %v3062_v46  ;;  %v7063_v31 = vadd.f32 %v3406_v20, %v3340_v13  ;;  %v3641_v8 = vrot.slane %v3640_v56, 2 }
 0x428   : > { %8303 = vst [vmem:[#allocation49_spill] sm:$0xff] %v7063_v31  ;;  %v2854_v11 = vpop.f32.mrf.mxu1 }
 0x42b   : > { %v3063_v17 = vpop.f32.mrf.mxu2  ;;  %4691 = vmatmul.msk.bf16.gmra.mxu1 %vm713_vm1, %v6901_v60 }
 0x42c   : > { %v3064_v37 = vadd.f32 %v3063_v17, %v2851_v43  ;;  %v3275_v29 = vpop.f32.mrf.mxu3  ;;  %v2691_v43 = vld [vmem:[%s7940_s4 + $0xc] sm:$0xf] }
 0x42d   : > { %v3409_v25 = vpop.f32.mrf.mxu0  ;;  %v3770_v21 = vsel %vm762_vm0, %v2691_v43, 0  ;;  %v3894_v17 = vunpack.c.l.b16 %v2691_v43 }
 0x42e   : > { %v3342_v18 = vadd.f32 %v3275_v29, %v3064_v37  ;;  %v7068_v16 = vadd.f32 %v3409_v25, %v3341_v4  ;;  %3779 = vmatpush.bf16.msra.mxu3 %v3770_v21  ;;  %v3646_v25 = vsel %vm762_vm0, %v3641_v8, 0 }
 0x42f   : > { %3655 = vmatpush.bf16.msra.mxu2 %v3646_v25 }
 0x430   : > { %8304 = vst [vmem:[#allocation14_spill] sm:$0xff] %v7068_v16  ;;  %4707 = vmatmul.msk.bf16.gmra.mxu2 %vm713_vm1, %v6931_v41  ;;  %v2856_v13 = vpop.f32.mrf.mxu1 }
 0x431   : > { %4738 = vmatmul.msk.bf16.gmra.mxu0 %vm713_vm1, %v6931_v41  ;;  %4723 = vmatmul.msk.bf16.gmra.mxu3 %vm713_vm1, %v6949_v55  ;;  %v3895_v55 = vpack.c.b16 %v3894_v17, %v3894_v17  ;;  %v7104_v17 = vmax.f32 %v6382_v15, 0.0 }
 0x433   : > { %v3066_v62 = vpop.f32.mrf.mxu2  ;;  %v3896_v16 = vrot.slane %v3895_v55, 2  ;;  %8306 = vst [vmem:[#allocation8_spill] sm:$0xff] %v7104_v17 }
 0x434   : > { %v3067_v46 = vadd.f32 %v3066_v62, %v2854_v11  ;;  %v3278_v20 = vpop.f32.mrf.mxu3 }
 0x435   : > { %v3411_v4 = vpop.f32.mrf.mxu0  ;;  %v3898_v62 = vsel %vm762_vm0, %v3896_v16, 0 }
 0x436   : > { %v3343_v37 = vadd.f32 %v3278_v20, %v3067_v46  ;;  %v7080_v29 = vadd.f32 %v3411_v4, %v3342_v18  ;;  %3907 = vmatpush.bf16.msra.mxu0 %v3898_v62  ;;  %v2692_v18 = vld [vmem:[%s7940_s4 + $0x10] sm:$0x3]  ;;  %v7101_v4 = vmax.f32 %v6361_v42, 0.0 }
 0x437   : > { %v4022_v46 = vsel %vm762_vm0, %v2692_v18, 0 }
 0x438   : > { %v2859_v40 = vpop.f32.mrf.mxu1  ;;  %4031 = vmatpush.bf16.msra.mxu1 %v4022_v46  ;;  %8305 = vst [vmem:[#allocation33_spill] sm:$0xff] %v7101_v4 }
 0x43b   : > { %v3068_v60 = vpop.f32.mrf.mxu2  ;;  %4692 = vmatmul.msk.bf16.gmra.mxu1 %vm713_vm1, %v6924_v2 }
 0x43c   : > { %v3069_v31 = vadd.f32 %v3068_v60, %v2856_v13  ;;  %v3280_v11 = vpop.f32.mrf.mxu3 }
 0x43e   : > { %v3414_v56 = vpop.f32.mrf.mxu0  ;;  %v3344_v21 = vadd.f32 %v3280_v11, %v3069_v31  ;;  %v2415_v11 = vrot.slane %v7104_v17, 7 }
 0x43f   : > { %v7086_v43 = vadd.f32 %v3414_v56, %v3343_v37 }
 0x440   : > { %4708 = vmatmul.msk.bf16.gmra.mxu2 %vm713_vm1, %v6971_v26  ;;  %v2861_v60 = vpop.f32.mrf.mxu1 }
 0x441   : > { %4739 = vmatmul.msk.bf16.gmra.mxu0 %vm713_vm1, %v6971_v26  ;;  %4724 = vmatmul.msk.bf16.gmra.mxu3 %vm713_vm1, %v6973_v3 }
 0x443   : > { %v3071_v55 = vpop.f32.mrf.mxu2 }
 0x444   : > { %v3072_v16 = vadd.f32 %v3071_v55, %v2859_v40  ;;  %v3283_v31 = vpop.f32.mrf.mxu3  ;;  %v2431_v40 = vrot.slane %v7101_v4, 7 }
 0x446   : > { %v3416_v13 = vpop.f32.mrf.mxu0  ;;  %v3345_v8 = vadd.f32 %v3283_v31, %v3072_v16  ;;  %v2463_v42 = vsel %vm351_vm2, %v2431_v40, %v2415_v11  ;;  %v2447_v55 = vsel %vm351_vm2, %v2415_v11, %v2431_v40 }
 0x447   : > { %v7098_v20 = vadd.f32 %v3416_v13, %v3344_v21  ;;  %v2494_v16 = vsel %vm315_vm3, 0.0, %v2463_v42 }
 0x448   : > { %v2864_v37 = vpop.f32.mrf.mxu1 }
 0x44b   : > { %v3073_v25 = vpop.f32.mrf.mxu2  ;;  %4693 = vmatmul.msk.bf16.gmra.mxu1 %vm713_vm1, %v6957_v9 }
 0x44c   : > { %v3074_v56 = vadd.f32 %v3073_v25, %v2861_v60  ;;  %v3285_v62 = vpop.f32.mrf.mxu3 }
 0x44e   : > { %v3419_v18 = vpop.f32.mrf.mxu0  ;;  %v3346_v21 = vadd.f32 %v3285_v62, %v3074_v56  ;;  %v2654_v62 = vpack.c.bf16 %v2494_v16, %v2494_v16 }
 0x44f   : > { %v7110_v46 = vadd.f32 %v3419_v18, %v3345_v8  ;;  %v2655_v18 = vpack.c.bf16 %v2447_v55, %v2447_v55 }
 0x450   : > { %4709 = vmatmul.msk.bf16.gmra.mxu2 %vm713_vm1, %v6985_v45  ;;  %v2866_v15 = vpop.f32.mrf.mxu1  ;;  %v3367_v9 = vunpack.c.l.b16 %v2654_v62 }
 0x451   : > { %8307 = vst [vmem:[#allocation61_spill] sm:$0xff] %v7110_v46  ;;  %4740 = vmatmul.msk.bf16.gmra.mxu0 %vm713_vm1, %v6985_v45  ;;  %4725 = vmatmul.msk.bf16.gmra.mxu3 %vm713_vm1, %v6991_v53  ;;  %v3368_v17 = vunpack.c.l.b16 %v2655_v18 }
 0x453   : > { %v3076_v60 = vpop.f32.mrf.mxu2 }
 0x454   : > { %v3077_v31 = vadd.f32 %v3076_v60, %v2864_v37  ;;  %v3288_v13 = vpop.f32.mrf.mxu3  ;;  %v7130_v37 = vpack.c.b16 %v3368_v17, %v3367_v9 }
 0x456   : > { %v3421_v8 = vpop.f32.mrf.mxu0  ;;  %v3347_v25 = vadd.f32 %v3288_v13, %v3077_v31 }
 0x457   : > { %v7124_v56 = vadd.f32 %v3421_v8, %v3346_v21 }
 0x458   : > { %v2869_v4 = vpop.f32.mrf.mxu1 }
 0x45b   : > { %v3078_v46 = vpop.f32.mrf.mxu2  ;;  %4742 = vmatmul.msk.bf16.vlgmr.msrb.gmra.mxu1 %vm713_vm1, %v6501_v6 }
 0x45c   : > { %v3079_v53 = vadd.f32 %v3078_v46, %v2866_v15  ;;  %v3290_v11 = vpop.f32.mrf.mxu3 }
 0x45e   : > { %v3424_v40 = vpop.f32.mrf.mxu0  ;;  %v3348_v63 = vadd.f32 %v3290_v11, %v3079_v53 }
 0x45f   : > { %v7128_v42 = vadd.f32 %v3424_v40, %v3347_v25 }
 0x460   : > { %4758 = vmatmul.msk.bf16.vlgmr.msra.gmra.mxu2 %vm713_vm1, %v6532_v54  ;;  %v2871_v21 = vpop.f32.mrf.mxu1 }
 0x461   : > { %4741 = vmatmul.msk.bf16.gmra.mxu0 %vm713_vm1, %v7130_v37  ;;  %4774 = vmatmul.msk.bf16.vlgmr.msra.gmra.mxu3 %vm713_vm1, %v6547_v38 }
 0x463   : > { %v3081_v46 = vpop.f32.mrf.mxu2 }
 0x464   : > { %v3082_v15 = vadd.f32 %v3081_v46, %v2869_v4  ;;  %v3293_v6 = vpop.f32.mrf.mxu3 }
 0x466   : > { %v3426_v60 = vpop.f32.mrf.mxu0  ;;  %v3349_v55 = vadd.f32 %v3293_v6, %v3082_v15 }
 0x467   : > { %v7138_v53 = vadd.f32 %v3426_v60, %v3348_v63 }
 0x468   : > { %v2874_v16 = vpop.f32.mrf.mxu1 }
 0x46b   : > { %v3083_v9 = vpop.f32.mrf.mxu2  ;;  %4743 = vmatmul.msk.bf16.gmra.mxu1 %vm713_vm1, %v6510_v10 }
 0x46c   : > { %v3084_v17 = vadd.f32 %v3083_v9, %v2871_v21  ;;  %v3295_v31 = vpop.f32.mrf.mxu3 }
 0x46e   : > { %v3429_v13 = vpop.f32.mrf.mxu0  ;;  %v3350_v54 = vadd.f32 %v3295_v31, %v3084_v17 }
 0x46f   : > { %v7142_v8 = vadd.f32 %v3429_v13, %v3349_v55 }
 0x470   : > { %4759 = vmatmul.msk.bf16.gmra.mxu2 %vm713_vm1, %v6561_v24  ;;  %v2876_v38 = vpop.f32.mrf.mxu1 }
 0x471   : > { %4790 = vmatmul.msk.bf16.vlgmr.msra.gmra.mxu0 %vm713_vm1, %v6510_v10  ;;  %4775 = vmatmul.msk.bf16.gmra.mxu3 %vm713_vm1, %v6585_v61 }
 0x473   : > { %v3086_v63 = vpop.f32.mrf.mxu2 }
 0x474   : > { %v3087_v4 = vadd.f32 %v3086_v63, %v2874_v16  ;;  %v3298_v25 = vpop.f32.mrf.mxu3 }
 0x476   : > { %v3431_v62 = vpop.f32.mrf.mxu0  ;;  %v3351_v18 = vadd.f32 %v3298_v25, %v3087_v4  ;;  %v8308_v4 = vld [vmem:[#allocation41_spill] sm:$0xff] }
 0x477   : > { %v7150_v11 = vadd.f32 %v3431_v62, %v3350_v54 }
 0x478   : > { %v2879_v40 = vpop.f32.mrf.mxu1 }
 0x47b   : > { %v3088_v21 = vpop.f32.mrf.mxu2  ;;  %4744 = vmatmul.msk.bf16.gmra.mxu1 %vm713_vm1, %v6541_v12 }
 0x47c   : > { %v3089_v46 = vadd.f32 %v3088_v21, %v2876_v38  ;;  %v3300_v15 = vpop.f32.mrf.mxu3  ;;  %v8309_v21 = vld [vmem:[#allocation47_spill] sm:$0xff] }
 0x47e   : > { %v3434_v6 = vpop.f32.mrf.mxu0  ;;  %v3352_v10 = vadd.f32 %v3300_v15, %v3089_v46 }
 0x47f   : > { %v7154_v60 = vadd.f32 %v3434_v6, %v3351_v18 }
 0x480   : > { %4760 = vmatmul.msk.bf16.gmra.mxu2 %vm713_vm1, %v6593_v47  ;;  %v2881_v61 = vpop.f32.mrf.mxu1 }
 0x481   : > { %4791 = vmatmul.msk.bf16.gmra.mxu0 %vm713_vm1, %v6541_v12  ;;  %4776 = vmatmul.msk.bf16.gmra.mxu3 %vm713_vm1, %v6611_v32 }
 0x483   : > { %v3091_v55 = vpop.f32.mrf.mxu2 }
 0x484   : > { %v3092_v16 = vadd.f32 %v3091_v55, %v2879_v40  ;;  %v3303_v9 = vpop.f32.mrf.mxu3  ;;  %v8310_v40 = vld [vmem:[#allocation64_spill] sm:$0xff] }
 0x486   : > { %v3436_v17 = vpop.f32.mrf.mxu0  ;;  %v3353_v31 = vadd.f32 %v3303_v9, %v3092_v16 }
 0x487   : > { %v7162_v13 = vadd.f32 %v3436_v17, %v3352_v10 }
 0x488   : > { %v2884_v54 = vpop.f32.mrf.mxu1 }
 0x48b   : > { %v3093_v38 = vpop.f32.mrf.mxu2  ;;  %4745 = vmatmul.msk.bf16.gmra.mxu1 %vm713_vm1, %v8308_v4 }
 0x48c   : > { %v3094_v63 = vadd.f32 %v3093_v38, %v2881_v61  ;;  %v3305_v25 = vpop.f32.mrf.mxu3 }
 0x48e   : > { %v3439_v62 = vpop.f32.mrf.mxu0  ;;  %v3354_v12 = vadd.f32 %v3305_v25, %v3094_v63 }
 0x48f   : > { %v7166_v18 = vadd.f32 %v3439_v62, %v3353_v31  ;;  %v8311_v31 = vld [vmem:[#allocation44_spill] sm:$0xff]  ;;  %v8312_v62 = vld [vmem:[#allocation63_spill] sm:$0xff] }
 0x490   : > { %4761 = vmatmul.msk.bf16.gmra.mxu2 %vm713_vm1, %v8309_v21  ;;  %v2886_v32 = vpop.f32.mrf.mxu1 }
 0x491   : > { %4792 = vmatmul.msk.bf16.gmra.mxu0 %vm713_vm1, %v8308_v4  ;;  %4777 = vmatmul.msk.bf16.gmra.mxu3 %vm713_vm1, %v8310_v40 }
 0x493   : > { %v3096_v46 = vpop.f32.mrf.mxu2 }
 0x494   : > { %v3097_v15 = vadd.f32 %v3096_v46, %v2884_v54  ;;  %v3308_v6 = vpop.f32.mrf.mxu3 }
 0x496   : > { %v3441_v10 = vpop.f32.mrf.mxu0  ;;  %v3355_v61 = vadd.f32 %v3308_v6, %v3097_v15 }
 0x497   : > { %v7174_v55 = vadd.f32 %v3441_v10, %v3354_v12 }
 0x498   : > { %v2889_v16 = vpop.f32.mrf.mxu1 }
 0x49b   : > { %v3098_v9 = vpop.f32.mrf.mxu2  ;;  %4746 = vmatmul.msk.bf16.gmra.mxu1 %vm713_vm1, %v8311_v31 }
 0x49c   : > { %v3099_v17 = vadd.f32 %v3098_v9, %v2886_v32  ;;  %v3310_v38 = vpop.f32.mrf.mxu3 }
 0x49e   : > { %v3444_v63 = vpop.f32.mrf.mxu0  ;;  %v3356_v4 = vadd.f32 %v3310_v38, %v3099_v17 }
 0x49f   : > { %v7178_v25 = vadd.f32 %v3444_v63, %v3355_v61 }
 0x4a0   : > { %4762 = vmatmul.msk.bf16.gmra.mxu2 %vm713_vm1, %v8312_v62  ;;  %v2891_v54 = vpop.f32.mrf.mxu1 }
 0x4a1   : > { %4793 = vmatmul.msk.bf16.gmra.mxu0 %vm713_vm1, %v8311_v31  ;;  %4778 = vmatmul.msk.bf16.gmra.mxu3 %vm713_vm1, %v6683_v51 }
 0x4a3   : > { %v3101_v12 = vpop.f32.mrf.mxu2 }
 0x4a4   : > { %v3102_v32 = vadd.f32 %v3101_v12, %v2889_v16  ;;  %v3313_v40 = vpop.f32.mrf.mxu3 }
 0x4a6   : > { %v3446_v46 = vpop.f32.mrf.mxu0  ;;  %v3357_v15 = vadd.f32 %v3313_v40, %v3102_v32 }
 0x4a7   : > { %v7186_v6 = vadd.f32 %v3446_v46, %v3356_v4 }
 0x4a8   : > { %v2894_v10 = vpop.f32.mrf.mxu1 }
 0x4ab   : > { %v3103_v61 = vpop.f32.mrf.mxu2  ;;  %4747 = vmatmul.msk.bf16.gmra.mxu1 %vm713_vm1, %v6644_v49 }
 0x4ac   : > { %v3104_v9 = vadd.f32 %v3103_v61, %v2891_v54  ;;  %v3315_v17 = vpop.f32.mrf.mxu3 }
 0x4ae   : > { %v3449_v38 = vpop.f32.mrf.mxu0  ;;  %v3358_v31 = vadd.f32 %v3315_v17, %v3104_v9 }
 0x4af   : > { %v7190_v63 = vadd.f32 %v3449_v38, %v3357_v15 }
 0x4b0   : > { %4763 = vmatmul.msk.bf16.gmra.mxu2 %vm713_vm1, %v6699_v34  ;;  %v2896_v51 = vpop.f32.mrf.mxu1 }
 0x4b1   : > { %4794 = vmatmul.msk.bf16.gmra.mxu0 %vm713_vm1, %v6644_v49  ;;  %4779 = vmatmul.msk.bf16.gmra.mxu3 %vm713_vm1, %v6727_v27 }
 0x4b3   : > { %v3106_v16 = vpop.f32.mrf.mxu2 }
 0x4b4   : > { %v3107_v4 = vadd.f32 %v3106_v16, %v2894_v10  ;;  %v3318_v54 = vpop.f32.mrf.mxu3 }
 0x4b6   : > { %v3451_v12 = vpop.f32.mrf.mxu0  ;;  %v3359_v32 = vadd.f32 %v3318_v54, %v3107_v4 }
 0x4b7   : > { %v7198_v40 = vadd.f32 %v3451_v12, %v3358_v31 }
 0x4b8   : > { %v2899_v46 = vpop.f32.mrf.mxu1 }
 0x4bb   : > { %v3108_v15 = vpop.f32.mrf.mxu2  ;;  %4748 = vmatmul.msk.bf16.gmra.mxu1 %vm713_vm1, %v6677_v28 }
 0x4bc   : > { %v3109_v61 = vadd.f32 %v3108_v15, %v2896_v51  ;;  %v3320_v9 = vpop.f32.mrf.mxu3 }
 0x4be   : > { %v3454_v17 = vpop.f32.mrf.mxu0  ;;  %v3360_v49 = vadd.f32 %v3320_v9, %v3109_v61 }
 0x4bf   : > { %v7202_v38 = vadd.f32 %v3454_v17, %v3359_v32 }
 0x4c0   : > { %4764 = vmatmul.msk.bf16.gmra.mxu2 %vm713_vm1, %v6737_v0  ;;  %v2901_v27 = vpop.f32.mrf.mxu1 }
 0x4c1   : > { %4795 = vmatmul.msk.bf16.gmra.mxu0 %vm713_vm1, %v6677_v28  ;;  %4780 = vmatmul.msk.bf16.gmra.mxu3 %vm713_vm1, %v6753_v52 }
 0x4c3   : > { %v3111_v10 = vpop.f32.mrf.mxu2 }
 0x4c4   : > { %v3112_v31 = vadd.f32 %v3111_v10, %v2899_v46  ;;  %v3323_v51 = vpop.f32.mrf.mxu3 }
 0x4c6   : > { %v3456_v16 = vpop.f32.mrf.mxu0  ;;  %v3361_v4 = vadd.f32 %v3323_v51, %v3112_v31 }
 0x4c7   : > { %v7210_v54 = vadd.f32 %v3456_v16, %v3360_v49 }
 0x4c8   : > { %v2904_v12 = vpop.f32.mrf.mxu1 }
 0x4cb   : > { %v3113_v32 = vpop.f32.mrf.mxu2  ;;  %4749 = vmatmul.msk.bf16.gmra.mxu1 %vm713_vm1, %v6717_v19 }
 0x4cc   : > { %v3114_v15 = vadd.f32 %v3113_v32, %v2901_v27  ;;  %v3325_v61 = vpop.f32.mrf.mxu3 }
 0x4ce   : > { %v3459_v9 = vpop.f32.mrf.mxu0  ;;  %v3362_v28 = vadd.f32 %v3325_v61, %v3114_v15 }
 0x4cf   : > { %v7214_v17 = vadd.f32 %v3459_v9, %v3361_v4  ;;  %v3044_v4 = vadd.f32 %v7013_v5, %v7009_v44 }
 0x4d0   : > { %4765 = vmatmul.msk.bf16.gmra.mxu2 %vm713_vm1, %v6771_v39  ;;  %v2906_v52 = vpop.f32.mrf.mxu1 }
 0x4d1   : > { %4796 = vmatmul.msk.bf16.gmra.mxu0 %vm713_vm1, %v6717_v19  ;;  %4781 = vmatmul.msk.bf16.gmra.mxu3 %vm713_vm1, %v6789_v48 }
 0x4d3   : > { %v3116_v46 = vpop.f32.mrf.mxu2 }
 0x4d4   : > { %v3117_v49 = vadd.f32 %v3116_v46, %v2904_v12  ;;  %v3328_v27 = vpop.f32.mrf.mxu3  ;;  %v3334_v12 = vadd.f32 %v7017_v57, %v3044_v4 }
 0x4d6   : > { %v3461_v10 = vpop.f32.mrf.mxu0  ;;  %v3363_v31 = vadd.f32 %v3328_v27, %v3117_v49 }
 0x4d7   : > { %v7222_v51 = vadd.f32 %v3461_v10, %v3362_v28  ;;  %v3470_v28 = vadd.f32 %v7027_v58, %v3334_v12 }
 0x4d8   : > { %v3521_v16 = vpop.f32.mrf.mxu1 }
 0x4d9   : > { %v3601_v32 = vadd.f32 %v3521_v16, %v7019_v30 }
 0x4db   : > { %v3118_v15 = vpop.f32.mrf.mxu2  ;;  %4750 = vmatmul.msk.bf16.gmra.mxu1 %vm713_vm1, %v6763_v14 }
 0x4dc   : > { %v3119_v61 = vadd.f32 %v3118_v15, %v2906_v52  ;;  %v3330_v19 = vpop.f32.mrf.mxu3  ;;  %v8313_v15 = vld [vmem:[#allocation67_spill] sm:$0xff] }
 0x4de   : > { %v3464_v48 = vpop.f32.mrf.mxu0  ;;  %v3364_v9 = vadd.f32 %v3330_v19, %v3119_v61 }
 0x4df   : > { %v7230_v46 = vadd.f32 %v3464_v48, %v3363_v31 }
 0x4e0   : > { %4766 = vmatmul.msk.bf16.gmra.mxu2 %vm713_vm1, %v6809_v33  ;;  %v3523_v44 = vpop.f32.mrf.mxu1 }
 0x4e1   : > { %4797 = vmatmul.msk.bf16.gmra.mxu0 %vm713_vm1, %v6763_v14  ;;  %4782 = vmatmul.msk.bf16.gmra.mxu3 %vm713_vm1, %v6827_v35  ;;  %v3602_v5 = vadd.f32 %v3523_v44, %v3470_v28 }
 0x4e3   : > { %v3657_v30 = vpop.f32.mrf.mxu2 }
 0x4e4   : > { %v3737_v52 = vadd.f32 %v3657_v30, %v3601_v32  ;;  %v3781_v49 = vpop.f32.mrf.mxu3 }
 0x4e6   : > { %v3466_v57 = vpop.f32.mrf.mxu0  ;;  %v3861_v27 = vadd.f32 %v3781_v49, %v3737_v52  ;;  %v8314_v52 = vld [vmem:[#allocation9_spill] sm:$0xff] }
 0x4e7   : > { %v7239_v10 = vadd.f32 %v3466_v57, %v3364_v9 }
 0x4e8   : > { %v3526_v31 = vpop.f32.mrf.mxu1 }
 0x4e9   : > { %v3603_v58 = vadd.f32 %v3526_v31, %v7031_v59  ;;  %v8315_v31 = vld [vmem:[#allocation37_spill] sm:$0xff] }
 0x4eb   : > { %v3659_v16 = vpop.f32.mrf.mxu2  ;;  %4751 = vmatmul.msk.bf16.gmra.mxu1 %vm713_vm1, %v8313_v15 }
 0x4ec   : > { %v3738_v4 = vadd.f32 %v3659_v16, %v3602_v5  ;;  %v3783_v14 = vpop.f32.mrf.mxu3 }
 0x4ee   : > { %v3909_v61 = vpop.f32.mrf.mxu0  ;;  %v3862_v19 = vadd.f32 %v3783_v14, %v3738_v4 }
 0x4ef   : > { %v7244_v35 = vadd.f32 %v3909_v61, %v3861_v27 }
 0x4f0   : > { %4767 = vmatmul.msk.bf16.gmra.mxu2 %vm713_vm1, %v6841_v7  ;;  %v3528_v32 = vpop.f32.mrf.mxu1 }
 0x4f1   : > { %4798 = vmatmul.msk.bf16.gmra.mxu0 %vm713_vm1, %v8313_v15  ;;  %4783 = vmatmul.msk.bf16.gmra.mxu3 %vm713_vm1, %v6865_v50  ;;  %v3604_v59 = vadd.f32 %v3528_v32, %v7039_v23 }
 0x4f3   : > { %v3662_v48 = vpop.f32.mrf.mxu2 }
 0x4f4   : > { %v3739_v12 = vadd.f32 %v3662_v48, %v3603_v58  ;;  %v3786_v9 = vpop.f32.mrf.mxu3  ;;  %v8316_v58 = vld [vmem:[#allocation59_spill] sm:$0xff] }
 0x4f6   : > { %v3911_v28 = vpop.f32.mrf.mxu0  ;;  %v3863_v44 = vadd.f32 %v3786_v9, %v3739_v12 }
 0x4f7   : > { %v7253_v5 = vadd.f32 %v3911_v28, %v3862_v19  ;;  %v8317_v28 = vld [vmem:[#allocation55_spill] sm:$0xff] }
 0x4f8   : > { %v3531_v30 = vpop.f32.mrf.mxu1 }
 0x4f9   : > { %v3605_v49 = vadd.f32 %v3531_v30, %v8314_v52 }
 0x4fb   : > { %v3664_v57 = vpop.f32.mrf.mxu2  ;;  %4752 = vmatmul.msk.bf16.gmra.mxu1 %vm713_vm1, %v8315_v31 }
 0x4fc   : > { %v3740_v27 = vadd.f32 %v3664_v57, %v3604_v59  ;;  %v3788_v16 = vpop.f32.mrf.mxu3  ;;  %v8318_v57 = vld [vmem:[#allocation68_spill] sm:$0xff] }
 0x4fe   : > { %v3914_v4 = vpop.f32.mrf.mxu0  ;;  %v3864_v50 = vadd.f32 %v3788_v16, %v3740_v27 }
 0x4ff   : > { %v7258_v15 = vadd.f32 %v3914_v4, %v3863_v44  ;;  %v8319_v4 = vld [vmem:[#allocation49_spill] sm:$0xff] }
 0x500   : > { %4768 = vmatmul.msk.bf16.gmra.mxu2 %vm713_vm1, %v6873_v22  ;;  %v3533_v23 = vpop.f32.mrf.mxu1 }
 0x501   : > { %4799 = vmatmul.msk.bf16.gmra.mxu0 %vm713_vm1, %v8315_v31  ;;  %4784 = vmatmul.msk.bf16.gmra.mxu3 %vm713_vm1, %v6891_v36  ;;  %v3606_v14 = vadd.f32 %v3533_v23, %v8316_v58 }
 0x503   : > { %v3667_v61 = vpop.f32.mrf.mxu2 }
 0x504   : > { %v3741_v19 = vadd.f32 %v3667_v61, %v3605_v49  ;;  %v3791_v32 = vpop.f32.mrf.mxu3 }
 0x506   : > { %v3916_v59 = vpop.f32.mrf.mxu0  ;;  %v3865_v48 = vadd.f32 %v3791_v32, %v3741_v19 }
 0x507   : > { %v7267_v12 = vadd.f32 %v3916_v59, %v3864_v50 }
 0x508   : > { %v3536_v9 = vpop.f32.mrf.mxu1 }
 0x509   : > { %v3607_v44 = vadd.f32 %v3536_v9, %v8317_v28 }
 0x50b   : > { %v3669_v30 = vpop.f32.mrf.mxu2  ;;  %4753 = vmatmul.msk.bf16.gmra.mxu1 %vm713_vm1, %v8318_v57 }
 0x50c   : > { %v3742_v52 = vadd.f32 %v3669_v30, %v3606_v14  ;;  %v3793_v27 = vpop.f32.mrf.mxu3 }
 0x50e   : > { %v3919_v31 = vpop.f32.mrf.mxu0  ;;  %v3866_v36 = vadd.f32 %v3793_v27, %v3742_v52  ;;  %v8321_v52 = vld [vmem:[#allocation12_spill] sm:$0xff] }
 0x50f   : > { %v7272_v16 = vadd.f32 %v3919_v31, %v3865_v48  ;;  %v8320_v48 = vld [vmem:[#allocation14_spill] sm:$0xff] }
 0x510   : > { %4769 = vmatmul.msk.bf16.gmra.mxu2 %vm713_vm1, %v6909_v1  ;;  %v3538_v49 = vpop.f32.mrf.mxu1 }
 0x511   : > { %4800 = vmatmul.msk.bf16.gmra.mxu0 %vm713_vm1, %v8318_v57  ;;  %4785 = vmatmul.msk.bf16.gmra.mxu3 %vm713_vm1, %v6931_v41  ;;  %v3608_v50 = vadd.f32 %v3538_v49, %v8319_v4  ;;  %v8322_v49 = vld [vmem:[#allocation26_spill] sm:$0xff] }
 0x513   : > { %v3672_v23 = vpop.f32.mrf.mxu2 }
 0x514   : > { %v3743_v58 = vadd.f32 %v3672_v23, %v3607_v44  ;;  %v3796_v14 = vpop.f32.mrf.mxu3 }
 0x516   : > { %v3921_v61 = vpop.f32.mrf.mxu0  ;;  %v3867_v19 = vadd.f32 %v3796_v14, %v3743_v58 }
 0x517   : > { %v7281_v32 = vadd.f32 %v3921_v61, %v3866_v36 }
 0x518   : > { %v3541_v59 = vpop.f32.mrf.mxu1 }
 0x519   : > { %v3609_v9 = vadd.f32 %v3541_v59, %v8320_v48 }
 0x51b   : > { %v3674_v28 = vpop.f32.mrf.mxu2  ;;  %4754 = vmatmul.msk.bf16.gmra.mxu1 %vm713_vm1, %v8321_v52 }
 0x51c   : > { %v3744_v30 = vadd.f32 %v3674_v28, %v3608_v50  ;;  %v3798_v57 = vpop.f32.mrf.mxu3 }
 0x51e   : > { %v3924_v27 = vpop.f32.mrf.mxu0  ;;  %v3868_v41 = vadd.f32 %v3798_v57, %v3744_v30 }
 0x51f   : > { %v7286_v31 = vadd.f32 %v3924_v27, %v3867_v19 }
 0x520   : > { %4770 = vmatmul.msk.bf16.gmra.mxu2 %vm713_vm1, %v8322_v49  ;;  %v3543_v44 = vpop.f32.mrf.mxu1 }
 0x521   : > { %4801 = vmatmul.msk.bf16.gmra.mxu0 %vm713_vm1, %v8321_v52  ;;  %4786 = vmatmul.msk.bf16.gmra.mxu3 %vm713_vm1, %v6971_v26  ;;  %v3610_v36 = vadd.f32 %v3543_v44, %v7080_v29 }
 0x523   : > { %v3677_v4 = vpop.f32.mrf.mxu2 }
 0x524   : > { %v3745_v50 = vadd.f32 %v3677_v4, %v3609_v9  ;;  %v3801_v23 = vpop.f32.mrf.mxu3 }
 0x526   : > { %v3926_v58 = vpop.f32.mrf.mxu0  ;;  %v3869_v14 = vadd.f32 %v3801_v23, %v3745_v50  ;;  %v8325_v23 = vld [vmem:[#allocation61_spill] sm:$0xff] }
 0x527   : > { %v7295_v61 = vadd.f32 %v3926_v58, %v3868_v41 }
 0x528   : > { %v3546_v19 = vpop.f32.mrf.mxu1 }
 0x529   : > { %v3611_v59 = vadd.f32 %v3546_v19, %v7086_v43  ;;  %v8326_v19 = vld [vmem:[#allocation8_spill] sm:$0xff] }
 0x52b   : > { %v3679_v48 = vpop.f32.mrf.mxu2  ;;  %4755 = vmatmul.msk.bf16.gmra.mxu1 %vm713_vm1, %v6924_v2 }
 0x52c   : > { %v3746_v28 = vadd.f32 %v3679_v48, %v3610_v36  ;;  %v3803_v30 = vpop.f32.mrf.mxu3  ;;  %v2511_v48 = vrot.slane %v8326_v19, 1 }
 0x52e   : > { %v3929_v52 = vpop.f32.mrf.mxu0  ;;  %v3870_v26 = vadd.f32 %v3803_v30, %v3746_v28  ;;  %v8327_v28 = vld [vmem:[#allocation20_spill] sm:$0xff] }
 0x52f   : > { %v7300_v57 = vadd.f32 %v3929_v52, %v3869_v14 }
 0x530   : > { %4771 = vmatmul.msk.bf16.gmra.mxu2 %vm713_vm1, %v6973_v3  ;;  %v3548_v29 = vpop.f32.mrf.mxu1 }
 0x531   : > { %8323 = vst [vmem:[#allocation56_spill] sm:$0xff] %v7300_v57  ;;  %4802 = vmatmul.msk.bf16.gmra.mxu0 %vm713_vm1, %v6924_v2  ;;  %4787 = vmatmul.msk.bf16.gmra.mxu3 %vm713_vm1, %v6985_v45  ;;  %v3612_v43 = vadd.f32 %v3548_v29, %v7098_v20  ;;  %v8328_v45 = vld [vmem:[#allocation33_spill] sm:$0xff] }
 0x532   : > { %v2527_v30 = vrot.slane %v8328_v45, 1 }
 0x533   : > { %v3682_v9 = vpop.f32.mrf.mxu2 }
 0x534   : > { %v3747_v27 = vadd.f32 %v3682_v9, %v3611_v59  ;;  %v3806_v41 = vpop.f32.mrf.mxu3  ;;  %v8330_v9 = vld [vmem:[#allocation30_spill] sm:$0xff] }
 0x536   : > { %v3931_v44 = vpop.f32.mrf.mxu0  ;;  %v3871_v36 = vadd.f32 %v3806_v41, %v3747_v27  ;;  %v2559_v27 = vsel %vm454_vm4, %v2527_v30, %v2511_v48  ;;  %v2622_v41 = vpack.c.bf16 %v8326_v19, %v8326_v19 }
 0x537   : > { %v7309_v4 = vadd.f32 %v3931_v44, %v3870_v26  ;;  %v2623_v44 = vpack.c.bf16 %v8328_v45, %v8328_v45 }
 0x538   : > { %v3551_v50 = vpop.f32.mrf.mxu1 }
 0x539   : > { %8324 = vst [vmem:[#allocation23_spill] sm:$0xff] %v7309_v4  ;;  %v3613_v58 = vadd.f32 %v3551_v50, %v8325_v23  ;;  %v2543_v23 = vsel %vm454_vm4, %v2511_v48, %v2527_v30  ;;  %v3504_v19 = vunpack.c.l.b16 %v2623_v44 }
 0x53a   : > { %v2686_v45 = vpack.c.bf16 %v2543_v23, %v2543_v23 }
 0x53b   : > { %v3684_v14 = vpop.f32.mrf.mxu2  ;;  %4756 = vmatmul.msk.bf16.gmra.mxu1 %vm713_vm1, %v8327_v28 }
 0x53c   : > { %v3748_v2 = vadd.f32 %v3684_v14, %v3612_v43  ;;  %v3808_v20 = vpop.f32.mrf.mxu3  ;;  %v3635_v57 = vunpack.c.l.b16 %v2686_v45 }
 0x53e   : > { %v3934_v52 = vpop.f32.mrf.mxu0  ;;  %v3872_v59 = vadd.f32 %v3808_v20, %v3748_v2  ;;  %v2591_v2 = vsel %vm318_vm5, 0.0, %v2559_v27 }
 0x53f   : > { %v7316_v29 = vadd.f32 %v3934_v52, %v3871_v36  ;;  %v2687_v3 = vpack.c.bf16 %v2591_v2, %v2591_v2 }
 0x540   : > { %4772 = vmatmul.msk.bf16.gmra.mxu2 %vm713_vm1, %v8330_v9  ;;  %v3553_v43 = vpop.f32.mrf.mxu1  ;;  %v3503_v9 = vunpack.c.l.b16 %v2622_v41 }
 0x541   : > { %8329 = vst [vmem:[#allocation62_spill] sm:$0xff] %v7316_v29  ;;  %4803 = vmatmul.msk.bf16.gmra.mxu0 %vm713_vm1, %v8327_v28  ;;  %4788 = vmatmul.msk.bf16.gmra.mxu3 %vm713_vm1, %v7130_v37  ;;  %v3614_v36 = vadd.f32 %v3553_v43, %v7124_v56  ;;  %v3636_v26 = vunpack.c.l.b16 %v2687_v3  ;;  %v8333_v3 = vld [vmem:[#allocation3_spill] sm:$0xff] }
 0x542   : > { %v3505_v43 = vpack.c.b16 %v3504_v19, %v3503_v9 }
 0x543   : > { %v3687_v50 = vpop.f32.mrf.mxu2  ;;  %v7341_v44 = vpack.c.b16 %v3636_v26, %v3635_v57 }
 0x544   : > { %v3749_v28 = vadd.f32 %v3687_v50, %v3613_v58  ;;  %v3811_v20 = vpop.f32.mrf.mxu3 }
 0x546   : > { %v3936_v52 = vpop.f32.mrf.mxu0  ;;  %v3873_v29 = vadd.f32 %v3811_v20, %v3749_v28 }
 0x547   : > { %v7335_v4 = vadd.f32 %v3936_v52, %v3872_v59 }
 0x548   : > { %v3556_v37 = vpop.f32.mrf.mxu1 }
 0x549   : > { %v3615_v56 = vadd.f32 %v3556_v37, %v7128_v42 }
 0x54b   : > { %v3689_v48 = vpop.f32.mrf.mxu2  ;;  %4757 = vmatmul.msk.bf16.gmra.mxu1 %vm713_vm1, %v3505_v43 }
 0x54c   : > { %v3750_v30 = vadd.f32 %v3689_v48, %v3614_v36  ;;  %v3813_v58 = vpop.f32.mrf.mxu3 }
 0x54e   : > { %v3939_v27 = vpop.f32.mrf.mxu0  ;;  %v3874_v50 = vadd.f32 %v3813_v58, %v3750_v30 }
 0x54f   : > { %v7339_v41 = vadd.f32 %v3939_v27, %v3873_v29 }
 0x550   : > { %4773 = vmatmul.msk.bf16.gmra.mxu2 %vm713_vm1, %v7341_v44  ;;  %v3558_v42 = vpop.f32.mrf.mxu1 }
 0x551   : > { %4804 = vmatmul.msk.bf16.gmra.mxu0 %vm713_vm1, %v3505_v43  ;;  %v3616_v59 = vadd.f32 %v3558_v42, %v7138_v53  ;;  %4789 = vmatmul.msk.bf16.gmra.mxu3 %vm713_vm1, %v8333_v3 }
 0x553   : > { %v3692_v9 = vpop.f32.mrf.mxu2 }
 0x554   : > { %v3751_v36 = vadd.f32 %v3692_v9, %v3615_v56  ;;  %v3816_v23 = vpop.f32.mrf.mxu3 }
 0x556   : > { %v3941_v14 = vpop.f32.mrf.mxu0  ;;  %v3875_v2 = vadd.f32 %v3816_v23, %v3751_v36 }
 0x557   : > { %v7349_v29 = vadd.f32 %v3941_v14, %v3874_v50 }
 0x558   : > { %v3561_v57 = vpop.f32.mrf.mxu1 }
 0x559   : > { %v3617_v28 = vadd.f32 %v3561_v57, %v7142_v8 }
 0x55b   : > { %v3694_v20 = vpop.f32.mrf.mxu2  ;;  %4806 = vmatmul.msk.bf16.vlgmr.msra.gmra.mxu1 %vm713_vm1, %v6561_v24 }
 0x55c   : > { %v3752_v52 = vadd.f32 %v3694_v20, %v3616_v59  ;;  %v3818_v19 = vpop.f32.mrf.mxu3 }
 0x55e   : > { %v3944_v53 = vpop.f32.mrf.mxu0  ;;  %v3876_v45 = vadd.f32 %v3818_v19, %v3752_v52 }
 0x55f   : > { %v7354_v37 = vadd.f32 %v3944_v53, %v3875_v2 }
 0x560   : > { %v3563_v56 = vpop.f32.mrf.mxu1 }
 0x561   : > { %4805 = vmatmul.msk.bf16.gmra.mxu0 %vm713_vm1, %v8333_v3  ;;  %v3618_v43 = vadd.f32 %v3563_v56, %v7150_v11 }
 0x563   : > { %v3697_v26 = vpop.f32.mrf.mxu2 }
 0x564   : > { %v3753_v48 = vadd.f32 %v3697_v26, %v3617_v28  ;;  %v3821_v30 = vpop.f32.mrf.mxu3 }
 0x566   : > { %v3946_v8 = vpop.f32.mrf.mxu0  ;;  %v3877_v58 = vadd.f32 %v3821_v30, %v3753_v48 }
 0x567   : > { %v7359_v27 = vadd.f32 %v3946_v8, %v3876_v45 }
 0x568   : > { %v3566_v50 = vpop.f32.mrf.mxu1 }
 0x569   : > { %v3619_v24 = vadd.f32 %v3566_v50, %v7154_v60 }
 0x56b   : > { %v3699_v42 = vpop.f32.mrf.mxu2  ;;  %4807 = vmatmul.msk.bf16.gmra.mxu1 %vm713_vm1, %v6593_v47 }
 0x56c   : > { %v3754_v59 = vadd.f32 %v3699_v42, %v3618_v43  ;;  %v3823_v9 = vpop.f32.mrf.mxu3 }
 0x56e   : > { %v3949_v36 = vpop.f32.mrf.mxu0  ;;  %v3878_v23 = vadd.f32 %v3823_v9, %v3754_v59 }
 0x56f   : > { %v7364_v14 = vadd.f32 %v3949_v36, %v3877_v58 }
 0x570   : > { %v3568_v11 = vpop.f32.mrf.mxu1 }
 0x571   : > { %v3620_v2 = vadd.f32 %v3568_v11, %v7162_v13 }
 0x573   : > { %v3702_v57 = vpop.f32.mrf.mxu2 }
 0x574   : > { %v3755_v28 = vadd.f32 %v3702_v57, %v3619_v24  ;;  %v3826_v20 = vpop.f32.mrf.mxu3 }
 0x576   : > { %v3951_v52 = vpop.f32.mrf.mxu0  ;;  %v3879_v19 = vadd.f32 %v3826_v20, %v3755_v28 }
 0x577   : > { %v7367_v53 = vadd.f32 %v3951_v52, %v3878_v23 }
 0x578   : > { %v3571_v60 = vpop.f32.mrf.mxu1 }
 0x579   : > { %v3621_v45 = vadd.f32 %v3571_v60, %v7166_v18 }
 0x57b   : > { %v3704_v56 = vpop.f32.mrf.mxu2  ;;  %4808 = vmatmul.msk.bf16.gmra.mxu1 %vm713_vm1, %v8309_v21 }
 0x57c   : > { %v3756_v47 = vadd.f32 %v3704_v56, %v3620_v2  ;;  %v3828_v43 = vpop.f32.mrf.mxu3 }
 0x57e   : > { %v3954_v26 = vpop.f32.mrf.mxu0  ;;  %v3880_v48 = vadd.f32 %v3828_v43, %v3756_v47 }
 0x57f   : > { %v7372_v30 = vadd.f32 %v3954_v26, %v3879_v19  ;;  %v8344_v26 = vld [vmem:[#allocation56_spill] sm:$0xff] }
 0x580   : > { %v3573_v13 = vpop.f32.mrf.mxu1 }
 0x581   : > { %v7375_v8 = vadd.f32 %v3573_v13, %v7174_v55  ;;  %v8347_v13 = vld [vmem:[#allocation23_spill] sm:$0xff] }
 0x583   : > { %v3707_v58 = vpop.f32.mrf.mxu2 }
 0x584   : > { %v3757_v50 = vadd.f32 %v3707_v58, %v3621_v45  ;;  %v3831_v24 = vpop.f32.mrf.mxu3 }
 0x586   : > { %v3956_v42 = vpop.f32.mrf.mxu0  ;;  %v3881_v59 = vadd.f32 %v3831_v24, %v3757_v50  ;;  %v8348_v50 = vld [vmem:[#allocation62_spill] sm:$0xff] }
 0x587   : > { %v7377_v18 = vadd.f32 %v3956_v42, %v3880_v48 }
 0x588   : > { %v3576_v9 = vpop.f32.mrf.mxu1 }
 0x589   : > { %v7380_v36 = vadd.f32 %v3576_v9, %v7178_v25 }
 0x58b   : > { %4809 = vmatmul.msk.bf16.gmra.mxu1 %vm713_vm1, %v8312_v62 }
 0x58e   : > { %v3959_v21 = vpop.f32.mrf.mxu0 }
 0x58f   : > { %v7384_v23 = vadd.f32 %v3959_v21, %v3881_v59 }
 0x590   : > { %v3578_v11 = vpop.f32.mrf.mxu1 }
 0x591   : > { %v7387_v55 = vadd.f32 %v3578_v11, %v7186_v6 }
 0x598   : > { %v3581_v2 = vpop.f32.mrf.mxu1 }
 0x599   : > { %v7390_v57 = vadd.f32 %v3581_v2, %v7190_v63 }
 0x59b   : > { %4810 = vmatmul.msk.bf16.gmra.mxu1 %vm713_vm1, %v6699_v34 }
 0x5a0   : > { %v3583_v28 = vpop.f32.mrf.mxu1 }
 0x5a1   : > { %v7395_v25 = vadd.f32 %v3583_v28, %v7198_v40 }
 0x5a8   : > { %v3586_v20 = vpop.f32.mrf.mxu1 }
 0x5a9   : > { %v7398_v62 = vadd.f32 %v3586_v20, %v7202_v38 }
 0x5ab   : > { %4811 = vmatmul.msk.bf16.gmra.mxu1 %vm713_vm1, %v6737_v0 }
 0x5b0   : > { %v3588_v6 = vpop.f32.mrf.mxu1 }
 0x5b1   : > { %v7403_v52 = vadd.f32 %v3588_v6, %v7210_v54 }
 0x5b8   : > { %v3591_v63 = vpop.f32.mrf.mxu1 }
 0x5b9   : > { %v7406_v19 = vadd.f32 %v3591_v63, %v7214_v17  ;;  %v7488_v63 = vpop.f32.mrf.mxu2 }
 0x5bb   : > { %4812 = vmatmul.msk.bf16.gmra.mxu1 %vm713_vm1, %v6771_v39 }
 0x5c0   : > { %v3593_v34 = vpop.f32.mrf.mxu1 }
 0x5c1   : > { %v7411_v40 = vadd.f32 %v3593_v34, %v7222_v51  ;;  %v7493_v34 = vpop.f32.mrf.mxu3 }
 0x5c3   : > { %8334 = vst [vmem:[#allocation58_spill] sm:$0xff] %v7411_v40 }
 0x5c8   : > { %v3596_v38 = vpop.f32.mrf.mxu1 }
 0x5c9   : > { %v7414_v60 = vadd.f32 %v3596_v38, %v7230_v46 }
 0x5cb   : > { %8335 = vst [vmem:[#allocation34_spill] sm:$0xff] %v7414_v60  ;;  %4813 = vmatmul.msk.bf16.gmra.mxu1 %vm713_vm1, %v6809_v33 }
 0x5d0   : > { %v3598_v0 = vpop.f32.mrf.mxu1 }
 0x5d1   : > { %v7419_v54 = vadd.f32 %v3598_v0, %v7239_v10 }
 0x5d3   : > { %8336 = vst [vmem:[#allocation50_spill] sm:$0xff] %v7419_v54 }
 0x5d8   : > { %v4033_v17 = vpop.f32.mrf.mxu1 }
 0x5d9   : > { %v7422_v45 = vadd.f32 %v4033_v17, %v7244_v35  ;;  %v7502_v17 = vpop.f32.mrf.mxu3 }
 0x5db   : > { %8337 = vst [vmem:[#allocation57_spill] sm:$0xff] %v7422_v45  ;;  %4814 = vmatmul.msk.bf16.gmra.mxu1 %vm713_vm1, %v6841_v7 }
 0x5e0   : > { %v4035_v39 = vpop.f32.mrf.mxu1 }
 0x5e1   : > { %v7427_v51 = vadd.f32 %v4035_v39, %v7253_v5 }
 0x5e3   : > { %8338 = vst [vmem:[#allocation60_spill] sm:$0xff] %v7427_v51 }
 0x5e8   : > { %v4038_v46 = vpop.f32.mrf.mxu1 }
 0x5e9   : > { %v7430_v56 = vadd.f32 %v4038_v46, %v7258_v15 }
 0x5eb   : > { %8339 = vst [vmem:[#allocation17_spill] sm:$0xff] %v7430_v56  ;;  %4815 = vmatmul.msk.bf16.gmra.mxu1 %vm713_vm1, %v6873_v22 }
 0x5f0   : > { %v4040_v33 = vpop.f32.mrf.mxu1 }
 0x5f1   : > { %v7435_v10 = vadd.f32 %v4040_v33, %v7267_v12 }
 0x5f3   : > { %8340 = vst [vmem:[#allocation27_spill] sm:$0xff] %v7435_v10 }
 0x5f8   : > { %v4043_v35 = vpop.f32.mrf.mxu1 }
 0x5f9   : > { %v7438_v47 = vadd.f32 %v4043_v35, %v7272_v16  ;;  %v7514_v35 = vpop.f32.mrf.mxu3 }
 0x5fb   : > { %4816 = vmatmul.msk.bf16.gmra.mxu1 %vm713_vm1, %v6909_v1  ;;  %v8346_v1 = vld [vmem:[#allocation48_spill] sm:$0xff] }
 0x600   : > { %v4045_v7 = vpop.f32.mrf.mxu1 }
 0x601   : > { %v7443_v5 = vadd.f32 %v4045_v7, %v7281_v32 }
 0x603   : > { %8341 = vst [vmem:[#allocation51_spill] sm:$0xff] %v7443_v5 }
 0x608   : > { %v4048_v15 = vpop.f32.mrf.mxu1 }
 0x609   : > { %v7446_v43 = vadd.f32 %v4048_v15, %v7286_v31 }
 0x60b   : > { %8342 = vst [vmem:[#allocation40_spill] sm:$0xff] %v7446_v43  ;;  %4817 = vmatmul.msk.bf16.gmra.mxu1 %vm713_vm1, %v8322_v49  ;;  %v8350_v49 = vld [vmem:[#allocation30_spill] sm:$0xff] }
 0x610   : > { %v4050_v22 = vpop.f32.mrf.mxu1 }
 0x611   : > { %v7451_v12 = vadd.f32 %v4050_v22, %v7295_v61  ;;  %v7522_v22 = vpop.f32.mrf.mxu3 }
 0x613   : > { %8343 = vst [vmem:[#allocation46_spill] sm:$0xff] %v7451_v12 }
 0x618   : > { %v4053_v16 = vpop.f32.mrf.mxu1 }
 0x619   : > { %v7454_v48 = vadd.f32 %v4053_v16, %v8344_v26 }
 0x61b   : > { %8345 = vst [vmem:[#allocation52_spill] sm:$0xff] %v7454_v48  ;;  %4818 = vmatmul.msk.bf16.gmra.mxu1 %vm713_vm1, %v8346_v1  ;;  %v7530_v1 = vpop.f32.mrf.mxu3 }
 0x620   : > { %v4055_v32 = vpop.f32.mrf.mxu1 }
 0x621   : > { %v7459_v58 = vadd.f32 %v4055_v32, %v8347_v13 }
 0x628   : > { %v4058_v31 = vpop.f32.mrf.mxu1 }
 0x629   : > { %v7462_v24 = vadd.f32 %v4058_v31, %v8348_v50  ;;  %v4218_v31 = vmul.f32 %v7427_v51, %v7427_v51  ;;  %v4217_v50 = vmul.f32 %v7422_v45, %v7422_v45 }
 0x62b   : > { %8349 = vst [vmem:[#allocation53_spill] sm:$0xff] %v7462_v24  ;;  %4819 = vmatmul.msk.bf16.gmra.mxu1 %vm713_vm1, %v8350_v49  ;;  %v4148_v49 = vsel %vm713_vm1, %v7427_v51, 0.0  ;;  %v4152_v51 = vsel %vm713_vm1, %v7435_v10, 0.0 }
 0x630   : > { %v4060_v61 = vpop.f32.mrf.mxu1 }
 0x631   : > { %v7467_v42 = vadd.f32 %v4060_v61, %v7335_v4  ;;  %v4219_v61 = vmul.f32 %v7430_v56, %v7430_v56 }
 0x633   : > { %8351 = vst [vmem:[#allocation54_spill] sm:$0xff] %v7467_v42 }
 0x638   : > { %v4063_v59 = vpop.f32.mrf.mxu1 }
 0x639   : > { %v7470_v9 = vadd.f32 %v4063_v59, %v7339_v41  ;;  %v4147_v59 = vsel %vm713_vm1, %v7422_v45, 0.0 }
 0x63b   : > { %4820 = vmatmul.msk.bf16.gmra.mxu1 %vm713_vm1, %v7341_v44 }
 0x640   : > { %v4065_v21 = vpop.f32.mrf.mxu1 }
 0x641   : > { %v7475_v11 = vadd.f32 %v4065_v21, %v7349_v29  ;;  %v4250_v21 = vsel %vm713_vm1, %v4218_v31, 0.0  ;;  %v4221_v31 = vmul.f32 %v7438_v47, %v7438_v47 }
 0x648   : > { %v4068_v2 = vpop.f32.mrf.mxu1 }
 0x649   : > { %v7478_v28 = vadd.f32 %v4068_v2, %v7354_v37  ;;  %v7495_v37 = vpop.f32.mrf.mxu0  ;;  %v4150_v2 = vsel %vm713_vm1, %v7430_v56, 0.0 }
 0x64b   : > { %4821 = vmatmul.msk.bf16.gmra.mxu1 %vm713_vm1, %v8333_v3 }
 0x650   : > { %v4070_v4 = vpop.f32.mrf.mxu1 }
 0x651   : > { %v7483_v20 = vadd.f32 %v4070_v4, %v7359_v27  ;;  %v7500_v27 = vpop.f32.mrf.mxu2  ;;  %v7507_v39 = vpop.f32.mrf.mxu0  ;;  %v4220_v4 = vmul.f32 %v7435_v10, %v7435_v10  ;;  %v4256_v10 = vsel %vm713_vm1, %v4221_v31, 0.0 }
 0x658   : > { %v4073_v41 = vpop.f32.mrf.mxu1 }
 0x659   : > { %v7486_v6 = vadd.f32 %v4073_v41, %v7364_v14  ;;  %v4149_v41 = vadd.f32 %v4148_v49, %v4147_v59  ;;  %v4254_v49 = vsel %vm713_vm1, %v4220_v4, 0.0  ;;  %v4154_v59 = vsel %vm713_vm1, %v7438_v47, 0.0 }
 0x65b   : > { %v4151_v54 = vadd.f32 %v4150_v2, %v4149_v41 }
 0x660   : > { %v4075_v44 = vpop.f32.mrf.mxu1 }
 0x661   : > { %v7491_v29 = vadd.f32 %v4075_v44, %v7367_v53  ;;  %v7509_v53 = vpop.f32.mrf.mxu2 }
 0x668   : > { %v4078_v38 = vpop.f32.mrf.mxu1 }
 0x669   : > { %v7498_v3 = vadd.f32 %v4078_v38, %v7372_v30  ;;  %v7516_v30 = vpop.f32.mrf.mxu0  ;;  %v7518_v7 = vpop.f32.mrf.mxu2 }
 0x66a   : > { %v7555_v38 = vpop.f32.mrf.mxu3 }
 0x670   : > { %v4080_v0 = vpop.f32.mrf.mxu1 }
 0x671   : > { %v7505_v14 = vadd.f32 %v4080_v0, %v7377_v18  ;;  %v7524_v18 = vpop.f32.mrf.mxu0  ;;  %v7528_v26 = vpop.f32.mrf.mxu2  ;;  %v4249_v0 = vsel %vm713_vm1, %v4217_v50, 0.0  ;;  %v4222_v50 = vmul.f32 %v7443_v5, %v7443_v5 }
 0x672   : > { %v4251_v56 = vadd.f32 %v4250_v21, %v4249_v0  ;;  %v4223_v21 = vmul.f32 %v7446_v43, %v7446_v43  ;;  %v4158_v0 = vsel %vm713_vm1, %v7446_v43, 0.0  ;;  %v4166_v43 = vsel %vm713_vm1, %v7462_v24, 0.0 }
 0x673   : > { %v4258_v41 = vsel %vm713_vm1, %v4222_v50, 0.0  ;;  %v7589_v50 = vpop.f32.mrf.mxu3 }
 0x674   : > { %v4260_v31 = vsel %vm713_vm1, %v4223_v21, 0.0 }
 0x678   : > { %v4083_v46 = vpop.f32.mrf.mxu1 }
 0x679   : > { %v7512_v33 = vadd.f32 %v4083_v46, %v7384_v23  ;;  %v7532_v23 = vpop.f32.mrf.mxu0  ;;  %v7536_v13 = vpop.f32.mrf.mxu2  ;;  %v4252_v46 = vsel %vm713_vm1, %v4219_v61, 0.0  ;;  %v4153_v61 = vadd.f32 %v4152_v51, %v4151_v54  ;;  %v4224_v54 = vmul.f32 %v7451_v12, %v7451_v12 }
 0x67a   : > { %v4253_v60 = vadd.f32 %v4252_v46, %v4251_v56 }
 0x67b   : > { %v4155_v4 = vadd.f32 %v4154_v59, %v4153_v61  ;;  %v4262_v61 = vsel %vm713_vm1, %v4224_v54, 0.0 }
 0x67c   : > { %v4255_v2 = vadd.f32 %v4254_v49, %v4253_v60  ;;  %v4225_v60 = vmul.f32 %v7454_v48, %v7454_v48 }
 0x67e   : > { %v4257_v51 = vadd.f32 %v4256_v10, %v4255_v2  ;;  %v4162_v10 = vsel %vm713_vm1, %v7454_v48, 0.0 }
 0x680   : > { %v7520_v15 = vpop.f32.mrf.mxu1  ;;  %v4259_v49 = vadd.f32 %v4258_v41, %v4257_v51  ;;  %v4164_v41 = vsel %vm713_vm1, %v7459_v58, 0.0 }
 0x681   : > { %v7563_v45 = vpop.f32.mrf.mxu0  ;;  %v7570_v40 = vpop.f32.mrf.mxu2 }
 0x682   : > { %v4261_v21 = vadd.f32 %v4260_v31, %v4259_v49 }
 0x684   : > { %v4263_v51 = vadd.f32 %v4262_v61, %v4261_v21  ;;  %v4168_v61 = vsel %vm713_vm1, %v7467_v42, 0.0 }
 0x688   : > { %v7526_v16 = vpop.f32.mrf.mxu1 }
 0x689   : > { %v7596_v2 = vpop.f32.mrf.mxu0 }
 0x690   : > { %v7534_v32 = vpop.f32.mrf.mxu1 }
 0x698   : > { %v7553_v44 = vpop.f32.mrf.mxu1 }
 0x699   : > { %8352 = vst [vmem:[#allocation41_spill] sm:$0xff] %v7553_v44  ;;  %v4156_v44 = vsel %vm713_vm1, %v7443_v5, 0.0  ;;  %v4160_v5 = vsel %vm713_vm1, %v7451_v12, 0.0  ;;  %v4264_v12 = vsel %vm713_vm1, %v4225_v60, 0.0 }
 0x69a   : > { %v4157_v56 = vadd.f32 %v4156_v44, %v4155_v4  ;;  %v4226_v44 = vmul.f32 %v7459_v58, %v7459_v58  ;;  %v4265_v31 = vadd.f32 %v4264_v12, %v4263_v51  ;;  %v4170_v12 = vsel %vm713_vm1, %v7470_v9, 0.0 }
 0x69c   : > { %v4159_v59 = vadd.f32 %v4158_v0, %v4157_v56  ;;  %v4227_v0 = vmul.f32 %v7462_v24, %v7462_v24  ;;  %v7603_v56 = vpop.f32.mrf.mxu2  ;;  %v4266_v48 = vsel %vm713_vm1, %v4226_v44, 0.0 }
 0x69d   : > { %v4267_v21 = vadd.f32 %v4266_v48, %v4265_v31  ;;  %v4231_v48 = vmul.f32 %v7478_v28, %v7478_v28 }
 0x69e   : > { %v4161_v4 = vadd.f32 %v4160_v5, %v4159_v59  ;;  %v4228_v5 = vmul.f32 %v7467_v42, %v7467_v42  ;;  %v4268_v59 = vsel %vm713_vm1, %v4227_v0, 0.0  ;;  %v3759_v0 = vadd.f32 %v7500_v27, %v7380_v36  ;;  %v7626_v42 = vpop.f32.mrf.mxu3 }
 0x69f   : > { %v4269_v51 = vadd.f32 %v4268_v59, %v4267_v21  ;;  %v4174_v59 = vsel %vm713_vm1, %v7478_v28, 0.0  ;;  %v3761_v21 = vadd.f32 %v7518_v7, %v7390_v57  ;;  %v3762_v57 = vadd.f32 %v7528_v26, %v7395_v25 }
 0x6a0   : > { %v7582_v46 = vpop.f32.mrf.mxu1  ;;  %v4163_v54 = vadd.f32 %v4162_v10, %v4161_v4  ;;  %v4229_v10 = vmul.f32 %v7470_v9, %v7470_v9  ;;  %v3758_v4 = vadd.f32 %v7488_v63, %v7375_v8  ;;  %v4270_v24 = vsel %vm713_vm1, %v4228_v5, 0.0  ;;  %v7635_v5 = vpop.f32.mrf.mxu0 }
 0x6a1   : > { %v4172_v8 = vsel %vm713_vm1, %v7475_v11, 0.0  ;;  %v3760_v63 = vadd.f32 %v7509_v53, %v7387_v55  ;;  %v4271_v31 = vadd.f32 %v4270_v24, %v4269_v51 }
 0x6a2   : > { %v4165_v60 = vadd.f32 %v4164_v41, %v4163_v54  ;;  %v4230_v41 = vmul.f32 %v7475_v11, %v7475_v11  ;;  %v3882_v36 = vadd.f32 %v7493_v34, %v3758_v4  ;;  %v4276_v4 = vsel %vm713_vm1, %v4231_v48, 0.0 }
 0x6a4   : > { %v4167_v44 = vadd.f32 %v4166_v43, %v4165_v60  ;;  %v4272_v43 = vsel %vm713_vm1, %v4229_v10, 0.0  ;;  %v4274_v27 = vsel %vm713_vm1, %v4230_v41, 0.0  ;;  %v3883_v10 = vadd.f32 %v7502_v17, %v3759_v0  ;;  %v3729_v34 = vpop.f32.mrf.mxu2 }
 0x6a5   : > { %v4273_v55 = vadd.f32 %v4272_v43, %v4271_v31  ;;  %v4010_v24 = vadd.f32 %v7495_v37, %v3882_v36  ;;  %v4233_v41 = vmul.f32 %v7486_v6, %v7486_v6  ;;  %v3884_v17 = vadd.f32 %v7514_v35, %v3760_v63 }
 0x6a6   : > { %v4169_v54 = vadd.f32 %v4168_v61, %v4167_v44  ;;  %v4232_v61 = vmul.f32 %v7483_v20, %v7483_v20  ;;  %v4011_v51 = vadd.f32 %v7507_v39, %v3883_v10  ;;  %v4234_v43 = vmul.f32 %v7491_v29, %v7491_v29 }
 0x6a7   : > { %v4275_v7 = vadd.f32 %v4274_v27, %v4273_v55  ;;  %v3763_v35 = vadd.f32 %v7536_v13, %v7398_v62  ;;  %v4012_v25 = vadd.f32 %v7516_v30, %v3884_v17  ;;  %v4280_v26 = vsel %vm713_vm1, %v4233_v41, 0.0 }
 0x6a8   : > { %v7610_v49 = vpop.f32.mrf.mxu1  ;;  %v4171_v60 = vadd.f32 %v4170_v12, %v4169_v54  ;;  %v4176_v12 = vsel %vm713_vm1, %v7483_v20, 0.0  ;;  %v4278_v37 = vsel %vm713_vm1, %v4232_v61, 0.0  ;;  %v4178_v54 = vsel %vm713_vm1, %v7486_v6, 0.0 }
 0x6a9   : > { %v4277_v48 = vadd.f32 %v4276_v4, %v4275_v7  ;;  %v4180_v39 = vsel %vm713_vm1, %v7491_v29, 0.0  ;;  %v4235_v31 = vmul.f32 %v7498_v3, %v7498_v3  ;;  %v4282_v62 = vsel %vm713_vm1, %v4234_v43, 0.0 }
 0x6aa   : > { %v4173_v53 = vadd.f32 %v4172_v8, %v4171_v60  ;;  %v3885_v8 = vadd.f32 %v7522_v22, %v3761_v21  ;;  %v3886_v60 = vadd.f32 %v7530_v1, %v3762_v57  ;;  %v4182_v30 = vsel %vm713_vm1, %v7498_v3, 0.0 }
 0x6ab   : > { %v4279_v22 = vadd.f32 %v4278_v37, %v4277_v48  ;;  %v4236_v13 = vmul.f32 %v7505_v14, %v7505_v14  ;;  %v7680_v61 = vadd.f32 %v7520_v15, %v4010_v24  ;;  %v3887_v10 = vadd.f32 %v7555_v38, %v3763_v35  ;;  %v8354_v48 = vld [vmem:[#allocation58_spill] sm:$0xff] }
 0x6ac   : > { %v4175_v0 = vadd.f32 %v4174_v59, %v4173_v53  ;;  %v4013_v36 = vadd.f32 %v7524_v18, %v3885_v8  ;;  %v3853_v59 = vpop.f32.mrf.mxu3  ;;  %v3764_v1 = vadd.f32 %v7570_v40, %v7403_v52  ;;  %v3981_v18 = vpop.f32.mrf.mxu0  ;;  %v4284_v4 = vsel %vm713_vm1, %v4235_v31, 0.0  ;;  %v8353_v8 = vld [vmem:[#allocation41_spill] sm:$0xff] }
 0x6ad   : > { %v4281_v21 = vadd.f32 %v4280_v26, %v4279_v22  ;;  %v4237_v41 = vmul.f32 %v7512_v33, %v7512_v33  ;;  %v7691_v15 = vadd.f32 %v7526_v16, %v4011_v51  ;;  %v4014_v38 = vadd.f32 %v7532_v23, %v3886_v60  ;;  %v3732_v17 = vpop.f32.mrf.mxu2 }
 0x6ae   : > { %v4177_v63 = vadd.f32 %v4176_v12, %v4175_v0  ;;  %v4184_v12 = vsel %vm713_vm1, %v7505_v14, 0.0  ;;  %v3765_v52 = vadd.f32 %v7603_v56, %v7406_v19  ;;  %v4286_v57 = vsel %vm713_vm1, %v4236_v13, 0.0 }
 0x6af   : > { %v4283_v40 = vadd.f32 %v4282_v62, %v4281_v21  ;;  %v4186_v7 = vsel %vm713_vm1, %v7512_v33, 0.0  ;;  %v4238_v0 = vmul.f32 %v7680_v61, %v7680_v61  ;;  %v7702_v37 = vadd.f32 %v7534_v32, %v4012_v25 }
 0x6b0   : > { %v7646_v44 = vpop.f32.mrf.mxu1  ;;  %v4179_v27 = vadd.f32 %v4178_v54, %v4177_v63  ;;  %v3888_v16 = vadd.f32 %v7589_v50, %v3764_v1  ;;  %v4015_v23 = vadd.f32 %v7563_v45, %v3887_v10  ;;  %v4288_v56 = vsel %vm713_vm1, %v4237_v41, 0.0 }
 0x6b1   : > { %v4285_v51 = vadd.f32 %v4284_v4, %v4283_v40  ;;  %v4188_v54 = vsel %vm713_vm1, %v7680_v61, 0.0  ;;  %v4239_v43 = vmul.f32 %v7691_v15, %v7691_v15  ;;  %v7712_v35 = vadd.f32 %v8353_v8, %v4013_v36  ;;  %v8355_v36 = vld [vmem:[#allocation34_spill] sm:$0xff] }
 0x6b2   : > { %v4181_v55 = vadd.f32 %v4180_v39, %v4179_v27  ;;  %v3889_v32 = vadd.f32 %v7626_v42, %v3765_v52  ;;  %v3766_v63 = vadd.f32 %v3729_v34, %v8354_v48  ;;  %v4290_v45 = vsel %vm713_vm1, %v4238_v0, 0.0 }
 0x6b3   : > { %v4287_v50 = vadd.f32 %v4286_v57, %v4285_v51  ;;  %v4190_v26 = vsel %vm713_vm1, %v7691_v15, 0.0  ;;  %v4240_v39 = vmul.f32 %v7702_v37, %v7702_v37  ;;  %v7722_v31 = vadd.f32 %v7582_v46, %v4014_v38 }
 0x6b4   : > { %v4183_v24 = vadd.f32 %v4182_v30, %v4181_v55  ;;  %v4016_v60 = vadd.f32 %v7596_v2, %v3888_v16  ;;  %v3767_v22 = vadd.f32 %v3732_v17, %v8355_v36  ;;  %v3856_v42 = vpop.f32.mrf.mxu3  ;;  %v4292_v30 = vsel %vm713_vm1, %v4239_v43, 0.0  ;;  %v3984_v21 = vpop.f32.mrf.mxu0 }
 0x6b5   : > { %v4289_v27 = vadd.f32 %v4288_v56, %v4287_v50  ;;  %v4192_v13 = vsel %vm713_vm1, %v7702_v37, 0.0  ;;  %v4241_v10 = vmul.f32 %v7712_v35, %v7712_v35  ;;  %v7732_v1 = vadd.f32 %v7610_v49, %v4015_v23  ;;  %v3734_v17 = vpop.f32.mrf.mxu2 }
 0x6b6   : > { %v4185_v19 = vadd.f32 %v4184_v12, %v4183_v24  ;;  %v3890_v46 = vadd.f32 %v3853_v59, %v3766_v63  ;;  %v4017_v2 = vadd.f32 %v7635_v5, %v3889_v32  ;;  %v4294_v12 = vsel %vm713_vm1, %v4240_v39, 0.0 }
 0x6b7   : > { %v4291_v55 = vadd.f32 %v4290_v45, %v4289_v27  ;;  %v4194_v41 = vsel %vm713_vm1, %v7712_v35, 0.0  ;;  %v4242_v38 = vmul.f32 %v7722_v31, %v7722_v31  ;;  %v7741_v52 = vadd.f32 %v7646_v44, %v4016_v60 }
 0x6b8   : > { %v4103_v53 = vpop.f32.mrf.mxu1  ;;  %v4187_v25 = vadd.f32 %v4186_v7, %v4185_v19  ;;  %v3891_v40 = vadd.f32 %v3856_v42, %v3767_v22  ;;  %v4018_v49 = vadd.f32 %v3981_v18, %v3890_v46  ;;  %v4296_v5 = vsel %vm713_vm1, %v4241_v10, 0.0 }
 0x6b9   : > { %v4293_v24 = vadd.f32 %v4292_v30, %v4291_v55  ;;  %v4196_v57 = vsel %vm713_vm1, %v7722_v31, 0.0  ;;  %v4243_v7 = vmul.f32 %v7732_v1, %v7732_v1  ;;  %v7748_v0 = vadd.f32 %v4103_v53, %v4017_v2 }
 0x6ba   : > { %v4189_v34 = vadd.f32 %v4188_v54, %v4187_v25  ;;  %v4019_v16 = vadd.f32 %v3984_v21, %v3891_v40  ;;  %v4298_v44 = vsel %vm713_vm1, %v4242_v38, 0.0  ;;  %v4198_v18 = vsel %vm713_vm1, %v7732_v1, 0.0  ;;  %v8356_v54 = vld [vmem:[#allocation50_spill] sm:$0xff] }
 0x6bb   : > { %v4295_v23 = vadd.f32 %v4294_v12, %v4293_v24  ;;  %v4244_v19 = vmul.f32 %v7741_v52, %v7741_v52  ;;  %v3768_v43 = vadd.f32 %v3734_v17, %v8356_v54  ;;  %v4300_v53 = vsel %vm713_vm1, %v4243_v7, 0.0 }
 0x6bc   : > { %v4191_v4 = vadd.f32 %v4190_v26, %v4189_v34  ;;  %v4200_v63 = vsel %vm713_vm1, %v7741_v52, 0.0  ;;  %v4245_v50 = vmul.f32 %v7748_v0, %v7748_v0  ;;  %v3858_v45 = vpop.f32.mrf.mxu3  ;;  %v4202_v36 = vsel %vm713_vm1, %v7748_v0, 0.0  ;;  %v3986_v42 = vpop.f32.mrf.mxu0 }
 0x6bd   : > { %v4297_v8 = vadd.f32 %v4296_v5, %v4295_v23  ;;  %v4302_v60 = vsel %vm713_vm1, %v4244_v19, 0.0 }
 0x6be   : > { %v4193_v59 = vadd.f32 %v4192_v13, %v4191_v4  ;;  %v4304_v30 = vsel %vm713_vm1, %v4245_v50, 0.0 }
 0x6bf   : > { %v4299_v26 = vadd.f32 %v4298_v44, %v4297_v8 }
 0x6c0   : > { %v4105_v62 = vpop.f32.mrf.mxu1  ;;  %v4195_v51 = vadd.f32 %v4194_v41, %v4193_v59 }
 0x6c1   : > { %v7755_v56 = vadd.f32 %v4105_v62, %v4018_v49  ;;  %v4301_v27 = vadd.f32 %v4300_v53, %v4299_v26  ;;  %v3892_v62 = vadd.f32 %v3858_v45, %v3768_v43 }
 0x6c2   : > { %v4197_v32 = vadd.f32 %v4196_v57, %v4195_v51 }
 0x6c3   : > { %v4246_v22 = vmul.f32 %v7755_v56, %v7755_v56  ;;  %v4204_v13 = vsel %vm713_vm1, %v7755_v56, 0.0  ;;  %v4303_v46 = vadd.f32 %v4302_v60, %v4301_v27  ;;  %v4020_v21 = vadd.f32 %v3986_v42, %v3892_v62 }
 0x6c4   : > { %v4199_v39 = vadd.f32 %v4198_v18, %v4197_v32 }
 0x6c5   : > { %v4306_v55 = vsel %vm713_vm1, %v4246_v22, 0.0  ;;  %v4305_v12 = vadd.f32 %v4304_v30, %v4303_v46 }
 0x6c6   : > { %v4201_v34 = vadd.f32 %v4200_v63, %v4199_v39 }
 0x6c7   : > { %v4307_v24 = vadd.f32 %v4306_v55, %v4305_v12 }
 0x6c8   : > { %v4108_v48 = vpop.f32.mrf.mxu1  ;;  %v4203_v2 = vadd.f32 %v4202_v36, %v4201_v34 }
 0x6c9   : > { %v7763_v25 = vadd.f32 %v4108_v48, %v4019_v16 }
 0x6ca   : > { %v4205_v41 = vadd.f32 %v4204_v13, %v4203_v2  ;;  %v4145_v13 = vld [vmem:[%s7941_s5] sm:$0x1] }
 0x6cb   : > { %v4247_v10 = vmul.f32 %v7763_v25, %v7763_v25  ;;  %v4206_v4 = vsel %vm713_vm1, %v7763_v25, 0.0 }
 0x6cc   : > { %v4207_v59 = vadd.f32 %v4206_v4, %v4205_v41  ;;  %v8357_v41 = vld [vmem:[#allocation57_spill] sm:$0xff] }
 0x6cd   : > { %v4308_v40 = vsel %vm713_vm1, %v4247_v10, 0.0 }
 0x6ce   : > { %v4309_v57 = vadd.f32 %v4308_v40, %v4307_v24  ;;  %v8358_v40 = vld [vmem:[#allocation60_spill] sm:$0xff] }
 0x6d0   : > { %v4110_v38 = vpop.f32.mrf.mxu1 }
 0x6d1   : > { %v7779_v49 = vadd.f32 %v4110_v38, %v4020_v21  ;;  %v4146_v21 = vld [vmem:[%s7942_s6] sm:$0x1] }
 0x6d3   : > { %v4208_v17 = vsel %vm713_vm1, %v7779_v49, 0.0  ;;  %v4248_v5 = vmul.f32 %v7779_v49, %v7779_v49 }
 0x6d4   : > { %v4209_v7 = vadd.f32 %v4208_v17, %v4207_v59  ;;  %v8359_v59 = vld [vmem:[#allocation17_spill] sm:$0xff] }
 0x6d5   : > { %v4310_v16 = vsel %vm713_vm1, %v4248_v5, 0.0  ;;  %v8360_v5 = vld [vmem:[#allocation27_spill] sm:$0xff] }
 0x6d6   : > { %v4210_v23 = vrot.slane %v4209_v7, 4  ;;  %v4311_v51 = vadd.f32 %v4310_v16, %v4309_v57  ;;  %v8361_v16 = vld [vmem:[#allocation51_spill] sm:$0xff] }
 0x6d8   : > { %v4211_v44 = vadd.f32 %v4210_v23, %v4209_v7  ;;  %v4312_v18 = vrot.slane %v4311_v51, 4 }
 0x6da   : > { %v4212_v19 = vrot.slane %v4211_v44, 2  ;;  %v4313_v54 = vadd.f32 %v4312_v18, %v4311_v51  ;;  %v8362_v51 = vld [vmem:[#allocation40_spill] sm:$0xff]  ;;  %v8363_v18 = vld [vmem:[#allocation46_spill] sm:$0xff] }
 0x6dc   : > { %v4213_v43 = vadd.f32 %v4212_v19, %v4211_v44  ;;  %v4314_v8 = vrot.slane %v4313_v54, 2 }
 0x6de   : > { %v4214_v32 = vrot.slane %v4213_v43, 1  ;;  %v4315_v48 = vadd.f32 %v4314_v8, %v4313_v54  ;;  %v8364_v54 = vld [vmem:[#allocation52_spill] sm:$0xff] }
 0x6e0   : > { %v4215_v53 = vadd.f32 %v4214_v32, %v4213_v43  ;;  %v4316_v63 = vrot.slane %v4315_v48, 1  ;;  %v8365_v32 = vld [vmem:[#allocation53_spill] sm:$0xff] }
 0x6e2   : > { %v4216_v50 = vmul.f32 0.00390625, %v4215_v53  ;;  %v4317_v45 = vadd.f32 %v4316_v63, %v4315_v48  ;;  %v8366_v53 = vld [vmem:[#allocation54_spill] sm:$0xff] }
 0x6e4   : > { %v4318_v26 = vmul.f32 0.00390625, %v4317_v45  ;;  %v4319_v39 = vmul.f32 %v4216_v50, %v4216_v50 }
 0x6e6   : > { %v4320_v60 = vsub.f32 %v4318_v26, %v4319_v39 }
 0x6e8   : > { %v4321_v36 = vmax.f32 %v4320_v60, 0.0 }
 0x6ea   : > { %v4322_v22 = vadd.f32 1e-05, %v4321_v36 }
 0x6ec   : > { %4839 = vrsqrt.f32 %v4322_v22  ;;  %vm4329_vm10 = vweird.f32 %v4322_v22 }
 0x6f2   : > { %v4840_v42 = vpop.eup %4839 }
 0x6f3   : > { %v4324_v27 = vmul.f32 %v4840_v42, %v4322_v22  ;;  %vm4330_vm9 = vweird.f32 %v4840_v42 }
 0x6f4   : > { %vm4331_vm11 = vmor %vm4329_vm10, %vm4330_vm9 }
 0x6f5   : > { %v4325_v34 = vmul.f32 %v4840_v42, %v4324_v27 }
 0x6f7   : > { %v4326_v62 = vmul.f32 0.5, %v4325_v34 }
 0x6f9   : > { %v4327_v30 = vsub.f32 1.5, %v4326_v62 }
 0x6fb   : > { %v4328_v10 = vmul.f32 %v4840_v42, %v4327_v30 }
 0x6fd   : > { %v4332_v46 = vsel %vm4331_vm11, %v4840_v42, %v4328_v10 }
 0x6fe   : > { %v4333_v2 = vmul.f32 %v4332_v46, %v4145_v13 }
 0x700   : > { %v4334_v55 = vmul.f32 %v4333_v2, %v4216_v50  ;;  %v4337_v4 = vperm.slane %v4333_v2, 0 }
 0x702   : > { %v4335_v12 = vsub.f32 %v4146_v21, %v4334_v55  ;;  %v4339_v38 = vmul.f32 %v4337_v4, %v8357_v41  ;;  %v4340_v24 = vmul.f32 %v4337_v4, %v8358_v40  ;;  %v4341_v17 = vmul.f32 %v4337_v4, %v8359_v59 }
 0x703   : > { %v4342_v57 = vmul.f32 %v4337_v4, %v8360_v5  ;;  %v4343_v7 = vmul.f32 %v4337_v4, %v7438_v47  ;;  %v4344_v23 = vmul.f32 %v4337_v4, %v8361_v16  ;;  %v4345_v44 = vmul.f32 %v4337_v4, %v8362_v51  ;;  %v4841_v51 = vld [vmem:[%s4927_s12] sm:$0xff] }
 0x704   : > { %v4346_v19 = vmul.f32 %v4337_v4, %v8363_v18  ;;  %v4347_v43 = vmul.f32 %v4337_v4, %v8364_v54  ;;  %v4348_v8 = vmul.f32 %v4337_v4, %v7459_v58  ;;  %v4349_v48 = vmul.f32 %v4337_v4, %v8365_v32  ;;  %v4842_v18 = vld [vmem:[%s4927_s12 + $0x8] sm:$0xff]  ;;  %v4843_v54 = vld [vmem:[%s4927_s12 + $0x10] sm:$0xff] }
 0x705   : > { %v4350_v63 = vmul.f32 %v4337_v4, %v8366_v53  ;;  %v4351_v50 = vmul.f32 %v4337_v4, %v7470_v9  ;;  %v4352_v45 = vmul.f32 %v4337_v4, %v7475_v11  ;;  %v4353_v47 = vmul.f32 %v4337_v4, %v7478_v28 }
 0x706   : > { %v4354_v26 = vmul.f32 %v4337_v4, %v7483_v20  ;;  %v4355_v39 = vmul.f32 %v4337_v4, %v7486_v6  ;;  %v4356_v60 = vmul.f32 %v4337_v4, %v7491_v29  ;;  %v4357_v36 = vmul.f32 %v4337_v4, %v7498_v3 }
 0x707   : > { %v4358_v58 = vmul.f32 %v4337_v4, %v7505_v14  ;;  %v4359_v22 = vmul.f32 %v4337_v4, %v7512_v33  ;;  %v4360_v42 = vmul.f32 %v4337_v4, %v7680_v61  ;;  %v4361_v9 = vmul.f32 %v4337_v4, %v7691_v15 }
 0x708   : > { %v4362_v11 = vmul.f32 %v4337_v4, %v7702_v37  ;;  %v4369_v28 = vmul.f32 %v4337_v4, %v7763_v25  ;;  %v4363_v20 = vmul.f32 %v4337_v4, %v7712_v35  ;;  %v4364_v6 = vmul.f32 %v4337_v4, %v7722_v31 }
 0x709   : > { %v4370_v29 = vmul.f32 %v4337_v4, %v7779_v49  ;;  %v4372_v27 = vperm.slane %v4335_v12, 0  ;;  %v4365_v3 = vmul.f32 %v4337_v4, %v7732_v1  ;;  %v4366_v14 = vmul.f32 %v4337_v4, %v7741_v52 }
 0x70a   : > { %v4367_v33 = vmul.f32 %v4337_v4, %v7748_v0  ;;  %v4368_v61 = vmul.f32 %v4337_v4, %v7755_v56 }
 0x70b   : > { %v4374_v15 = vadd.f32 %v4372_v27, %v4339_v38  ;;  %v4375_v34 = vadd.f32 %v4372_v27, %v4340_v24  ;;  %v4376_v37 = vadd.f32 %v4372_v27, %v4341_v17  ;;  %v4377_v62 = vadd.f32 %v4372_v27, %v4342_v57 }
 0x70c   : > { %v4378_v25 = vadd.f32 %v4372_v27, %v4343_v7  ;;  %v4379_v30 = vadd.f32 %v4372_v27, %v4344_v23  ;;  %v4380_v35 = vadd.f32 %v4372_v27, %v4345_v44  ;;  %v4381_v13 = vadd.f32 %v4372_v27, %v4346_v19 }
 0x70d   : > { %v4382_v31 = vadd.f32 %v4372_v27, %v4347_v43  ;;  %v4383_v10 = vadd.f32 %v4372_v27, %v4348_v8  ;;  %v4384_v49 = vadd.f32 %v4372_v27, %v4349_v48  ;;  %v4385_v46 = vadd.f32 %v4372_v27, %v4350_v63  ;;  %v4844_v8 = vld [vmem:[%s4927_s12 + $0x18] sm:$0xff]  ;;  %v4845_v48 = vld [vmem:[%s4927_s12 + $0x20] sm:$0xff] }
 0x70e   : > { %v4386_v2 = vadd.f32 %v4372_v27, %v4351_v50  ;;  %v4387_v1 = vadd.f32 %v4372_v27, %v4352_v45  ;;  %v4388_v52 = vadd.f32 %v4372_v27, %v4353_v47  ;;  %v4389_v21 = vadd.f32 %v4372_v27, %v4354_v26  ;;  %v8367_v63 = vld [vmem:[#allocation13_spill] sm:$0xff]  ;;  %v8368_v45 = vld [vmem:[#allocation18_spill] sm:$0xff]  ;;  %v8369_v26 = vld [vmem:[#allocation19_spill] sm:$0xff] }
 0x70f   : > { %v4390_v0 = vadd.f32 %v4372_v27, %v4355_v39  ;;  %v4391_v55 = vadd.f32 %v4372_v27, %v4356_v60  ;;  %v4392_v56 = vadd.f32 %v4372_v27, %v4357_v36  ;;  %v4393_v4 = vadd.f32 %v4372_v27, %v4358_v58  ;;  %v8370_v60 = vld [vmem:[#allocation24_spill] sm:$0xff]  ;;  %v8371_v58 = vld [vmem:[#allocation25_spill] sm:$0xff] }
 0x710   : > { %v4394_v12 = vadd.f32 %v4372_v27, %v4359_v22  ;;  %v4395_v41 = vadd.f32 %v4372_v27, %v4360_v42  ;;  %v4396_v38 = vadd.f32 %v4372_v27, %v4361_v9  ;;  %v4397_v40 = vadd.f32 %v4372_v27, %v4362_v11  ;;  %v8372_v42 = vld [vmem:[#allocation31_spill] sm:$0xff]  ;;  %v8373_v11 = vld [vmem:[#allocation32_spill] sm:$0xff] }
 0x711   : > { %v4398_v24 = vadd.f32 %v4372_v27, %v4363_v20  ;;  %v4399_v59 = vadd.f32 %v4372_v27, %v4364_v6  ;;  %v4400_v17 = vadd.f32 %v4372_v27, %v4365_v3  ;;  %v4401_v5 = vadd.f32 %v4372_v27, %v4366_v14  ;;  %v8374_v20 = vld [vmem:[#allocation38_spill] sm:$0xff]  ;;  %v8376_v3 = vld [vmem:[#allocation4_spill] sm:$0xff] }
 0x712   : > { %v4402_v57 = vadd.f32 %v4372_v27, %v4367_v33  ;;  %v4403_v7 = vadd.f32 %v4372_v27, %v4368_v61  ;;  %v7831_v16 = vadd.f32 %v4372_v27, %v4369_v28  ;;  %v7833_v23 = vadd.f32 %v4372_v27, %v4370_v29  ;;  %v8375_v29 = vld [vmem:[#allocation39_spill] sm:$0xff]  ;;  %v8377_v33 = vld [vmem:[#allocation5_spill] sm:$0xff] }
 0x713   : > { %v4406_v44 = vadd.f32 %v4841_v51, %v4374_v15  ;;  %v4407_v19 = vadd.f32 %v4842_v18, %v4375_v34  ;;  %v4408_v43 = vadd.f32 %v4843_v54, %v4376_v37  ;;  %v4409_v32 = vadd.f32 %v4844_v8, %v4377_v62  ;;  %v8378_v15 = vld [vmem:[#allocation6_spill] sm:$0xff]  ;;  %v8379_v37 = vld [vmem:[#allocation7_spill] sm:$0xff] }
 0x714   : > { %v4410_v53 = vadd.f32 %v4845_v48, %v4378_v25  ;;  %v4411_v50 = vadd.f32 %v4379_v30, %v8367_v63  ;;  %v4412_v47 = vadd.f32 %v4380_v35, %v8368_v45  ;;  %v4413_v39 = vadd.f32 %v4381_v13, %v8369_v26  ;;  %v8380_v25 = vld [vmem:[#allocation10_spill] sm:$0xff]  ;;  %v8381_v35 = vld [vmem:[#allocation11_spill] sm:$0xff] }
 0x715   : > { %4438 = vst.msk [vmem:[%s7829_s18] sm:$0xff] %vm713_vm1, %v4406_v44  ;;  %v4414_v36 = vadd.f32 %v4382_v31, %v8370_v60  ;;  %v4415_v22 = vadd.f32 %v4383_v10, %v8371_v58  ;;  %v4416_v9 = vadd.f32 %v4384_v49, %v8372_v42  ;;  %v4417_v28 = vadd.f32 %v4385_v46, %v8373_v11  ;;  %v8382_v31 = vld [vmem:[#allocation15_spill] sm:$0xff]  ;;  %v8383_v49 = vld [vmem:[#allocation16_spill] sm:$0xff]  ;;  %v8390_v51 = vld [vmem:[#allocation42_spill] sm:$0xff] }
 0x716   : > { %4439 = vst.msk [vmem:[%s7829_s18 + $0x8] sm:$0xff] %vm713_vm1, %v4407_v19  ;;  %v4418_v6 = vadd.f32 %v4386_v2, %v8374_v20  ;;  %v4419_v27 = vadd.f32 %v4387_v1, %v8375_v29  ;;  %v4420_v14 = vadd.f32 %v4388_v52, %v8376_v3  ;;  %v4421_v61 = vadd.f32 %v4389_v21, %v8377_v33  ;;  %v8384_v2 = vld [vmem:[#allocation21_spill] sm:$0xff]  ;;  %v8385_v52 = vld [vmem:[#allocation22_spill] sm:$0xff]  ;;  %v8391_v44 = vld [vmem:[#allocation43_spill] sm:$0xff] }
 0x717   : > { %4440 = vst.msk [vmem:[%s7829_s18 + $0x10] sm:$0xff] %vm713_vm1, %v4408_v43  ;;  %v4422_v34 = vadd.f32 %v4390_v0, %v8378_v15  ;;  %v4423_v62 = vadd.f32 %v4391_v55, %v8379_v37  ;;  %v4424_v30 = vadd.f32 %v4392_v56, %v8380_v25  ;;  %v4425_v13 = vadd.f32 %v4393_v4, %v8381_v35  ;;  %v8386_v0 = vld [vmem:[#allocation28_spill] sm:$0xff]  ;;  %v8387_v56 = vld [vmem:[#allocation29_spill] sm:$0xff] }
 0x718   : > { %4441 = vst.msk [vmem:[%s7829_s18 + $0x18] sm:$0xff] %vm713_vm1, %v4409_v32  ;;  %v4426_v10 = vadd.f32 %v4394_v12, %v8382_v31  ;;  %v4427_v46 = vadd.f32 %v4395_v41, %v8383_v49  ;;  %v4428_v1 = vadd.f32 %v4396_v38, %v8384_v2  ;;  %v4429_v21 = vadd.f32 %v4397_v40, %v8385_v52  ;;  %v8388_v12 = vld [vmem:[#allocation35_spill] sm:$0xff]  ;;  %v8389_v38 = vld [vmem:[#allocation36_spill] sm:$0xff] }
 0x719   : > { %4442 = vst.msk [vmem:[%s7829_s18 + $0x20] sm:$0xff] %vm713_vm1, %v4410_v53  ;;  %v4430_v55 = vadd.f32 %v4398_v24, %v8386_v0  ;;  %v4431_v4 = vadd.f32 %v4399_v59, %v8387_v56  ;;  %v4432_v41 = vadd.f32 %v4400_v17, %v8388_v12  ;;  %v4433_v40 = vadd.f32 %v4401_v5, %v8389_v38  ;;  %v8392_v59 = vld [vmem:[#allocation65_spill] sm:$0xff]  ;;  %v8393_v17 = vld [vmem:[#allocation66_spill] sm:$0xff] }
 0x71a   : > { %4443 = vst.msk [vmem:[%s7829_s18 + $0x28] sm:$0xff] %vm713_vm1, %v4411_v50  ;;  %v4434_v24 = vadd.f32 %v4402_v57, %v8390_v51  ;;  %v4435_v18 = vadd.f32 %v4403_v7, %v8391_v44  ;;  %v4436_v19 = vadd.f32 %v7831_v16, %v8392_v59  ;;  %v4437_v54 = vadd.f32 %v7833_v23, %v8393_v17 }
 0x71b   : > { %4444 = vst.msk [vmem:[%s7829_s18 + $0x30] sm:$0xff] %vm713_vm1, %v4412_v47 }
 0x71c   : > { %4445 = vst.msk [vmem:[%s7829_s18 + $0x38] sm:$0xff] %vm713_vm1, %v4413_v39 }
 0x71d   : > { %4446 = vst.msk [vmem:[%s7829_s18 + $0x40] sm:$0xff] %vm713_vm1, %v4414_v36 }
 0x71e   : > { %4447 = vst.msk [vmem:[%s7829_s18 + $0x48] sm:$0xff] %vm713_vm1, %v4415_v22 }
 0x71f   : > { %4448 = vst.msk [vmem:[%s7829_s18 + $0x50] sm:$0xff] %vm713_vm1, %v4416_v9 }
 0x720   : > { %4449 = vst.msk [vmem:[%s7829_s18 + $0x58] sm:$0xff] %vm713_vm1, %v4417_v28 }
 0x721   : > { %4450 = vst.msk [vmem:[%s7829_s18 + $0x60] sm:$0xff] %vm713_vm1, %v4418_v6 }
 0x722   : > { %4451 = vst.msk [vmem:[%s7829_s18 + $0x68] sm:$0xff] %vm713_vm1, %v4419_v27 }
 0x723   : > { %4452 = vst.msk [vmem:[%s7829_s18 + $0x70] sm:$0xff] %vm713_vm1, %v4420_v14 }
 0x724   : > { %4453 = vst.msk [vmem:[%s7829_s18 + $0x78] sm:$0xff] %vm713_vm1, %v4421_v61 }
 0x725   : > { %4454 = vst.msk [vmem:[%s7829_s18 + $0x80] sm:$0xff] %vm713_vm1, %v4422_v34 }
 0x726   : > { %4455 = vst.msk [vmem:[%s7829_s18 + $0x88] sm:$0xff] %vm713_vm1, %v4423_v62 }
 0x727   : > { %4456 = vst.msk [vmem:[%s7829_s18 + $0x90] sm:$0xff] %vm713_vm1, %v4424_v30 }
 0x728   : > { %4457 = vst.msk [vmem:[%s7829_s18 + $0x98] sm:$0xff] %vm713_vm1, %v4425_v13 }
 0x729   : > { %4458 = vst.msk [vmem:[%s7829_s18 + $0xa0] sm:$0xff] %vm713_vm1, %v4426_v10 }
 0x72a   : > { %4459 = vst.msk [vmem:[%s7829_s18 + $0xa8] sm:$0xff] %vm713_vm1, %v4427_v46 }
 0x72b   : > { %4460 = vst.msk [vmem:[%s7829_s18 + $0xb0] sm:$0xff] %vm713_vm1, %v4428_v1 }
 0x72c   : > { %4461 = vst.msk [vmem:[%s7829_s18 + $0xb8] sm:$0xff] %vm713_vm1, %v4429_v21 }
 0x72d   : > { %4462 = vst.msk [vmem:[%s7829_s18 + $0xc0] sm:$0xff] %vm713_vm1, %v4430_v55 }
 0x72e   : > { %4463 = vst.msk [vmem:[%s7829_s18 + $0xc8] sm:$0xff] %vm713_vm1, %v4431_v4 }
 0x72f   : > { %4464 = vst.msk [vmem:[%s7829_s18 + $0xd0] sm:$0xff] %vm713_vm1, %v4432_v41 }
 0x730   : > { %4465 = vst.msk [vmem:[%s7829_s18 + $0xd8] sm:$0xff] %vm713_vm1, %v4433_v40 }
 0x731   : > { %4466 = vst.msk [vmem:[%s7829_s18 + $0xe0] sm:$0xff] %vm713_vm1, %v4434_v24 }
 0x732   : > { %4467 = vst.msk [vmem:[%s7829_s18 + $0xe8] sm:$0xff] %vm713_vm1, %v4435_v18 }
 0x733   : > { %4468 = vst.msk [vmem:[%s7829_s18 + $0xf0] sm:$0xff] %vm713_vm1, %v4436_v19 }
 0x734   : > { %4469 = vst.msk [vmem:[%s7829_s18 + $0xf8] sm:$0xff] %vm713_vm1, %v4437_v54 }
 0x735 PF: > { %s17_s24 = sadd.s32 1, %s4852_s24  }
 0x736   : > { %p14_p4 = scmp.ge.s32.totalorder %s17_s24, 4  }
 0x738   :  { %16 = sbr.rel (!%p14_p4) target bundleno = 1 (0x1), region = 78 }

</bundles_post_ra>
